<compile_context>
chip_gen: v6e
topology: v6e:2x2x1
jax: 0.10.0
libtpu: 0.0.40
codegen_flags: <defaults>
</compile_context>

<pallas_src>
import functools
import jax
import jax.numpy as jnp
from jax.experimental import pallas as pl
from jax.experimental.pallas import tpu as pltpu

_CIN_PAD = 64   # 3 (xyz) + 32 (color emb) = 35 input channels, zero-padded to 64.


def _posenet_feat_kernel(n_total,
                         xe_ref,
                         w1_ref, b1_ref, w2_ref, b2_ref,
                         w5_ref, b5_ref, w6_ref, b6_ref,
                         xout_ref, ap_ref,
                         acc_ref):
    ni = pl.program_id(1)

    xe = xe_ref[0]                        # (64, TN) bf16 = [x | emb | 0-pad] channels

    def linrelu(w_ref, b_ref, v):
        # bf16 x bf16 -> f32 on the MXU; bias + relu in f32 on the VPU.
        y = jnp.dot(w_ref[...], v, preferred_element_type=jnp.float32)
        return jnp.maximum(y + b_ref[...], 0.0)

    # Fused conv1 / e_conv1 (block-diagonal weights) -> [x1 ; e1]       (128, TN)
    xe1 = linrelu(w1_ref, b1_ref, xe).astype(jnp.bfloat16)
    # Fused conv2 / e_conv2 (block-diagonal weights) -> [x2 ; e2] = pf2 (256, TN)
    pf2 = linrelu(w2_ref, b2_ref, xe1).astype(jnp.bfloat16)
    h5 = linrelu(w5_ref, b5_ref, pf2).astype(jnp.bfloat16)             # (512, TN)
    h6 = linrelu(w6_ref, b6_ref, h5)                                    # (emb_dim, TN) f32

    # Already in PyTorch's NCW layout — no transpose needed.
    xout_ref[0] = h6.astype(xout_ref.dtype)

    # AvgPool1d(num_points): running sum over point tiles, divide at the end.
    # Lane-axis reduction runs on the XLU, which is otherwise idle.
    @pl.when(ni == 0)
    def _():
        acc_ref[...] = jnp.zeros_like(acc_ref)

    acc_ref[...] += jnp.sum(h6, axis=-1, keepdims=True)

    @pl.when(ni == pl.num_programs(1) - 1)
    def _():
        ap_ref[0] = (acc_ref[...] * (1.0 / n_total)).astype(ap_ref.dtype)


def _fuse_params(params):
    """Block-diagonal fused weights (Cout, Cin) in bf16; biases (Cout, 1) in f32."""
    w1 = jnp.zeros((128, _CIN_PAD), jnp.float32)
    w1 = w1.at[0:64, 0:3].set(params["w1"])            # conv1:   xyz channels
    w1 = w1.at[64:128, 3:35].set(params["we1"])        # e_conv1: emb channels
    b1 = jnp.concatenate([params["b1"], params["be1"]], axis=0)[:, None]   # (128, 1)

    w2 = jnp.zeros((256, 128), jnp.float32)
    w2 = w2.at[0:128, 0:64].set(params["w2"])          # conv2  (reads x1 rows)
    w2 = w2.at[128:256, 64:128].set(params["we2"])     # e_conv2 (reads e1 rows)
    b2 = jnp.concatenate([params["b2"], params["be2"]], axis=0)[:, None]   # (256, 1)

    return [w1.astype(jnp.bfloat16), b1,
            w2.astype(jnp.bfloat16), b2,
            params["w5"].astype(jnp.bfloat16), params["b5"][:, None],
            params["w6"].astype(jnp.bfloat16), params["b6"][:, None]]


def posenet_feat(x, emb, params, *, tile_n=None, out_dtype=jnp.float32):
    """x: (B,3,N), emb: (B,32,N) f32.  Returns (x6:(B,emb_dim,N), ap:(B,emb_dim,1))."""
    B, _, N = x.shape
    emb_dim = params["w6"].shape[0]

    if tile_n is None:
        # Fat tiles: the kernel is FLOP-light, so fewer grid steps win.  Cap at
        # 1024 points so the f32 output block (x2 buffers) stays inside v5e's
        # 16 MiB default scoped VMEM even at emb_dim=1024; with bf16 out_dtype
        # (or vmem_limit_bytes bumped) 2048 is fine too.
        tile_n = N if (N <= 1024 or N % 1024 != 0) else 1024
    tile_n = min(tile_n, N)
    assert N % tile_n == 0, "num_points must be divisible by tile_n"
    # Lane-dense (or full-extent) last block dim for the NCW stores.
    assert tile_n % 128 == 0 or tile_n == N

    # NCW channel concat (no transpose), zero-pad channels to 64, cast to bf16.
    xe = jnp.concatenate([x, emb], axis=1)                              # (B, 35, N)
    xe = jnp.pad(xe, ((0, 0), (0, _CIN_PAD - xe.shape[1]), (0, 0)))
    xe = xe.astype(jnp.bfloat16)                                        # (B, 64, N)

    weights = _fuse_params(params)

    def const_spec(shape):
        zeros = (0,) * len(shape)
        return pl.BlockSpec(shape, lambda b, n: zeros)

    grid = (B, N // tile_n)
    out_shapes = (
        jax.ShapeDtypeStruct((B, emb_dim, N), out_dtype),   # NCW directly
        jax.ShapeDtypeStruct((B, emb_dim, 1), jnp.float32),  # NCW directly
    )

    kernel = pl.pallas_call(
        functools.partial(_posenet_feat_kernel, float(N)),
        out_shape=out_shapes,
        grid_spec=pltpu.PrefetchScalarGridSpec(
            num_scalar_prefetch=0,
            grid=grid,
            in_specs=[pl.BlockSpec((1, _CIN_PAD, tile_n), lambda b, n: (b, 0, n))]
                     + [const_spec(w.shape) for w in weights],
            out_specs=[
                pl.BlockSpec((1, emb_dim, tile_n), lambda b, n: (b, 0, n)),
                pl.BlockSpec((1, emb_dim, 1), lambda b, n: (b, 0, 0)),
            ],
            scratch_shapes=[pltpu.VMEM((emb_dim, 1), jnp.float32)],
        ),
        compiler_params=pltpu.CompilerParams(
            # Batch axis shards across TensorCores; the point-tile axis carries
            # the avg-pool accumulator so it must stay "arbitrary".
            dimension_semantics=("parallel", "arbitrary")),
    )

    x6, ap = kernel(xe, *weights)
    return x6, ap


def init_params(key, emb_dim=128):
    """Conv1d(k=1) params stored PyTorch-style: weights (C_out, C_in), biases (C_out,)."""
    dims = {
        "1": (3, 64), "e1": (32, 64), "2": (64, 128),
        "e2": (64, 128), "5": (256, 512), "6": (512, emb_dim),
    }
    params = {}
    for name, (cin, cout) in dims.items():
        key, kw, kb = jax.random.split(key, 3)
        bound = 1.0 / jnp.sqrt(cin)
        params[f"w{name}"] = jax.random.uniform(
            kw, (cout, cin), jnp.float32, -bound, bound)
        params[f"b{name}"] = jax.random.uniform(
            kb, (cout,), jnp.float32, -bound, bound)
    return params


def posenet_feat_ref(x, emb, params):
    """Pure-f32 JAX reference with the PyTorch semantics (for verification)."""
    def lin(v, w, b):  # v: (B, Cin, N), w: (Cout, Cin), b: (Cout,)
        return jnp.maximum(jnp.einsum("oc,bcn->bon", w, v) + b[None, :, None], 0.0)

    x1 = lin(x, params["w1"], params["b1"])
    e1 = lin(emb, params["we1"], params["be1"])
    x2 = lin(x1, params["w2"], params["b2"])
    e2 = lin(e1, params["we2"], params["be2"])
    pf2 = jnp.concatenate([x2, e2], axis=1)
    h5 = lin(pf2, params["w5"], params["b5"])
    h6 = lin(h5, params["w6"], params["b6"])
    ap = jnp.mean(h6, axis=2, keepdims=True)
    return h6, ap


if __name__ == "__main__":
    B, N, emb_dim = 2, 512, 128          # small shapes: num_points=512, emb_dim=128
    key = jax.random.PRNGKey(0)
    kx, ke, kp = jax.random.split(key, 3)

    x = jax.random.normal(kx, (B, 3, N), jnp.float32)     # point cloud (B, 3, num_points)
    emb = jax.random.normal(ke, (B, 32, N), jnp.float32)  # color embedding (B, 32, num_points)
    params = init_params(kp, emb_dim=emb_dim)

    x6, ap = posenet_feat(x, emb, params)                 # tile_n defaults to N -> grid (B, 1)
    jax.block_until_ready((x6, ap))

    x6_ref, ap_ref = posenet_feat_ref(x, emb, params)
    assert x6.shape == (B, emb_dim, N) and ap.shape == (B, emb_dim, 1)
    # bf16 matmuls (f32 accumulation) vs. the pure-f32 reference -> relaxed tol.
    assert jnp.allclose(x6, x6_ref, atol=5e-2, rtol=5e-2)
    assert jnp.allclose(ap, ap_ref, atol=5e-2, rtol=5e-2)

    print("KERNEL_OK")
</pallas_src>

<mosaic_0001>
module attributes {stable_mosaic.version = 11 : i64} {
  func.func @_posenet_feat_kernel(%arg0: i32, %arg1: i32, %arg2: memref<1x64x512xbf16, #tpu.memory_space<vmem>>, %arg3: memref<128x64xbf16, #tpu.memory_space<vmem>>, %arg4: memref<128x1xf32, #tpu.memory_space<vmem>>, %arg5: memref<256x128xbf16, #tpu.memory_space<vmem>>, %arg6: memref<256x1xf32, #tpu.memory_space<vmem>>, %arg7: memref<512x256xbf16, #tpu.memory_space<vmem>>, %arg8: memref<512x1xf32, #tpu.memory_space<vmem>>, %arg9: memref<128x512xbf16, #tpu.memory_space<vmem>>, %arg10: memref<128x1xf32, #tpu.memory_space<vmem>>, %arg11: memref<1x128x512xf32, #tpu.memory_space<vmem>>, %arg12: memref<1x128x1xf32, #tpu.memory_space<vmem>>, %arg13: memref<128x1xf32, #tpu.memory_space<vmem>>) attributes {dimension_semantics = [#tpu.dimension_semantics<parallel>, #tpu.dimension_semantics<arbitrary>], iteration_bounds = array<i64: 2, 1>, scalar_prefetch = 0 : i64, scratch_operands = 1 : i64, tpu.core_type = #tpu.core_type<tc>, window_params = [{transform_indices = @transform_0, window_bounds = array<i64: 1, 64, 512>}, {pipeline_mode = #tpu.pipeline_mode<synchronous>, transform_indices = @transform_1, window_bounds = array<i64: 128, 64>}, {pipeline_mode = #tpu.pipeline_mode<synchronous>, transform_indices = @transform_2, window_bounds = array<i64: 128, 1>}, {pipeline_mode = #tpu.pipeline_mode<synchronous>, transform_indices = @transform_3, window_bounds = array<i64: 256, 128>}, {pipeline_mode = #tpu.pipeline_mode<synchronous>, transform_indices = @transform_4, window_bounds = array<i64: 256, 1>}, {pipeline_mode = #tpu.pipeline_mode<synchronous>, transform_indices = @transform_5, window_bounds = array<i64: 512, 256>}, {pipeline_mode = #tpu.pipeline_mode<synchronous>, transform_indices = @transform_6, window_bounds = array<i64: 512, 1>}, {pipeline_mode = #tpu.pipeline_mode<synchronous>, transform_indices = @transform_7, window_bounds = array<i64: 128, 512>}, {pipeline_mode = #tpu.pipeline_mode<synchronous>, transform_indices = @transform_8, window_bounds = array<i64: 128, 1>}, {transform_indices = @transform_9, window_bounds = array<i64: 1, 128, 512>}, {transform_indices = @transform_10, window_bounds = array<i64: 1, 128, 1>}]} {
    %c0 = arith.constant 0 : index
    %c0_0 = arith.constant 0 : index
    %c0_1 = arith.constant 0 : index
    %0 = vector.load %arg2[%c0, %c0_0, %c0_1] : memref<1x64x512xbf16, #tpu.memory_space<vmem>>, vector<1x64x512xbf16>
    %1 = vector.shape_cast %0 : vector<1x64x512xbf16> to vector<64x512xbf16>
    %c0_2 = arith.constant 0 : index
    %c0_3 = arith.constant 0 : index
    %2 = vector.load %arg3[%c0_2, %c0_3] : memref<128x64xbf16, #tpu.memory_space<vmem>>, vector<128x64xbf16>
    %cst = arith.constant dense<0.000000e+00> : vector<128x512xf32>
    %3 = tpu.matmul %2, %1, %cst {dimension_numbers = #tpu.dot_dimension_numbers<[1], [0], [0], [1], [0, 0, 1, 1], [], []>} : vector<128x64xbf16>, vector<64x512xbf16>, vector<128x512xf32> -> vector<128x512xf32>
    %c0_4 = arith.constant 0 : index
    %c0_5 = arith.constant 0 : index
    %4 = vector.load %arg4[%c0_4, %c0_5] : memref<128x1xf32, #tpu.memory_space<vmem>>, vector<128x1xf32>
    %5 = vector.broadcast %4 : vector<128x1xf32> to vector<128x512xf32>
    %6 = arith.addf %3, %5 : vector<128x512xf32>
    %cst_6 = arith.constant 0.000000e+00 : f32
    %7 = vector.broadcast %cst_6 : f32 to vector<128x512xf32>
    %8 = arith.maximumf %6, %7 : vector<128x512xf32>
    %9 = arith.truncf %8 : vector<128x512xf32> to vector<128x512xbf16>
    %c0_7 = arith.constant 0 : index
    %c0_8 = arith.constant 0 : index
    %10 = vector.load %arg5[%c0_7, %c0_8] : memref<256x128xbf16, #tpu.memory_space<vmem>>, vector<256x128xbf16>
    %cst_9 = arith.constant dense<0.000000e+00> : vector<256x512xf32>
    %11 = tpu.matmul %10, %9, %cst_9 {dimension_numbers = #tpu.dot_dimension_numbers<[1], [0], [0], [1], [0, 0, 1, 1], [], []>} : vector<256x128xbf16>, vector<128x512xbf16>, vector<256x512xf32> -> vector<256x512xf32>
    %c0_10 = arith.constant 0 : index
    %c0_11 = arith.constant 0 : index
    %12 = vector.load %arg6[%c0_10, %c0_11] : memref<256x1xf32, #tpu.memory_space<vmem>>, vector<256x1xf32>
    %13 = vector.broadcast %12 : vector<256x1xf32> to vector<256x512xf32>
    %14 = arith.addf %11, %13 : vector<256x512xf32>
    %cst_12 = arith.constant 0.000000e+00 : f32
    %15 = vector.broadcast %cst_12 : f32 to vector<256x512xf32>
    %16 = arith.maximumf %14, %15 : vector<256x512xf32>
    %17 = arith.truncf %16 : vector<256x512xf32> to vector<256x512xbf16>
    %c0_13 = arith.constant 0 : index
    %c0_14 = arith.constant 0 : index
    %18 = vector.load %arg7[%c0_13, %c0_14] : memref<512x256xbf16, #tpu.memory_space<vmem>>, vector<512x256xbf16>
    %cst_15 = arith.constant dense<0.000000e+00> : vector<512x512xf32>
    %19 = tpu.matmul %18, %17, %cst_15 {dimension_numbers = #tpu.dot_dimension_numbers<[1], [0], [0], [1], [0, 0, 1, 1], [], []>} : vector<512x256xbf16>, vector<256x512xbf16>, vector<512x512xf32> -> vector<512x512xf32>
    %c0_16 = arith.constant 0 : index
    %c0_17 = arith.constant 0 : index
    %20 = vector.load %arg8[%c0_16, %c0_17] : memref<512x1xf32, #tpu.memory_space<vmem>>, vector<512x1xf32>
    %21 = vector.broadcast %20 : vector<512x1xf32> to vector<512x512xf32>
    %22 = arith.addf %19, %21 : vector<512x512xf32>
    %cst_18 = arith.constant 0.000000e+00 : f32
    %23 = vector.broadcast %cst_18 : f32 to vector<512x512xf32>
    %24 = arith.maximumf %22, %23 : vector<512x512xf32>
    %25 = arith.truncf %24 : vector<512x512xf32> to vector<512x512xbf16>
    %c0_19 = arith.constant 0 : index
    %c0_20 = arith.constant 0 : index
    %26 = vector.load %arg9[%c0_19, %c0_20] : memref<128x512xbf16, #tpu.memory_space<vmem>>, vector<128x512xbf16>
    %cst_21 = arith.constant dense<0.000000e+00> : vector<128x512xf32>
    %27 = tpu.matmul %26, %25, %cst_21 {dimension_numbers = #tpu.dot_dimension_numbers<[1], [0], [0], [1], [0, 0, 1, 1], [], []>} : vector<128x512xbf16>, vector<512x512xbf16>, vector<128x512xf32> -> vector<128x512xf32>
    %c0_22 = arith.constant 0 : index
    %c0_23 = arith.constant 0 : index
    %28 = vector.load %arg10[%c0_22, %c0_23] : memref<128x1xf32, #tpu.memory_space<vmem>>, vector<128x1xf32>
    %29 = vector.broadcast %28 : vector<128x1xf32> to vector<128x512xf32>
    %30 = arith.addf %27, %29 : vector<128x512xf32>
    %cst_24 = arith.constant 0.000000e+00 : f32
    %31 = vector.broadcast %cst_24 : f32 to vector<128x512xf32>
    %32 = arith.maximumf %30, %31 : vector<128x512xf32>
    %c0_25 = arith.constant 0 : index
    %c0_26 = arith.constant 0 : index
    %c0_27 = arith.constant 0 : index
    %33 = vector.load %arg11[%c0_25, %c0_26, %c0_27] : memref<1x128x512xf32, #tpu.memory_space<vmem>>, vector<1x128x512xf32>
    %34 = vector.shape_cast %33 : vector<1x128x512xf32> to vector<128x512xf32>
    %35 = vector.shape_cast %32 : vector<128x512xf32> to vector<1x128x512xf32>
    tpu.vector_store %arg11[%c0_25, %c0_26, %c0_27], %35 {strides = array<i32>} : memref<1x128x512xf32, #tpu.memory_space<vmem>>, vector<1x128x512xf32>,
    %c0_i32 = arith.constant 0 : i32
    %36 = arith.cmpi eq, %arg1, %c0_i32 : i32
    %37 = arith.extui %36 : i1 to i32
    %c0_i32_28 = arith.constant 0 : i32
    %38 = arith.cmpi ne, %37, %c0_i32_28 : i32
    scf.if %38 {
      %cst_36 = arith.constant 0.000000e+00 : f32
      %47 = vector.broadcast %cst_36 : f32 to vector<128x1xf32>
      %c0_37 = arith.constant 0 : index
      %c0_38 = arith.constant 0 : index
      %48 = vector.load %arg13[%c0_37, %c0_38] : memref<128x1xf32, #tpu.memory_space<vmem>>, vector<128x1xf32>
      tpu.vector_store %arg13[%c0_37, %c0_38], %47 {strides = array<i32>} : memref<128x1xf32, #tpu.memory_space<vmem>>, vector<128x1xf32>,
    } else {
    }
    %c0_29 = arith.constant 0 : index
    %c0_30 = arith.constant 0 : index
    %39 = vector.load %arg13[%c0_29, %c0_30] : memref<128x1xf32, #tpu.memory_space<vmem>>, vector<128x1xf32>
    %cst_31 = arith.constant dense<0.000000e+00> : vector<128xf32>
    %40 = vector.multi_reduction <add>, %32, %cst_31 [1] : vector<128x512xf32> to vector<128xf32>
    %41 = vector.shape_cast %40 : vector<128xf32> to vector<128x1xf32>
    %42 = arith.addf %39, %41 : vector<128x1xf32>
    %c0_32 = arith.constant 0 : index
    %c0_33 = arith.constant 0 : index
    %43 = vector.load %arg13[%c0_32, %c0_33] : memref<128x1xf32, #tpu.memory_space<vmem>>, vector<128x1xf32>
    tpu.vector_store %arg13[%c0_32, %c0_33], %42 {strides = array<i32>} : memref<128x1xf32, #tpu.memory_space<vmem>>, vector<128x1xf32>,
    %c0_i32_34 = arith.constant 0 : i32
    %44 = arith.cmpi eq, %arg1, %c0_i32_34 : i32
    %45 = arith.extui %44 : i1 to i32
    %c0_i32_35 = arith.constant 0 : i32
    %46 = arith.cmpi ne, %45, %c0_i32_35 : i32
    scf.if %46 {
      %c0_36 = arith.constant 0 : index
      %c0_37 = arith.constant 0 : index
      %47 = vector.load %arg13[%c0_36, %c0_37] : memref<128x1xf32, #tpu.memory_space<vmem>>, vector<128x1xf32>
      %cst_38 = arith.constant 0.001953125 : f32
      %48 = vector.broadcast %cst_38 : f32 to vector<128x1xf32>
      %49 = arith.mulf %47, %48 : vector<128x1xf32>
      %c0_39 = arith.constant 0 : index
      %c0_40 = arith.constant 0 : index
      %c0_41 = arith.constant 0 : index
      %50 = vector.load %arg12[%c0_39, %c0_40, %c0_41] : memref<1x128x1xf32, #tpu.memory_space<vmem>>, vector<1x128x1xf32>
      %51 = vector.shape_cast %50 : vector<1x128x1xf32> to vector<128x1xf32>
      %52 = vector.shape_cast %49 : vector<128x1xf32> to vector<1x128x1xf32>
      tpu.vector_store %arg12[%c0_39, %c0_40, %c0_41], %52 {strides = array<i32>} : memref<1x128x1xf32, #tpu.memory_space<vmem>>, vector<1x128x1xf32>,
    } else {
    }
    return
  }
  func.func @transform_0(%arg0: i32, %arg1: i32) -> (i32, i32, i32) {
    %c0_i32 = arith.constant 0 : i32
    %c0_i32_0 = arith.constant 0 : i32
    return %arg0, %c0_i32, %arg1 : i32, i32, i32
  }
  func.func @transform_1(%arg0: i32, %arg1: i32) -> (i32, i32) {
    %c0_i32 = arith.constant 0 : i32
    %c0_i32_0 = arith.constant 0 : i32
    %c0_i32_1 = arith.constant 0 : i32
    return %c0_i32, %c0_i32_0 : i32, i32
  }
  func.func @transform_2(%arg0: i32, %arg1: i32) -> (i32, i32) {
    %c0_i32 = arith.constant 0 : i32
    %c0_i32_0 = arith.constant 0 : i32
    %c0_i32_1 = arith.constant 0 : i32
    return %c0_i32, %c0_i32_0 : i32, i32
  }
  func.func @transform_3(%arg0: i32, %arg1: i32) -> (i32, i32) {
    %c0_i32 = arith.constant 0 : i32
    %c0_i32_0 = arith.constant 0 : i32
    %c0_i32_1 = arith.constant 0 : i32
    return %c0_i32, %c0_i32_0 : i32, i32
  }
  func.func @transform_4(%arg0: i32, %arg1: i32) -> (i32, i32) {
    %c0_i32 = arith.constant 0 : i32
    %c0_i32_0 = arith.constant 0 : i32
    %c0_i32_1 = arith.constant 0 : i32
    return %c0_i32, %c0_i32_0 : i32, i32
  }
  func.func @transform_5(%arg0: i32, %arg1: i32) -> (i32, i32) {
    %c0_i32 = arith.constant 0 : i32
    %c0_i32_0 = arith.constant 0 : i32
    %c0_i32_1 = arith.constant 0 : i32
    return %c0_i32, %c0_i32_0 : i32, i32
  }
  func.func @transform_6(%arg0: i32, %arg1: i32) -> (i32, i32) {
    %c0_i32 = arith.constant 0 : i32
    %c0_i32_0 = arith.constant 0 : i32
    %c0_i32_1 = arith.constant 0 : i32
    return %c0_i32, %c0_i32_0 : i32, i32
  }
  func.func @transform_7(%arg0: i32, %arg1: i32) -> (i32, i32) {
    %c0_i32 = arith.constant 0 : i32
    %c0_i32_0 = arith.constant 0 : i32
    %c0_i32_1 = arith.constant 0 : i32
    return %c0_i32, %c0_i32_0 : i32, i32
  }
  func.func @transform_8(%arg0: i32, %arg1: i32) -> (i32, i32) {
    %c0_i32 = arith.constant 0 : i32
    %c0_i32_0 = arith.constant 0 : i32
    %c0_i32_1 = arith.constant 0 : i32
    return %c0_i32, %c0_i32_0 : i32, i32
  }
  func.func @transform_9(%arg0: i32, %arg1: i32) -> (i32, i32, i32) {
    %c0_i32 = arith.constant 0 : i32
    %c0_i32_0 = arith.constant 0 : i32
    return %arg0, %c0_i32, %arg1 : i32, i32, i32
  }
  func.func @transform_10(%arg0: i32, %arg1: i32) -> (i32, i32, i32) {
    %c0_i32 = arith.constant 0 : i32
    %c0_i32_0 = arith.constant 0 : i32
    %c0_i32_1 = arith.constant 0 : i32
    return %arg0, %c0_i32, %c0_i32_0 : i32, i32, i32
  }
}

</mosaic_0001>

<bundles_post_ra>
// kernel: tpu_custom_call.1
= control target key start
LH: loop header
LB: loop body
LE: loop exit
PB: predicated region body
PF: predicated region fallthrough
CT: control target
= control target key end

     0   :  { %s8968_s0 = inlined_call_operand.vmem [shape: bf16[2,64,512], index: 0, kind: input, shape index: {}]   ;;  %s8969_s1 = inlined_call_operand.vmem [shape: bf16[128,64], index: 1, kind: input, shape index: {}]   ;;  %s8970_s2 = inlined_call_operand.vmem [shape: f32[128,1], index: 2, kind: input, shape index: {}]   ;;  %s8971_s3 = inlined_call_operand.hbm [shape: bf16[256,128], index: 3, kind: input, shape index: {}]   ;;  %s8972_s4 = inlined_call_operand.vmem [shape: f32[256,1], index: 4, kind: input, shape index: {}]   ;;  %s8973_s5 = inlined_call_operand.vmem [shape: bf16[512,256], index: 5, kind: input, shape index: {}]   ;;  %s8974_s6 = inlined_call_operand.vmem [shape: f32[512,1], index: 6, kind: input, shape index: {}]   ;;  %s8975_s7 = inlined_call_operand.vmem [shape: bf16[128,512], index: 7, kind: input, shape index: {}]   ;;  %s8976_s8 = inlined_call_operand.vmem [shape: f32[128,1], index: 8, kind: input, shape index: {}]   ;;  %s8977_s9 = inlined_call_operand.hbm [shape: f32[2,128,512], index: 9, kind: output, shape index: {0}]   ;;  %s8978_s10 = inlined_call_operand.vmem [shape: f32[2,128,1], index: 10, kind: output, shape index: {1}]  }
   0x1   :  { %9147 = sst [smem:[#allocation110_spill]] %s8968_s0 }
   0x2   :  { %9148 = sst [smem:[#allocation111_spill]] %s8969_s1 }
   0x3   :  { %16 = vsyncpa [#allocation4], 0 }
   0x4   :  { %17 = vsyncpa [#allocation5], 0 }
   0x5   :  { %19 = vsyncpa [#allocation5 + $0x1], 0  ;;  %s5589_s13 = smov 0   ;;  %s5591_s14 = smov 0  }
   0x6   :  { %s5593_s15 = smov 0   ;;  %s5595_s16 = smov 0  }
   0x7   :  { %s5597_s17 = smov 0   ;;  %s5599_s18 = smov 0  }
   0x8 LB: > { %s4978_s19 = sadd.s32 4294967295, %s5524_s18   ;;  %s4979_s20 = sadd.s32 4294967294, %s5524_s18   ;;  %s5524_s18 = sphi %s5599_s18, %s25_s18   ;;  %s5520_s17 = sphi %s5597_s17, %s9732_s17   ;;  %s5516_s16 = sphi %s5595_s16, %s9731_s16   ;;  %s5512_s15 = sphi %s5593_s15, %s9730_s15   ;;  %s5508_s14 = sphi %s5591_s14, %s9729_s14   ;;  %s5504_s13 = sphi %s5589_s13, %s9728_s13  }
   0x9   : > { %s37_s21 = sadd.s32 1, %s5520_s17  ;;  %s242_s22 = sadd.s32 1, %s5512_s15 }
   0xa   : > { %p39_p0 = scmp.ge.s32.totalorder %s37_s21, 2  ;;  %p252_p1 = scmp.ne.s32.totalorder %s5512_s15, %s5508_s14 }
   0xb   : > { %p253_p2 = scmp.eq.s32.totalorder %s4978_s19, 1  ;;  %p258_p3 = scmp.ne.s32.totalorder %s5508_s14, %s5504_s13 }
   0xc   : > { %s9734_s21 = smov (%p39_p0, %s37_s21), 0  ;;  %p259_p5 = scmp.eq.s32.totalorder %s4979_s20, 1 }
   0xd   : > { %p5629_p4 = por %p253_p2, %p252_p1  ;;  %s237_s24 = ssub.s32 %s5520_s17, %s9734_s21 }
   0xe   : > { %p4980_p6 = scmp.ge.s32.totalorder %s5524_s18, 1  ;;  %p240_p7 = scmp.eq.s32.totalorder %s237_s24, 0 }
   0xf   : > { %p5636_p8 = por %p259_p5, %p258_p3  ;;  %p292_p9 = scmp.lt.s32.totalorder %s5524_s18, 3 }
  0x10   : > { %s5642_s26 = scalar_select %p240_p7, %s5512_s15, %s242_s22  }
  0x11   : > { %p5644_p10 = pnand %p4980_p6, %p292_p9  ;;  %p5648_p11 = scmp.eq.s32.totalorder %s4978_s19, 0 }
  0x12   : > { %s5526_s29 = smov [#allocation3]  }
  0x13   : > { %p5156_p12 = pneg %p5644_p10  ;;  %s310_s30 = sshll.u32 %s5526_s29, 4  ;;  %s311_s30 = int_to_ptr.vmem [resolvable:$true] %s310_s30 }
  0x14   : > { %s5429_s11 = scalar_lea.vmem %s311_s30, 2048  ;;  %p5437_p5 = scmp.lt.s32.totalorder %s311_s30, %s311_s30 }
  0x15   : > { %p5157_p13 = pnand %p5648_p11, %p5156_p12  ;;  %p5430_p1 = scmp.ne.s32.totalorder %s311_s30, %s5429_s11 }
  0x16   : > { %p5438_p6 = scmp.lt.s32.totalorder %s5429_s11, %s5429_s11 }
  0x17   : > { %p5420_p0 = pneg %p5157_p13 }
  0x18   : > { %p5439_p7 = por %p5438_p6, %p5437_p5 }
  0x19   : > { %p5432_p2 = pnand %p5430_p1, %p5420_p0 }
  0x1b   : > { %p5433_p3 = pneg %p5432_p2 }
  0x1d   : > { %p5440_p9 = pnand %p5439_p7, %p5433_p3 }
  0x1f   : > { %5443 = shalt.err (!%p5440_p9)
}
  0x20   : > { %s5527_s12 = smov 64   ;;  %s5528_s19 = smov 4  }
  0x21   : > { %5159 = dma.hbm_to_vmem [thread:$0]  (!%p5157_p13), %s8971_s3, 2048, %s311_s30, [#allocation4], %s5527_s12, %s5527_s12, %s5528_s19  }
  0x22   : > { %354 = sbr.rel (%p5644_p10) target bundleno = 1675 (0x68b), region = 56 }
  0x27   : > { %5495 = dma.done.wait (%p5648_p11), [#allocation4], 2048  }
  0x28   : > { %5497 = vsyncadd (%p5648_p11), [#allocation4], 4294965248  ;;  %p402_p12 = scmp.lt.s32.totalorder %s5516_s16, 1  ;;  %v8980_v0 = vmov 0   ;;  %s9153_s0 = sld [smem:[#allocation110_spill]]  ;;  %v464_v1 = vld [vmem:[%s8970_s2 + $0x70] sm:$0xff] }
  0x29   : > { %5223 = vset.pattern.permute.xlu1 %v8980_v0  ;;  %5222 = vset.pattern.permute.xlu0 %v8980_v0  ;;  %v462_v2 = vld [vmem:[%s8970_s2 + $0x60] sm:$0xff]  ;;  %v465_v7 = vld [vmem:[%s8970_s2 + $0x78] sm:$0xff]  ;;  %v463_v8 = vld [vmem:[%s8970_s2 + $0x68] sm:$0xff]  ;;  %s9154_s1 = sld [smem:[#allocation111_spill]]  ;;  %vm666_vm0 = vcmask 523264   ;;  %s391_s29 = sand.u32 1, %s5508_s14  }
  0x2a   : > { %s5669_s24 = scalar_select %p402_p12, %s5516_s16, 1  ;;  %723 = vmatprep.mubr.bf16.mxu0 %v8980_v0  ;;  %836 = vmatprep.mubr.bf16.mxu1 %v8980_v0  ;;  %v461_v13 = vld [vmem:[%s8970_s2 + $0x58] sm:$0xff]  ;;  %v460_v14 = vld [vmem:[%s8970_s2 + $0x50] sm:$0xff]  ;;  %v459_v19 = vld [vmem:[%s8970_s2 + $0x48] sm:$0xff]  ;;  %vm4641_vm1 = vcmask 7168  }
  0x2b   : > { %538 = vperm.xlu0 %5222, %v464_v1   ;;  %528 = vperm.xlu1 %5223, %v462_v2   ;;  %v458_v20 = vld [vmem:[%s8970_s2 + $0x40] sm:$0xff]  ;;  %v456_v25 = vld [vmem:[%s8970_s2 + $0x30] sm:$0xff]  ;;  %v457_v26 = vld [vmem:[%s8970_s2 + $0x38] sm:$0xff]  ;;  %s4985_s11 = sshll.u32 %s391_s29, 9  ;;  %s5149_s12 = sshll.u32 %s5516_s16, 13 }
  0x2c   : > { %s8979_s27 = sshll.u32 %s5669_s24, 7  ;;  %v454_v28 = vld [vmem:[%s8970_s2 + $0x20] sm:$0xff]  ;;  %v455_v29 = vld [vmem:[%s8970_s2 + $0x28] sm:$0xff]  ;;  %v453_v30 = vld [vmem:[%s8970_s2 + $0x18] sm:$0xff]  ;;  %s8862_s20 = scalar_lea.hbm %s8977_s9, %s5149_s12 }
  0x2d   : > { %v452_v31 = vld [vmem:[%s8970_s2 + $0x10] sm:$0xff]  ;;  %v450_v33 = vld [vmem:[%s8970_s2] sm:$0xff]  ;;  %v451_v34 = vld [vmem:[%s8970_s2 + $0x8] sm:$0xff]  ;;  %s8868_s22 = scalar_lea.sflag [#allocation5], %s391_s29  ;;  %s5531_s16 = smov [#allocation6]  }
  0x2e   : > { %s5679_s30 = scalar_lea.vmem %s9153_s0, %s8979_s27  ;;  %v1059_v35 = vld [vmem:[%s8972_s4 + $0x70] sm:$0xff]  ;;  %v1060_v36 = vld [vmem:[%s8972_s4 + $0x78] sm:$0xff]  ;;  %v1057_v38 = vld [vmem:[%s8972_s4 + $0x60] sm:$0xff] }
  0x2f   : > { %v5224_v3 = vld [vmem:[%s5679_s30 + $0x64] ss:$16 sps:$4 sm:$0xff]   ;;  %v5226_v4 = vld [vmem:[%s5679_s30 + $0x6c] ss:$16 sps:$4 sm:$0xff]   ;;  %v5228_v5 = vld [vmem:[%s5679_s30 + $0x60] ss:$16 sps:$4 sm:$0xff]   ;;  %543 = vperm.xlu0 %5222, %v465_v7   ;;  %533 = vperm.xlu1 %5223, %v463_v8  }
  0x30   : > { %699 = vmatprep.subr.bf16.mxu0 %v5224_v3  ;;  %v5229_v6 = vld [vmem:[%s5679_s30 + $0x68] ss:$16 sps:$4 sm:$0xff]   ;;  %812 = vmatprep.subr.bf16.mxu1 %v5226_v4  ;;  %v5230_v9 = vld [vmem:[%s5679_s30 + $0x44] ss:$16 sps:$4 sm:$0xff]   ;;  %v5232_v10 = vld [vmem:[%s5679_s30 + $0x4c] ss:$16 sps:$4 sm:$0xff]  }
  0x31   : > { %700 = vmatpush1.bf16.msra.mxu0 %v5228_v5  ;;  %813 = vmatpush1.bf16.msra.mxu1 %v5229_v6  ;;  %v5234_v11 = vld [vmem:[%s5679_s30 + $0x40] ss:$16 sps:$4 sm:$0xff]   ;;  %v5235_v12 = vld [vmem:[%s5679_s30 + $0x48] ss:$16 sps:$4 sm:$0xff]   ;;  %v5236_v15 = vld [vmem:[%s5679_s30 + $0x24] ss:$16 sps:$4 sm:$0xff]  }
  0x32   : > { %701 = vmatprep.subr.bf16.mxu0 %v5230_v9  ;;  %814 = vmatprep.subr.bf16.mxu1 %v5232_v10  ;;  %v5238_v16 = vld [vmem:[%s5679_s30 + $0x2c] ss:$16 sps:$4 sm:$0xff]   ;;  %v5240_v17 = vld [vmem:[%s5679_s30 + $0x20] ss:$16 sps:$4 sm:$0xff]   ;;  %v5241_v18 = vld [vmem:[%s5679_s30 + $0x28] ss:$16 sps:$4 sm:$0xff]  }
  0x33   : > { %518 = vperm.xlu0 %5222, %v460_v14   ;;  %523 = vperm.xlu1 %5223, %v461_v13   ;;  %v5242_v21 = vld [vmem:[%s5679_s30 + $0x4] ss:$16 sps:$4 sm:$0xff]   ;;  %v5244_v22 = vld [vmem:[%s5679_s30 + $0xc] ss:$16 sps:$4 sm:$0xff]   ;;  %v5246_v23 = vld [vmem:[%s5679_s30] ss:$16 sps:$4 sm:$0xff]  }
  0x34   : > { %v5247_v24 = vld [vmem:[%s5679_s30 + $0x8] ss:$16 sps:$4 sm:$0xff]   ;;  %v5248_v27 = vld [vmem:[%s9154_s1] sm:$0xff]   ;;  %v5250_v37 = vld [vmem:[%s9154_s1 + $0x10] sm:$0xff]   ;;  %s8374_s30 = scalar_lea.vmem [#allocation6], %s4985_s11  ;;  %s5448_s11 = sshll.u32 %s5531_s16, 4  ;;  %s5449_s11 = int_to_ptr.vmem [resolvable:$false] %s5448_s11 }
  0x35   : > { %702 = vmatpush1.bf16.msra.mxu0 %v5234_v11  ;;  %815 = vmatpush1.bf16.msra.mxu1 %v5235_v12  ;;  %v5249_v32 = vld [vmem:[%s9154_s1 + $0x8] sm:$0xff]   ;;  %v1055_v40 = vld [vmem:[%s8972_s4 + $0x50] sm:$0xff]  ;;  %v1056_v41 = vld [vmem:[%s8972_s4 + $0x58] sm:$0xff]  ;;  %s4859_s0 = sshll.u32 %s8374_s30, 4  ;;  %s8864_s0 = int_to_ptr.vmem [resolvable:$true] %s4859_s0 }
  0x36   : > { %703 = vmatprep.subr.bf16.mxu0 %v5236_v15  ;;  %816 = vmatprep.subr.bf16.mxu1 %v5238_v16  ;;  %v1058_v39 = vld [vmem:[%s8972_s4 + $0x68] sm:$0xff]  ;;  %v5251_v42 = vld [vmem:[%s9154_s1 + $0x18] sm:$0xff]   ;;  %v1053_v43 = vld [vmem:[%s8972_s4 + $0x40] sm:$0xff]  ;;  %s5444_s28 = scalar_lea.vmem %s8864_s0, 8192  ;;  %p5451_p0 = scmp.lt.s32.totalorder %s8864_s0, %s5449_s11 }
  0x37   : > { %508 = vperm.xlu0 %5222, %v458_v20   ;;  %513 = vperm.xlu1 %5223, %v459_v19   ;;  %v1054_v44 = vld [vmem:[%s8972_s4 + $0x48] sm:$0xff]  ;;  %v1051_v45 = vld [vmem:[%s8972_s4 + $0x30] sm:$0xff]  ;;  %v1052_v46 = vld [vmem:[%s8972_s4 + $0x38] sm:$0xff]  ;;  %p5445_p10 = scmp.ne.s32.totalorder %s8864_s0, %s5444_s28 }
  0x38   : > { %v5252_v47 = vld [vmem:[%s9154_s1 + $0x20] sm:$0xff]   ;;  %v1050_v48 = vld [vmem:[%s8972_s4 + $0x28] sm:$0xff]  ;;  %v1048_v50 = vld [vmem:[%s8972_s4 + $0x18] sm:$0xff] }
  0x39   : > { %704 = vmatpush1.bf16.msra.mxu0 %v5240_v17  ;;  %817 = vmatpush1.bf16.msra.mxu1 %v5241_v18  ;;  %v1049_v49 = vld [vmem:[%s8972_s4 + $0x20] sm:$0xff]  ;;  %v1047_v51 = vld [vmem:[%s8972_s4 + $0x10] sm:$0xff]  ;;  %v5253_v52 = vld [vmem:[%s9154_s1 + $0x28] sm:$0xff]   ;;  %p5446_p11 = pnand %p5445_p10, %p5629_p4 }
  0x3a   : > { %705 = vmatprep.subr.bf16.mxu0 %v5242_v21  ;;  %818 = vmatprep.subr.bf16.mxu1 %v5244_v22  ;;  %v1046_v53 = vld [vmem:[%s8972_s4 + $0x8] sm:$0xff]  ;;  %v1045_v54 = vld [vmem:[%s8972_s4] sm:$0xff]  ;;  %v1076_v55 = vld [vmem:[%s8972_s4 + $0xf8] sm:$0xff] }
  0x3b   : > { %498 = vperm.xlu0 %5222, %v456_v25   ;;  %503 = vperm.xlu1 %5223, %v457_v26   ;;  %v1075_v56 = vld [vmem:[%s8972_s4 + $0xf0] sm:$0xff]  ;;  %v1074_v58 = vld [vmem:[%s8972_s4 + $0xe8] sm:$0xff]  ;;  %v1073_v59 = vld [vmem:[%s8972_s4 + $0xe0] sm:$0xff]  ;;  %p5447_p13 = pneg %p5446_p11 }
  0x3c   : > { %v5254_v57 = vld [vmem:[%s9154_s1 + $0x30] sm:$0xff]   ;;  %v1072_v60 = vld [vmem:[%s8972_s4 + $0xd8] sm:$0xff]  ;;  %v1070_v63 = vld [vmem:[%s8972_s4 + $0xc8] sm:$0xff] }
  0x3d   : > { %706 = vmatpush1.bf16.msra.mxu0 %v5246_v23  ;;  %819 = vmatpush1.bf16.msra.mxu1 %v5247_v24  ;;  %v1071_v61 = vld [vmem:[%s8972_s4 + $0xd0] sm:$0xff]  ;;  %v5255_v62 = vld [vmem:[%s9154_s1 + $0x38] sm:$0xff]   ;;  %v1069_v1 = vld [vmem:[%s8972_s4 + $0xc0] sm:$0xff] }
  0x3e   : > { %v1068_v2 = vld [vmem:[%s8972_s4 + $0xb8] sm:$0xff]  ;;  %v1067_v3 = vld [vmem:[%s8972_s4 + $0xb0] sm:$0xff]  ;;  %v1066_v4 = vld [vmem:[%s8972_s4 + $0xa8] sm:$0xff] }
  0x3f   : > { %488 = vperm.xlu0 %5222, %v454_v28   ;;  %493 = vperm.xlu1 %5223, %v455_v29   ;;  %v1065_v5 = vld [vmem:[%s8972_s4 + $0xa0] sm:$0xff]  ;;  %v1064_v6 = vld [vmem:[%s8972_s4 + $0x98] sm:$0xff]  ;;  %v1063_v7 = vld [vmem:[%s8972_s4 + $0x90] sm:$0xff] }
  0x40   : > { %5014 = vmatmul.mubr.msk.bf16.vlgmr.msra.gmra.mxu0 %vm666_vm0, %v5248_v27  ;;  %5022 = vmatmul.mubr.msk.bf16.vlgmr.msra.gmra.mxu1 %vm666_vm0, %v5248_v27  ;;  %v1062_v8 = vld [vmem:[%s8972_s4 + $0x88] sm:$0xff]  ;;  %v1061_v9 = vld [vmem:[%s8972_s4 + $0x80] sm:$0xff]  ;;  %v1990_v10 = vld [vmem:[%s8974_s6 + $0x78] sm:$0xff] }
  0x41   : > { %733 = vmatprep.mubr.bf16.mxu0 %v8980_v0  ;;  %846 = vmatprep.mubr.bf16.mxu1 %v8980_v0  ;;  %v1989_v11 = vld [vmem:[%s8974_s6 + $0x70] sm:$0xff]  ;;  %v2022_v13 = vld [vmem:[%s8974_s6 + $0x178] sm:$0xff]  ;;  %v1987_v14 = vld [vmem:[%s8974_s6 + $0x60] sm:$0xff] }
  0x42   : > { %v2021_v12 = vld [vmem:[%s8974_s6 + $0x170] sm:$0xff]  ;;  %v1988_v15 = vld [vmem:[%s8974_s6 + $0x68] sm:$0xff]  ;;  %v2019_v16 = vld [vmem:[%s8974_s6 + $0x160] sm:$0xff] }
  0x43   : > { %478 = vperm.xlu0 %5222, %v452_v31   ;;  %483 = vperm.xlu1 %5223, %v453_v30   ;;  %v2020_v17 = vld [vmem:[%s8974_s6 + $0x168] sm:$0xff]  ;;  %v1985_v18 = vld [vmem:[%s8974_s6 + $0x50] sm:$0xff]  ;;  %v1986_v19 = vld [vmem:[%s8974_s6 + $0x58] sm:$0xff] }
  0x44   : > { %v2017_v20 = vld [vmem:[%s8974_s6 + $0x150] sm:$0xff]  ;;  %v2018_v21 = vld [vmem:[%s8974_s6 + $0x158] sm:$0xff]  ;;  %v1983_v22 = vld [vmem:[%s8974_s6 + $0x40] sm:$0xff] }
  0x45   : > { %v1984_v23 = vld [vmem:[%s8974_s6 + $0x48] sm:$0xff]  ;;  %v2015_v24 = vld [vmem:[%s8974_s6 + $0x140] sm:$0xff]  ;;  %v1981_v26 = vld [vmem:[%s8974_s6 + $0x30] sm:$0xff] }
  0x46   : > { %v2016_v25 = vld [vmem:[%s8974_s6 + $0x148] sm:$0xff]  ;;  %v1982_v27 = vld [vmem:[%s8974_s6 + $0x38] sm:$0xff]  ;;  %v2013_v28 = vld [vmem:[%s8974_s6 + $0x130] sm:$0xff] }
  0x47   : > { %468 = vperm.xlu0 %5222, %v450_v33   ;;  %473 = vperm.xlu1 %5223, %v451_v34   ;;  %v2014_v29 = vld [vmem:[%s8974_s6 + $0x138] sm:$0xff]  ;;  %v1979_v30 = vld [vmem:[%s8974_s6 + $0x20] sm:$0xff]  ;;  %v1980_v31 = vld [vmem:[%s8974_s6 + $0x28] sm:$0xff] }
  0x48   : > { %5015 = vmatmul.mubr.msk.bf16.gmra.mxu0 %vm666_vm0, %v5249_v32  ;;  %5023 = vmatmul.mubr.msk.bf16.gmra.mxu1 %vm666_vm0, %v5249_v32  ;;  %v2011_v32 = vld [vmem:[%s8974_s6 + $0x120] sm:$0xff]  ;;  %v2012_v33 = vld [vmem:[%s8974_s6 + $0x128] sm:$0xff]  ;;  %v1977_v34 = vld [vmem:[%s8974_s6 + $0x10] sm:$0xff] }
  0x49   : > { %743 = vmatprep.mubr.bf16.mxu0 %v8980_v0  ;;  %856 = vmatprep.mubr.bf16.mxu1 %v8980_v0 }
  0x4b   : > { %1149 = vperm.xlu0 %5222, %v1059_v35   ;;  %1154 = vperm.xlu1 %5223, %v1060_v36   ;;  %v1978_v35 = vld [vmem:[%s8974_s6 + $0x18] sm:$0xff]  ;;  %v2009_v36 = vld [vmem:[%s8974_s6 + $0x110] sm:$0xff] }
  0x4f   : > { %1139 = vperm.xlu0 %5222, %v1057_v38   ;;  %1144 = vperm.xlu1 %5223, %v1058_v39   ;;  %v1975_v38 = vld [vmem:[%s8974_s6] sm:$0xff]  ;;  %v1976_v39 = vld [vmem:[%s8974_s6 + $0x8] sm:$0xff] }
  0x50   : > { %5016 = vmatmul.mubr.msk.bf16.gmra.mxu0 %vm666_vm0, %v5250_v37  ;;  %5024 = vmatmul.mubr.msk.bf16.gmra.mxu1 %vm666_vm0, %v5250_v37  ;;  %v2010_v37 = vld [vmem:[%s8974_s6 + $0x118] sm:$0xff] }
  0x51   : > { %753 = vmatprep.mubr.bf16.mxu0 %v8980_v0  ;;  %866 = vmatprep.mubr.bf16.mxu1 %v8980_v0 }
  0x53   : > { %1129 = vperm.xlu0 %5222, %v1055_v40   ;;  %1134 = vperm.xlu1 %5223, %v1056_v41   ;;  %v2007_v40 = vld [vmem:[%s8974_s6 + $0x100] sm:$0xff]  ;;  %v2008_v41 = vld [vmem:[%s8974_s6 + $0x108] sm:$0xff] }
  0x57   : > { %1119 = vperm.xlu0 %5222, %v1053_v43   ;;  %1124 = vperm.xlu1 %5223, %v1054_v44   ;;  %v2006_v43 = vld [vmem:[%s8974_s6 + $0xf8] sm:$0xff]  ;;  %v2037_v44 = vld [vmem:[%s8974_s6 + $0x1f0] sm:$0xff] }
  0x58   : > { %5017 = vmatmul.mubr.msk.bf16.gmra.mxu0 %vm666_vm0, %v5251_v42  ;;  %5025 = vmatmul.mubr.msk.bf16.gmra.mxu1 %vm666_vm0, %v5251_v42  ;;  %v2005_v42 = vld [vmem:[%s8974_s6 + $0xf0] sm:$0xff] }
  0x59   : > { %763 = vmatprep.mubr.bf16.mxu0 %v8980_v0  ;;  %876 = vmatprep.mubr.bf16.mxu1 %v8980_v0 }
  0x5b   : > { %1109 = vperm.xlu0 %5222, %v1051_v45   ;;  %1114 = vperm.xlu1 %5223, %v1052_v46   ;;  %v2038_v45 = vld [vmem:[%s8974_s6 + $0x1f8] sm:$0xff]  ;;  %v2003_v46 = vld [vmem:[%s8974_s6 + $0xe0] sm:$0xff] }
  0x5f   : > { %1099 = vperm.xlu0 %5222, %v1049_v49   ;;  %1104 = vperm.xlu1 %5223, %v1050_v48  }
  0x60   : > { %5018 = vmatmul.mubr.msk.bf16.gmra.mxu0 %vm666_vm0, %v5252_v47  ;;  %5026 = vmatmul.mubr.msk.bf16.gmra.mxu1 %vm666_vm0, %v5252_v47  ;;  %v2004_v47 = vld [vmem:[%s8974_s6 + $0xe8] sm:$0xff] }
  0x61   : > { %773 = vmatprep.mubr.bf16.mxu0 %v8980_v0  ;;  %886 = vmatprep.mubr.bf16.mxu1 %v8980_v0 }
  0x63   : > { %1089 = vperm.xlu0 %5222, %v1047_v51   ;;  %1094 = vperm.xlu1 %5223, %v1048_v50   ;;  %v2035_v50 = vld [vmem:[%s8974_s6 + $0x1e0] sm:$0xff]  ;;  %v2036_v51 = vld [vmem:[%s8974_s6 + $0x1e8] sm:$0xff] }
  0x67   : > { %1079 = vperm.xlu0 %5222, %v1045_v54   ;;  %1084 = vperm.xlu1 %5223, %v1046_v53   ;;  %v2002_v54 = vld [vmem:[%s8974_s6 + $0xd8] sm:$0xff] }
  0x68   : > { %5019 = vmatmul.mubr.msk.bf16.gmra.mxu0 %vm666_vm0, %v5253_v52  ;;  %5027 = vmatmul.mubr.msk.bf16.gmra.mxu1 %vm666_vm0, %v5253_v52  ;;  %v2001_v52 = vld [vmem:[%s8974_s6 + $0xd0] sm:$0xff] }
  0x69   : > { %783 = vmatprep.mubr.bf16.mxu0 %v8980_v0  ;;  %896 = vmatprep.mubr.bf16.mxu1 %v8980_v0 }
  0x6b   : > { %1229 = vperm.xlu0 %5222, %v1075_v56   ;;  %1234 = vperm.xlu1 %5223, %v1076_v55   ;;  %v2033_v56 = vld [vmem:[%s8974_s6 + $0x1d0] sm:$0xff] }
  0x6f   : > { %1219 = vperm.xlu0 %5222, %v1073_v59   ;;  %1224 = vperm.xlu1 %5223, %v1074_v58  }
  0x70   : > { %5020 = vmatmul.mubr.msk.bf16.gmra.mxu0 %vm666_vm0, %v5254_v57  ;;  %5028 = vmatmul.mubr.msk.bf16.gmra.mxu1 %vm666_vm0, %v5254_v57  ;;  %v2034_v57 = vld [vmem:[%s8974_s6 + $0x1d8] sm:$0xff] }
  0x71   : > { %793 = vmatprep.mubr.bf16.mxu0 %v8980_v0  ;;  %906 = vmatprep.mubr.bf16.mxu1 %v8980_v0 }
  0x73   : > { %1209 = vperm.xlu0 %5222, %v1071_v61   ;;  %1214 = vperm.xlu1 %5223, %v1072_v60   ;;  %v1999_v60 = vld [vmem:[%s8974_s6 + $0xc0] sm:$0xff]  ;;  %v2000_v61 = vld [vmem:[%s8974_s6 + $0xc8] sm:$0xff] }
  0x77   : > { %1199 = vperm.xlu0 %5222, %v1069_v1   ;;  %1204 = vperm.xlu1 %5223, %v1070_v63   ;;  %v2032_v1 = vld [vmem:[%s8974_s6 + $0x1c8] sm:$0xff] }
  0x78   : > { %5021 = vmatmul.mubr.msk.bf16.gmra.mxu0 %vm666_vm0, %v5255_v62  ;;  %5029 = vmatmul.mubr.msk.bf16.gmra.mxu1 %vm666_vm0, %v5255_v62  ;;  %v2031_v62 = vld [vmem:[%s8974_s6 + $0x1c0] sm:$0xff] }
  0x79   : > { %1365 = vmatprep.mubr.bf16.mxu0 %v8980_v0  ;;  %1558 = vmatprep.mubr.bf16.mxu1 %v8980_v0  ;;  %v3814_v0 = vld [vmem:[%s8976_s8 + $0x68] sm:$0xff] }
  0x7b   : > { %1189 = vperm.xlu0 %5222, %v1067_v3   ;;  %1194 = vperm.xlu1 %5223, %v1068_v2   ;;  %v1997_v3 = vld [vmem:[%s8974_s6 + $0xb0] sm:$0xff] }
  0x7f   : > { %1179 = vperm.xlu0 %5222, %v1065_v5   ;;  %1184 = vperm.xlu1 %5223, %v1066_v4   ;;  %v1998_v4 = vld [vmem:[%s8974_s6 + $0xb8] sm:$0xff] }
  0x83   : > { %1169 = vperm.xlu0 %5222, %v1063_v7   ;;  %1174 = vperm.xlu1 %5223, %v1064_v6   ;;  %v2029_v7 = vld [vmem:[%s8974_s6 + $0x1b0] sm:$0xff] }
  0x87   : > { %1159 = vperm.xlu0 %5222, %v1061_v9   ;;  %1164 = vperm.xlu1 %5223, %v1062_v8   ;;  %v2030_v8 = vld [vmem:[%s8974_s6 + $0x1b8] sm:$0xff]  ;;  %v1995_v9 = vld [vmem:[%s8974_s6 + $0xa0] sm:$0xff] }
  0x8b   : > { %2111 = vperm.xlu0 %5222, %v1989_v11   ;;  %2116 = vperm.xlu1 %5223, %v1990_v10   ;;  %v1996_v11 = vld [vmem:[%s8974_s6 + $0xa8] sm:$0xff] }
  0x8f   : > { %2271 = vperm.xlu0 %5222, %v2021_v12   ;;  %2276 = vperm.xlu1 %5223, %v2022_v13   ;;  %v2027_v13 = vld [vmem:[%s8974_s6 + $0x1a0] sm:$0xff] }
  0x93   : > { %2101 = vperm.xlu0 %5222, %v1987_v14   ;;  %2106 = vperm.xlu1 %5223, %v1988_v15   ;;  %v2028_v14 = vld [vmem:[%s8974_s6 + $0x1a8] sm:$0xff] }
  0x97   : > { %2261 = vperm.xlu0 %5222, %v2019_v16   ;;  %2266 = vperm.xlu1 %5223, %v2020_v17   ;;  %v1993_v17 = vld [vmem:[%s8974_s6 + $0x90] sm:$0xff] }
  0x9b   : > { %2091 = vperm.xlu0 %5222, %v1985_v18   ;;  %2096 = vperm.xlu1 %5223, %v1986_v19   ;;  %v1994_v18 = vld [vmem:[%s8974_s6 + $0x98] sm:$0xff]  ;;  %v2025_v19 = vld [vmem:[%s8974_s6 + $0x190] sm:$0xff] }
  0x9f   : > { %2251 = vperm.xlu0 %5222, %v2017_v20   ;;  %2256 = vperm.xlu1 %5223, %v2018_v21  }
  0xa3   : > { %2081 = vperm.xlu0 %5222, %v1983_v22   ;;  %2086 = vperm.xlu1 %5223, %v1984_v23   ;;  %v2026_v22 = vld [vmem:[%s8974_s6 + $0x198] sm:$0xff] }
  0xa6   : > { %v6011_v48 = vpop.permute.xlu0 %538  ;;  %v6013_v49 = vpop.permute.xlu1 %528 }
  0xa7   : > { %2241 = vperm.xlu0 %5222, %v2015_v24   ;;  %2246 = vperm.xlu1 %5223, %v2016_v25  }
  0xaa   : > { %v6024_v53 = vpop.permute.xlu0 %543  ;;  %v6029_v55 = vpop.permute.xlu1 %533 }
  0xab   : > { %2071 = vperm.xlu0 %5222, %v1981_v26   ;;  %2076 = vperm.xlu1 %5223, %v1982_v27  }
  0xae   : > { %v6037_v58 = vpop.permute.xlu0 %518  ;;  %v6039_v59 = vpop.permute.xlu1 %523 }
  0xaf   : > { %2231 = vperm.xlu0 %5222, %v2013_v28   ;;  %2236 = vperm.xlu1 %5223, %v2014_v29   ;;  %v1991_v29 = vld [vmem:[%s8974_s6 + $0x80] sm:$0xff] }
  0xb2   : > { %v6050_v63 = vpop.permute.xlu0 %508  ;;  %v6055_v2 = vpop.permute.xlu1 %513 }
  0xb3   : > { %2061 = vperm.xlu0 %5222, %v1979_v30   ;;  %2066 = vperm.xlu1 %5223, %v1980_v31   ;;  %v1992_v31 = vld [vmem:[%s8974_s6 + $0x88] sm:$0xff] }
  0xb6   : > { %v6063_v5 = vpop.permute.xlu0 %498  ;;  %v6065_v6 = vpop.permute.xlu1 %503 }
  0xb7   : > { %2221 = vperm.xlu0 %5222, %v2011_v32   ;;  %2226 = vperm.xlu1 %5223, %v2012_v33  }
  0xba   : > { %v6076_v10 = vpop.permute.xlu0 %488  ;;  %v6081_v12 = vpop.permute.xlu1 %493 }
  0xbb   : > { %2051 = vperm.xlu0 %5222, %v1977_v34   ;;  %2056 = vperm.xlu1 %5223, %v1978_v35   ;;  %9155 = vst [vmem:[#allocation9_spill] sm:$0xff] %v6081_v12 }
  0xbe   : > { %v6089_v15 = vpop.permute.xlu0 %478  ;;  %v6091_v16 = vpop.permute.xlu1 %483 }
  0xbf   : > { %2211 = vperm.xlu0 %5222, %v2009_v36   ;;  %2216 = vperm.xlu1 %5223, %v2010_v37   ;;  %9156 = vst [vmem:[#allocation10_spill] sm:$0xff] %v6089_v15 }
  0xc2   : > { %v6102_v20 = vpop.permute.xlu0 %468  ;;  %v6107_v23 = vpop.permute.xlu1 %473 }
  0xc3   : > { %2041 = vperm.xlu0 %5222, %v1975_v38   ;;  %2046 = vperm.xlu1 %5223, %v1976_v39   ;;  %9157 = vst [vmem:[#allocation11_spill] sm:$0xff] %v6102_v20  ;;  %9158 = vst [vmem:[#allocation12_spill] sm:$0xff] %v6107_v23 }
  0xc6   : > { %v6122_v34 = vpop.permute.xlu0 %1149  ;;  %v6127_v38 = vpop.permute.xlu1 %1154 }
  0xc7   : > { %2201 = vperm.xlu0 %5222, %v2007_v40   ;;  %2206 = vperm.xlu1 %5223, %v2008_v41   ;;  %9161 = vst [vmem:[#allocation15_spill] sm:$0xff] %v6122_v34  ;;  %9163 = vst [vmem:[#allocation17_spill] sm:$0xff] %v6127_v38 }
  0xcb   : > { %2191 = vperm.xlu0 %5222, %v2005_v42   ;;  %2196 = vperm.xlu1 %5223, %v2006_v43   ;;  %v2023_v42 = vld [vmem:[%s8974_s6 + $0x180] sm:$0xff] }
  0xcf   : > { %2351 = vperm.xlu0 %5222, %v2037_v44   ;;  %2356 = vperm.xlu1 %5223, %v2038_v45   ;;  %v2024_v45 = vld [vmem:[%s8974_s6 + $0x188] sm:$0xff] }
  0xd3   : > { %2181 = vperm.xlu0 %5222, %v2003_v46   ;;  %2186 = vperm.xlu1 %5223, %v2004_v47  }
  0xd7   : > { %2341 = vperm.xlu0 %5222, %v2035_v50   ;;  %2346 = vperm.xlu1 %5223, %v2036_v51  }
  0xdb   : > { %2171 = vperm.xlu0 %5222, %v2001_v52   ;;  %2176 = vperm.xlu1 %5223, %v2002_v54  }
  0xdf   : > { %2331 = vperm.xlu0 %5222, %v2033_v56   ;;  %2336 = vperm.xlu1 %5223, %v2034_v57   ;;  %v3801_v57 = vld [vmem:[%s8976_s8] sm:$0xff] }
  0xe3   : > { %2161 = vperm.xlu0 %5222, %v1999_v60   ;;  %2166 = vperm.xlu1 %5223, %v2000_v61   ;;  %v6150_v60 = vpop.permute.xlu0 %1139 }
  0xe4   : > { %9168 = vst [vmem:[#allocation22_spill] sm:$0xff] %v6150_v60 }
  0xe7   : > { %2321 = vperm.xlu0 %5222, %v2031_v62   ;;  %2326 = vperm.xlu1 %5223, %v2032_v1   ;;  %v3802_v62 = vld [vmem:[%s8976_s8 + $0x8] sm:$0xff]  ;;  %v6155_v1 = vpop.permute.xlu1 %1144 }
  0xe8   : > { %9169 = vst [vmem:[#allocation23_spill] sm:$0xff] %v6155_v1  ;;  %v3815_v1 = vld [vmem:[%s8976_s8 + $0x70] sm:$0xff] }
  0xeb   : > { %2151 = vperm.xlu0 %5222, %v1997_v3   ;;  %2156 = vperm.xlu1 %5223, %v1998_v4  }
  0xef   : > { %2311 = vperm.xlu0 %5222, %v2029_v7   ;;  %2316 = vperm.xlu1 %5223, %v2030_v8  }
  0xf3   : > { %2141 = vperm.xlu0 %5222, %v1995_v9   ;;  %2146 = vperm.xlu1 %5223, %v1996_v11  }
  0xf7   : > { %2301 = vperm.xlu0 %5222, %v2027_v13   ;;  %2306 = vperm.xlu1 %5223, %v2028_v14  }
  0xfb   : > { %2131 = vperm.xlu0 %5222, %v1993_v17   ;;  %2136 = vperm.xlu1 %5223, %v1994_v18   ;;  %v3803_v17 = vld [vmem:[%s8976_s8 + $0x10] sm:$0xff] }
  0xff   : > { %2291 = vperm.xlu0 %5222, %v2025_v19   ;;  %2296 = vperm.xlu1 %5223, %v2026_v22  }
 0x100   : > { %v725_v21 = vpop.f32.mrf.mxu0  ;;  %v838_v24 = vpop.f32.mrf.mxu1 }
 0x101   : > { %v839_v25 = vadd.f32 %v838_v24, %v6102_v20  ;;  %v726_v27 = vadd.f32 %v725_v21, %v6102_v20  ;;  %v3804_v21 = vld [vmem:[%s8976_s8 + $0x18] sm:$0xff] }
 0x102   : > { %v6110_v26 = vpop.f32.mrf.mxu0  ;;  %v6113_v28 = vpop.f32.mrf.mxu1 }
 0x103   : > { %9159 = vst [vmem:[#allocation13_spill] sm:$0xff] %v6110_v26  ;;  %9160 = vst [vmem:[#allocation14_spill] sm:$0xff] %v6113_v28  ;;  %v919_v35 = vmax.f32 %v839_v25, 0.0  ;;  %2121 = vperm.xlu0 %5222, %v1991_v29   ;;  %v917_v39 = vmax.f32 %v726_v27, 0.0  ;;  %2126 = vperm.xlu1 %5223, %v1992_v31   ;;  %v6175_v25 = vpop.permute.xlu0 %1129 }
 0x104   : > { %v729_v30 = vpop.f32.mrf.mxu0  ;;  %v842_v33 = vpop.f32.mrf.mxu1  ;;  %9171 = vst [vmem:[#allocation25_spill] sm:$0xff] %v6175_v25 }
 0x105   : > { %v730_v32 = vadd.f32 %v729_v30, %v6107_v23  ;;  %v843_v36 = vadd.f32 %v842_v33, %v6107_v23  ;;  %v6181_v30 = vpop.permute.xlu1 %1134 }
 0x106   : > { %v6125_v37 = vpop.f32.mrf.mxu0  ;;  %v6129_v41 = vpop.f32.mrf.mxu1  ;;  %9174 = vst [vmem:[#allocation28_spill] sm:$0xff] %v6181_v30  ;;  %v3816_v30 = vld [vmem:[%s8976_s8 + $0x78] sm:$0xff] }
 0x107   : > { %9162 = vst [vmem:[#allocation16_spill] sm:$0xff] %v6125_v37  ;;  %v921_v40 = vmax.f32 %v730_v32, 0.0  ;;  %9164 = vst [vmem:[#allocation18_spill] sm:$0xff] %v6129_v41  ;;  %v923_v43 = vmax.f32 %v843_v36, 0.0  ;;  %2281 = vperm.xlu0 %5222, %v2023_v42   ;;  %2286 = vperm.xlu1 %5223, %v2024_v45   ;;  %v3805_v32 = vld [vmem:[%s8976_s8 + $0x20] sm:$0xff]  ;;  %v3807_v42 = vld [vmem:[%s8976_s8 + $0x30] sm:$0xff] }
 0x108   : > { %v735_v44 = vpop.f32.mrf.mxu0  ;;  %v848_v47 = vpop.f32.mrf.mxu1  ;;  %v3808_v45 = vld [vmem:[%s8976_s8 + $0x38] sm:$0xff] }
 0x109   : > { %v6137_v46 = vpack.c.bf16 %v921_v40, %v917_v39  ;;  %v6139_v50 = vpack.c.bf16 %v923_v43, %v919_v35  ;;  %v849_v51 = vadd.f32 %v848_v47, %v6089_v15  ;;  %v736_v54 = vadd.f32 %v735_v44, %v6089_v15  ;;  %v3806_v35 = vld [vmem:[%s8976_s8 + $0x28] sm:$0xff]  ;;  %v6202_v43 = vpop.permute.xlu0 %1119  ;;  %v6209_v47 = vpop.permute.xlu1 %1124 }
 0x10a   : > { %v6142_v52 = vpop.f32.mrf.mxu0  ;;  %v6145_v56 = vpop.f32.mrf.mxu1  ;;  %9177 = vst [vmem:[#allocation31_spill] sm:$0xff] %v6202_v43  ;;  %9178 = vst [vmem:[#allocation32_spill] sm:$0xff] %v6209_v47 }
 0x10b   : > { %9165 = vst [vmem:[#allocation19_spill] sm:$0xff] %v6137_v46  ;;  %9166 = vst [vmem:[#allocation20_spill] sm:$0xff] %v6139_v50  ;;  %v927_v7 = vmax.f32 %v849_v51, 0.0  ;;  %3819 = vperm.xlu0 %5222, %v3801_v57   ;;  %v925_v11 = vmax.f32 %v736_v54, 0.0  ;;  %3824 = vperm.xlu1 %5223, %v3802_v62  }
 0x10c   : > { %9167 = vst [vmem:[#allocation21_spill] sm:$0xff] %v6142_v52  ;;  %v739_v61 = vpop.f32.mrf.mxu0  ;;  %v852_v4 = vpop.f32.mrf.mxu1 }
 0x10d   : > { %v740_v3 = vadd.f32 %v739_v61, %v6091_v16  ;;  %v853_v8 = vadd.f32 %v852_v4, %v6091_v16  ;;  %v3809_v61 = vld [vmem:[%s8976_s8 + $0x40] sm:$0xff] }
 0x10e   : > { %v6159_v9 = vpop.f32.mrf.mxu0  ;;  %v6161_v14 = vpop.f32.mrf.mxu1 }
 0x10f   : > { %v929_v13 = vmax.f32 %v740_v3, 0.0  ;;  %v931_v18 = vmax.f32 %v853_v8, 0.0  ;;  %3829 = vperm.xlu0 %5222, %v3803_v17   ;;  %3834 = vperm.xlu1 %5223, %v3804_v21   ;;  %v3810_v3 = vld [vmem:[%s8976_s8 + $0x48] sm:$0xff]  ;;  %v3811_v17 = vld [vmem:[%s8976_s8 + $0x50] sm:$0xff]  ;;  %v3812_v21 = vld [vmem:[%s8976_s8 + $0x58] sm:$0xff] }
 0x110   : > { %v6166_v19 = vpop.f32.mrf.mxu0  ;;  %v6173_v24 = vpop.f32.mrf.mxu1 }
 0x111   : > { %v6171_v22 = vpack.c.bf16 %v929_v13, %v925_v11  ;;  %v6177_v27 = vpack.c.bf16 %v931_v18, %v927_v7  ;;  %v6225_v7 = vpop.permute.xlu0 %1109  ;;  %v6227_v11 = vpop.permute.xlu1 %1114 }
 0x112   : > { %v6179_v29 = vpop.f32.mrf.mxu0  ;;  %v6183_v31 = vpop.f32.mrf.mxu1  ;;  %9179 = vst [vmem:[#allocation33_spill] sm:$0xff] %v6225_v7  ;;  %9180 = vst [vmem:[#allocation34_spill] sm:$0xff] %v6227_v11 }
 0x113   : > { %9170 = vst [vmem:[#allocation24_spill] sm:$0xff] %v6171_v22  ;;  %9172 = vst [vmem:[#allocation26_spill] sm:$0xff] %v6177_v27  ;;  %3839 = vperm.xlu0 %5222, %v3805_v32   ;;  %3844 = vperm.xlu1 %5223, %v3806_v35   ;;  %v6283_v23 = vadd.f32 %v6183_v31, %v6076_v10 }
 0x114   : > { %9173 = vst [vmem:[#allocation27_spill] sm:$0xff] %v6179_v29  ;;  %v6188_v33 = vpop.f32.mrf.mxu0  ;;  %v6193_v36 = vpop.f32.mrf.mxu1 }
 0x115   : > { %9175 = vst [vmem:[#allocation29_spill] sm:$0xff] %v6188_v33  ;;  %9176 = vst [vmem:[#allocation30_spill] sm:$0xff] %v6193_v36  ;;  %v6249_v38 = vpop.permute.xlu1 %1104 }
 0x116   : > { %v6195_v39 = vpop.f32.mrf.mxu0  ;;  %v6197_v40 = vpop.f32.mrf.mxu1  ;;  %9182 = vst [vmem:[#allocation36_spill] sm:$0xff] %v6249_v38  ;;  %9189 = vst [vmem:[#allocation43_spill] sm:$0xff] %v6283_v23 }
 0x117   : > { %3849 = vperm.xlu0 %5222, %v3807_v42   ;;  %3854 = vperm.xlu1 %5223, %v3808_v45   ;;  %v3813_v45 = vld [vmem:[%s8976_s8 + $0x60] sm:$0xff] }
 0x118   : > { %v6204_v44 = vpop.f32.mrf.mxu0  ;;  %v6211_v51 = vpop.f32.mrf.mxu1 }
 0x119   : > { %v6261_v11 = vpop.permute.xlu1 %1094 }
 0x11a   : > { %v6213_v54 = vpop.f32.mrf.mxu0  ;;  %v870_v57 = vpop.f32.mrf.mxu1  ;;  %9184 = vst [vmem:[#allocation38_spill] sm:$0xff] %v6261_v11  ;;  %v6275_v11 = vadd.f32 %v6161_v14, %v6091_v16 }
 0x11b   : > { %3859 = vperm.xlu0 %5222, %v3809_v61   ;;  %3864 = vperm.xlu1 %5223, %v3810_v3   ;;  %v6242_v61 = vpop.permute.xlu0 %1099 }
 0x11c   : > { %v6218_v62 = vpop.f32.mrf.mxu0  ;;  %v6223_v4 = vpop.f32.mrf.mxu1  ;;  %9181 = vst [vmem:[#allocation35_spill] sm:$0xff] %v6242_v61  ;;  %9187 = vst [vmem:[#allocation41_spill] sm:$0xff] %v6275_v11 }
 0x11e   : > { %v761_v8 = vpop.f32.mrf.mxu0  ;;  %v874_v13 = vpop.f32.mrf.mxu1 }
 0x11f   : > { %3869 = vperm.xlu0 %5222, %v3811_v17   ;;  %3874 = vperm.xlu1 %5223, %v3812_v21   ;;  %v6259_v25 = vpop.permute.xlu0 %1089  ;;  %v6304_v31 = vadd.f32 %v874_v13, %v6065_v6 }
 0x120   : > { %v765_v18 = vpop.f32.mrf.mxu0  ;;  %v6235_v32 = vpop.f32.mrf.mxu1  ;;  %9183 = vst [vmem:[#allocation37_spill] sm:$0xff] %v6259_v25  ;;  %v6279_v25 = vadd.f32 %v6166_v19, %v6076_v10  ;;  %v6298_v19 = vadd.f32 %v870_v57, %v6063_v5 }
 0x122   : > { %v6237_v35 = vpop.f32.mrf.mxu0  ;;  %v880_v42 = vpop.f32.mrf.mxu1  ;;  %9188 = vst [vmem:[#allocation42_spill] sm:$0xff] %v6279_v25  ;;  %v6301_v25 = vadd.f32 %v761_v8, %v6065_v6 }
 0x123   : > { %3879 = vperm.xlu0 %5222, %v3813_v45   ;;  %3884 = vperm.xlu1 %5223, %v3814_v0  }
 0x124   : > { %v6244_v3 = vpop.f32.mrf.mxu0  ;;  %v6251_v34 = vpop.f32.mrf.mxu1 }
 0x126   : > { %v771_v17 = vpop.f32.mrf.mxu0  ;;  %v884_v21 = vpop.f32.mrf.mxu1 }
 0x127   : > { %3889 = vperm.xlu0 %5222, %v3815_v1   ;;  %3894 = vperm.xlu1 %5223, %v3816_v30   ;;  %v6267_v1 = vadd.f32 %v6145_v56, %v6089_v15  ;;  %v6271_v30 = vadd.f32 %v6159_v9, %v6091_v16  ;;  %v6287_v56 = vadd.f32 %v6195_v39, %v6081_v12 }
 0x128   : > { %v775_v60 = vpop.f32.mrf.mxu0  ;;  %v888_v43 = vpop.f32.mrf.mxu1  ;;  %v6291_v9 = vadd.f32 %v6197_v40, %v6081_v12  ;;  %v6295_v16 = vadd.f32 %v6204_v44, %v6063_v5  ;;  %v6307_v39 = vadd.f32 %v765_v18, %v6050_v63  ;;  %v6310_v40 = vadd.f32 %v880_v42, %v6050_v63 }
 0x129   : > { %9185 = vst [vmem:[#allocation39_spill] sm:$0xff] %v6267_v1  ;;  %9186 = vst [vmem:[#allocation40_spill] sm:$0xff] %v6271_v30  ;;  %v6313_v44 = vadd.f32 %v771_v17, %v6055_v2  ;;  %v6316_v1 = vadd.f32 %v884_v21, %v6055_v2  ;;  %v6319_v57 = vadd.f32 %v775_v60, %v6037_v58 }
 0x12a   : > { %v777_v47 = vpop.f32.mrf.mxu0  ;;  %v890_v45 = vpop.f32.mrf.mxu1  ;;  %9190 = vst [vmem:[#allocation44_spill] sm:$0xff] %v6287_v56  ;;  %9191 = vst [vmem:[#allocation45_spill] sm:$0xff] %v6291_v9  ;;  %v6322_v13 = vadd.f32 %v888_v43, %v6037_v58 }
 0x12b   : > { %9192 = vst [vmem:[#allocation46_spill] sm:$0xff] %v6295_v16  ;;  %v6325_v18 = vadd.f32 %v777_v47, %v6037_v58  ;;  %v6328_v30 = vadd.f32 %v890_v45, %v6037_v58 }
 0x12c   : > { %v779_v0 = vpop.f32.mrf.mxu0  ;;  %v6263_v61 = vpop.f32.mrf.mxu1 }
 0x12d   : > { %v6331_v42 = vadd.f32 %v779_v0, %v6039_v59 }
 0x12e   : > { %v781_v7 = vpop.f32.mrf.mxu0  ;;  %v894_v38 = vpop.f32.mrf.mxu1 }
 0x12f   : > { %v6334_v21 = vadd.f32 %v781_v7, %v6039_v59  ;;  %v6337_v60 = vadd.f32 %v894_v38, %v6039_v59 }
 0x130   : > { %v785_v50 = vpop.f32.mrf.mxu0  ;;  %v898_v46 = vpop.f32.mrf.mxu1 }
 0x131   : > { %v786_v15 = vadd.f32 %v785_v50, %v6013_v49  ;;  %v899_v47 = vadd.f32 %v898_v46, %v6013_v49 }
 0x132   : > { %v787_v27 = vpop.f32.mrf.mxu0  ;;  %v900_v22 = vpop.f32.mrf.mxu1 }
 0x133   : > { %v901_v43 = vadd.f32 %v900_v22, %v6013_v49  ;;  %v788_v22 = vadd.f32 %v787_v27, %v6013_v49 }
 0x134   : > { %v789_v26 = vpop.f32.mrf.mxu0  ;;  %v902_v41 = vpop.f32.mrf.mxu1 }
 0x135   : > { %v790_v46 = vadd.f32 %v789_v26, %v6029_v55  ;;  %v903_v56 = vadd.f32 %v902_v41, %v6029_v55  ;;  %v966_v26 = vmax.f32 %v788_v22, 0.0 }
 0x136   : > { %v791_v52 = vpop.f32.mrf.mxu0  ;;  %v904_v37 = vpop.f32.mrf.mxu1 }
 0x137   : > { %v792_v58 = vadd.f32 %v791_v52, %v6029_v55  ;;  %v905_v7 = vadd.f32 %v904_v37, %v6029_v55  ;;  %v969_v55 = vmax.f32 %v790_v46, 0.0 }
 0x138   : > { %v795_v14 = vpop.f32.mrf.mxu0  ;;  %v908_v11 = vpop.f32.mrf.mxu1 }
 0x139   : > { %v796_v16 = vadd.f32 %v795_v14, %v6011_v48  ;;  %v909_v52 = vadd.f32 %v908_v11, %v6011_v48  ;;  %v970_v36 = vmax.f32 %v792_v58, 0.0  ;;  %v972_v12 = vmax.f32 %v905_v7, 0.0 }
 0x13a   : > { %v797_v8 = vpop.f32.mrf.mxu0  ;;  %v910_v17 = vpop.f32.mrf.mxu1  ;;  %v964_v7 = vmax.f32 %v6337_v60, 0.0  ;;  %v957_v60 = vmax.f32 %v6319_v57, 0.0 }
 0x13b   : > { %v798_v45 = vadd.f32 %v797_v8, %v6011_v48  ;;  %v911_v38 = vadd.f32 %v910_v17, %v6011_v48  ;;  %v973_v29 = vmax.f32 %v796_v16, 0.0  ;;  %v893_v48 = vadd.f32 %v6263_v61, %v6039_v59 }
 0x13c   : > { %v799_v28 = vpop.f32.mrf.mxu0  ;;  %v912_v20 = vpop.f32.mrf.mxu1  ;;  %v975_v11 = vmax.f32 %v909_v52, 0.0  ;;  %v960_v16 = vmax.f32 %v6328_v30, 0.0  ;;  %v879_v61 = vadd.f32 %v6235_v32, %v6050_v63  ;;  %v959_v32 = vmax.f32 %v6322_v13, 0.0 }
 0x13d   : > { %v800_v0 = vadd.f32 %v799_v28, %v6024_v53  ;;  %v913_v50 = vadd.f32 %v912_v20, %v6024_v53  ;;  %v968_v28 = vmax.f32 %v901_v43, 0.0  ;;  %v974_v17 = vmax.f32 %v798_v45, 0.0 }
 0x13e   : > { %v801_v9 = vpop.f32.mrf.mxu0  ;;  %v914_v23 = vpop.f32.mrf.mxu1  ;;  %v976_v49 = vmax.f32 %v911_v38, 0.0  ;;  %v962_v43 = vmax.f32 %v6334_v21, 0.0  ;;  %v1006_v45 = vpack.c.bf16 %v970_v36, %v966_v26  ;;  %v965_v38 = vmax.f32 %v786_v15, 0.0 }
 0x13f   : > { %v802_v8 = vadd.f32 %v801_v9, %v6024_v53  ;;  %v977_v37 = vmax.f32 %v800_v0, 0.0  ;;  %v915_v14 = vadd.f32 %v914_v23, %v6024_v53  ;;  %v979_v33 = vmax.f32 %v913_v50, 0.0 }
 0x140   : > { %v967_v53 = vmax.f32 %v899_v47, 0.0  ;;  %v971_v23 = vmax.f32 %v903_v56, 0.0  ;;  %v1008_v59 = vpack.c.bf16 %v972_v12, %v968_v28  ;;  %v770_v56 = vadd.f32 %v6244_v3, %v6055_v2  ;;  %v9195_v28 = vld [vmem:[#allocation29_spill] sm:$0xff] }
 0x141   : > { %v978_v20 = vmax.f32 %v802_v8, 0.0  ;;  %v980_v27 = vmax.f32 %v915_v14, 0.0  ;;  %v1009_v41 = vpack.c.bf16 %v977_v37, %v973_v29  ;;  %v1011_v58 = vpack.c.bf16 %v979_v33, %v975_v11  ;;  %v9194_v8 = vld [vmem:[#allocation9_spill] sm:$0xff]  ;;  %v9198_v11 = vld [vmem:[#allocation43_spill] sm:$0xff] }
 0x142   : > { %v768_v29 = vadd.f32 %v6237_v35, %v6050_v63  ;;  %v958_v33 = vmax.f32 %v6325_v18, 0.0  ;;  %v883_v36 = vadd.f32 %v6251_v34, %v6055_v2  ;;  %v954_v15 = vmax.f32 %v6313_v44, 0.0 }
 0x143   : > { %v1010_v9 = vpack.c.bf16 %v978_v20, %v974_v17  ;;  %v1012_v0 = vpack.c.bf16 %v980_v27, %v976_v49  ;;  %v961_v12 = vmax.f32 %v6331_v42, 0.0  ;;  %v1005_v30 = vpack.c.bf16 %v969_v55, %v965_v38  ;;  %v9200_v55 = vld [vmem:[#allocation46_spill] sm:$0xff] }
 0x144   : > { %v963_v21 = vmax.f32 %v893_v48, 0.0  ;;  %v1007_v63 = vpack.c.bf16 %v971_v23, %v967_v53  ;;  %v1002_v35 = vpack.c.bf16 %v962_v43, %v958_v33  ;;  %v952_v3 = vmax.f32 %v6310_v40, 0.0  ;;  %v9201_v53 = vld [vmem:[#allocation11_spill] sm:$0xff]  ;;  %v9202_v23 = vld [vmem:[#allocation14_spill] sm:$0xff] }
 0x145   : > { %1333 = vmatprep.subr.bf16.mxu0 %v1010_v9  ;;  %1526 = vmatprep.subr.bf16.mxu1 %v1012_v0  ;;  %v956_v18 = vmax.f32 %v6316_v1, 0.0  ;;  %v1004_v47 = vpack.c.bf16 %v964_v7, %v960_v16  ;;  %v869_v2 = vadd.f32 %v6211_v51, %v6063_v5  ;;  %v758_v34 = vadd.f32 %v6213_v54, %v6063_v5  ;;  %v9199_v9 = vld [vmem:[#allocation45_spill] sm:$0xff]  ;;  %v9204_v16 = vld [vmem:[#allocation16_spill] sm:$0xff]  ;;  %v9205_v38 = vld [vmem:[#allocation10_spill] sm:$0xff] }
 0x146   : > { %1334 = vmatpush1.bf16.msra.mxu0 %v1009_v41  ;;  %1527 = vmatpush1.bf16.msra.mxu1 %v1011_v58  ;;  %v760_v44 = vadd.f32 %v6218_v62, %v6065_v6  ;;  %v950_v13 = vmax.f32 %v768_v29, 0.0  ;;  %v873_v40 = vadd.f32 %v6223_v4, %v6065_v6  ;;  %v946_v1 = vmax.f32 %v6301_v25, 0.0  ;;  %v9193_v25 = vld [vmem:[#allocation27_spill] sm:$0xff] }
 0x147   : > { %1335 = vmatprep.subr.bf16.mxu0 %v1006_v45  ;;  %1528 = vmatprep.subr.bf16.mxu1 %v1008_v59  ;;  %v953_v57 = vmax.f32 %v770_v56, 0.0  ;;  %v1001_v42 = vpack.c.bf16 %v961_v12, %v957_v60  ;;  %v951_v50 = vmax.f32 %v879_v61, 0.0  ;;  %v955_v22 = vmax.f32 %v883_v36, 0.0  ;;  %v9203_v45 = vld [vmem:[#allocation12_spill] sm:$0xff]  ;;  %v9206_v59 = vld [vmem:[#allocation21_spill] sm:$0xff]  ;;  %v9207_v56 = vld [vmem:[#allocation18_spill] sm:$0xff] }
 0x148   : > { %v1003_v51 = vpack.c.bf16 %v963_v21, %v959_v32  ;;  %v998_v46 = vpack.c.bf16 %v954_v15, %v950_v13  ;;  %v944_v5 = vmax.f32 %v6298_v19, 0.0  ;;  %v948_v54 = vmax.f32 %v6304_v31, 0.0  ;;  %v9196_v19 = vld [vmem:[#allocation30_spill] sm:$0xff]  ;;  %v9197_v31 = vld [vmem:[#allocation44_spill] sm:$0xff]  ;;  %v9210_v60 = vld [vmem:[#allocation41_spill] sm:$0xff] }
 0x149   : > { %v949_v62 = vmax.f32 %v6307_v39, 0.0  ;;  %v1000_v52 = vpack.c.bf16 %v956_v18, %v952_v3  ;;  %v859_v6 = vadd.f32 %v6173_v24, %v6076_v10  ;;  %v748_v4 = vadd.f32 %v9193_v25, %v6076_v10  ;;  %v9208_v36 = vld [vmem:[#allocation40_spill] sm:$0xff]  ;;  %v9209_v3 = vld [vmem:[#allocation39_spill] sm:$0xff]  ;;  %v9212_v13 = vld [vmem:[#allocation13_spill] sm:$0xff] }
 0x14a   : > { %1336 = vmatpush1.bf16.msra.mxu0 %v1005_v30  ;;  %1529 = vmatpush1.bf16.msra.mxu1 %v1007_v63  ;;  %v750_v37 = vadd.f32 %v9195_v28, %v9194_v8  ;;  %v942_v14 = vmax.f32 %v758_v34, 0.0  ;;  %v863_v17 = vadd.f32 %v9196_v19, %v9194_v8  ;;  %v938_v20 = vmax.f32 %v9197_v31, 0.0  ;;  %v9214_v25 = vld [vmem:[#allocation26_spill] sm:$0xff]  ;;  %v9215_v8 = vld [vmem:[#allocation19_spill] sm:$0xff]  ;;  %v9216_v28 = vld [vmem:[#allocation20_spill] sm:$0xff] }
 0x14b   : > { %1337 = vmatprep.subr.bf16.mxu0 %v1002_v35  ;;  %1530 = vmatprep.subr.bf16.mxu1 %v1004_v47  ;;  %v945_v39 = vmax.f32 %v760_v44, 0.0  ;;  %v997_v49 = vpack.c.bf16 %v953_v57, %v949_v62  ;;  %v943_v27 = vmax.f32 %v869_v2, 0.0  ;;  %v947_v48 = vmax.f32 %v873_v40, 0.0  ;;  %v9211_v2 = vld [vmem:[#allocation42_spill] sm:$0xff]  ;;  %v5258_v19 = vld [vmem:[#allocation3 + $0x10] sm:$0xff]   ;;  %v5260_v31 = vld [vmem:[#allocation3 + $0x20] sm:$0xff]  }
 0x14c   : > { %v999_v24 = vpack.c.bf16 %v955_v22, %v951_v50  ;;  %v994_v26 = vpack.c.bf16 %v946_v1, %v942_v14  ;;  %v936_v10 = vmax.f32 %v9198_v11, 0.0  ;;  %v940_v43 = vmax.f32 %v9199_v9, 0.0  ;;  %v5257_v14 = vld [vmem:[#allocation3 + $0x8] sm:$0xff]   ;;  %v5268_v11 = vld [vmem:[#allocation3 + $0x60] sm:$0xff]   ;;  %v5270_v9 = vld [vmem:[#allocation3 + $0x70] sm:$0xff]  }
 0x14d   : > { %v941_v41 = vmax.f32 %v9200_v55, 0.0  ;;  %v996_v0 = vpack.c.bf16 %v948_v54, %v944_v5  ;;  %v841_v58 = vadd.f32 %v9202_v23, %v9201_v53  ;;  %v732_v7 = vadd.f32 %v9204_v16, %v9203_v45 }
 0x14e   : > { %1338 = vmatpush1.bf16.msra.mxu0 %v1001_v42  ;;  %1531 = vmatpush1.bf16.msra.mxu1 %v1003_v51  ;;  %v738_v61 = vadd.f32 %v9206_v59, %v9205_v38  ;;  %v934_v29 = vmax.f32 %v748_v4, 0.0  ;;  %v845_v33 = vadd.f32 %v9207_v56, %v9203_v45  ;;  %v930_v15 = vmax.f32 %v9208_v36, 0.0  ;;  %v5256_v4 = vld [vmem:[#allocation3] sm:$0xff]   ;;  %v6454_v45 = vpop.permute.xlu1 %1084 }
 0x14f   : > { %1339 = vmatprep.subr.bf16.mxu0 %v998_v46  ;;  %1532 = vmatprep.subr.bf16.mxu1 %v1000_v52  ;;  %v937_v12 = vmax.f32 %v750_v37, 0.0  ;;  %v993_v30 = vpack.c.bf16 %v945_v39, %v941_v41  ;;  %v935_v32 = vmax.f32 %v859_v6, 0.0  ;;  %v939_v21 = vmax.f32 %v863_v17, 0.0  ;;  %v9213_v52 = vld [vmem:[#allocation24_spill] sm:$0xff]  ;;  %v5262_v39 = vld [vmem:[#allocation3 + $0x30] sm:$0xff]   ;;  %9221 = vst [vmem:[#allocation30_spill] sm:$0xff] %v6454_v45 }
 0x150   : > { %v995_v63 = vpack.c.bf16 %v947_v48, %v943_v27  ;;  %v990_v35 = vpack.c.bf16 %v938_v20, %v934_v29  ;;  %v928_v18 = vmax.f32 %v9209_v3, 0.0  ;;  %v932_v47 = vmax.f32 %v9210_v60, 0.0  ;;  %v5259_v17 = vld [vmem:[#allocation3 + $0x18] sm:$0xff]   ;;  %v5261_v20 = vld [vmem:[#allocation3 + $0x28] sm:$0xff]   ;;  %v5264_v27 = vld [vmem:[#allocation3 + $0x40] sm:$0xff]  }
 0x151   : > { %v933_v34 = vmax.f32 %v9211_v2, 0.0  ;;  %v992_v44 = vpack.c.bf16 %v940_v43, %v936_v10  ;;  %v728_v40 = vadd.f32 %v9212_v13, %v9201_v53  ;;  %v926_v1 = vmax.f32 %v738_v61, 0.0  ;;  %v5265_v48 = vld [vmem:[#allocation3 + $0x48] sm:$0xff]   ;;  %v5271_v43 = vld [vmem:[#allocation3 + $0x78] sm:$0xff]   ;;  %v9225_v3 = vld [vmem:[#allocation37_spill] sm:$0xff] }
 0x152   : > { %1340 = vmatpush1.bf16.msra.mxu0 %v997_v49  ;;  %1533 = vmatpush1.bf16.msra.mxu1 %v999_v24  ;;  %v922_v42 = vmax.f32 %v732_v7, 0.0  ;;  %v991_v50 = vpack.c.bf16 %v939_v21, %v935_v32  ;;  %v920_v51 = vmax.f32 %v841_v58, 0.0  ;;  %v924_v46 = vmax.f32 %v845_v33, 0.0  ;;  %v5263_v49 = vld [vmem:[#allocation3 + $0x38] sm:$0xff]   ;;  %v5266_v24 = vld [vmem:[#allocation3 + $0x50] sm:$0xff]   ;;  %v5269_v10 = vld [vmem:[#allocation3 + $0x68] sm:$0xff]  }
 0x153   : > { %1341 = vmatprep.subr.bf16.mxu0 %v994_v26  ;;  %1534 = vmatprep.subr.bf16.mxu1 %v996_v0  ;;  %v989_v57 = vpack.c.bf16 %v937_v12, %v933_v34  ;;  %v986_v22 = vpack.c.bf16 %v930_v15, %v926_v1  ;;  %v988_v5 = vpack.c.bf16 %v932_v47, %v928_v18  ;;  %v918_v54 = vmax.f32 %v728_v40, 0.0  ;;  %v5267_v26 = vld [vmem:[#allocation3 + $0x58] sm:$0xff]   ;;  %v6447_v0 = vpop.permute.xlu0 %1079  ;;  %v9227_v34 = vld [vmem:[#allocation38_spill] sm:$0xff] }
 0x154   : > { %v984_v6 = vpack.c.bf16 %v924_v46, %v920_v51  ;;  %v9217_v37 = vmov 0   ;;  %9218 = vst [vmem:[#allocation27_spill] sm:$0xff] %v6447_v0 }
 0x155   : > { %v982_v62 = vpack.c.bf16 %v922_v42, %v918_v54 }
 0x156   : > { %1342 = vmatpush1.bf16.msra.mxu0 %v993_v30  ;;  %1535 = vmatpush1.bf16.msra.mxu1 %v995_v63 }
 0x157   : > { %1343 = vmatprep.subr.bf16.mxu0 %v990_v35  ;;  %1536 = vmatprep.subr.bf16.mxu1 %v992_v44 }
 0x15a   : > { %1344 = vmatpush1.bf16.msra.mxu0 %v989_v57  ;;  %1537 = vmatpush1.bf16.msra.mxu1 %v991_v50 }
 0x15b   : > { %1345 = vmatprep.subr.bf16.mxu0 %v986_v22  ;;  %1538 = vmatprep.subr.bf16.mxu1 %v988_v5 }
 0x15e   : > { %1346 = vmatpush1.bf16.msra.mxu0 %v9213_v52  ;;  %1539 = vmatpush1.bf16.msra.mxu1 %v9214_v25 }
 0x15f   : > { %1347 = vmatprep.subr.bf16.mxu0 %v982_v62  ;;  %1540 = vmatprep.subr.bf16.mxu1 %v984_v6 }
 0x162   : > { %1348 = vmatpush1.bf16.msra.mxu0 %v9215_v8  ;;  %1541 = vmatpush1.bf16.msra.mxu1 %v9216_v28 }
 0x165   : > { %1366 = vmatmul.mubr.bf16.vlgmr.msra.gmra.mxu0 %v5256_v4  ;;  %1559 = vmatmul.mubr.bf16.vlgmr.msra.gmra.mxu1 %v5256_v4 }
 0x166   : > { %1375 = vmatprep.mubr.bf16.mxu0 %v9217_v37  ;;  %1568 = vmatprep.mubr.bf16.mxu1 %v9217_v37 }
 0x16d   : > { %1376 = vmatmul.mubr.bf16.gmra.mxu0 %v5257_v14  ;;  %1569 = vmatmul.mubr.bf16.gmra.mxu1 %v5257_v14 }
 0x16e   : > { %1385 = vmatprep.mubr.bf16.mxu0 %v9217_v37  ;;  %1578 = vmatprep.mubr.bf16.mxu1 %v9217_v37 }
 0x175   : > { %1386 = vmatmul.mubr.bf16.gmra.mxu0 %v5258_v19  ;;  %1579 = vmatmul.mubr.bf16.gmra.mxu1 %v5258_v19 }
 0x176   : > { %1395 = vmatprep.mubr.bf16.mxu0 %v9217_v37  ;;  %1588 = vmatprep.mubr.bf16.mxu1 %v9217_v37 }
 0x17d   : > { %1396 = vmatmul.mubr.bf16.gmra.mxu0 %v5259_v17  ;;  %1589 = vmatmul.mubr.bf16.gmra.mxu1 %v5259_v17  ;;  %v6483_v17 = vpop.permute.xlu1 %1234 }
 0x17e   : > { %1405 = vmatprep.mubr.bf16.mxu0 %v9217_v37  ;;  %1598 = vmatprep.mubr.bf16.mxu1 %v9217_v37  ;;  %9232 = vst [vmem:[#allocation10_spill] sm:$0xff] %v6483_v17 }
 0x185   : > { %1406 = vmatmul.mubr.bf16.gmra.mxu0 %v5260_v31  ;;  %1599 = vmatmul.mubr.bf16.gmra.mxu1 %v5260_v31 }
 0x186   : > { %1415 = vmatprep.mubr.bf16.mxu0 %v9217_v37  ;;  %1608 = vmatprep.mubr.bf16.mxu1 %v9217_v37 }
 0x18d   : > { %1416 = vmatmul.mubr.bf16.gmra.mxu0 %v5261_v20  ;;  %1609 = vmatmul.mubr.bf16.gmra.mxu1 %v5261_v20 }
 0x18e   : > { %1425 = vmatprep.mubr.bf16.mxu0 %v9217_v37  ;;  %1618 = vmatprep.mubr.bf16.mxu1 %v9217_v37 }
 0x195   : > { %1426 = vmatmul.mubr.bf16.gmra.mxu0 %v5262_v39  ;;  %1619 = vmatmul.mubr.bf16.gmra.mxu1 %v5262_v39 }
 0x196   : > { %1435 = vmatprep.mubr.bf16.mxu0 %v9217_v37  ;;  %1628 = vmatprep.mubr.bf16.mxu1 %v9217_v37 }
 0x19d   : > { %1436 = vmatmul.mubr.bf16.gmra.mxu0 %v5263_v49  ;;  %1629 = vmatmul.mubr.bf16.gmra.mxu1 %v5263_v49 }
 0x19e   : > { %1445 = vmatprep.mubr.bf16.mxu0 %v9217_v37  ;;  %1638 = vmatprep.mubr.bf16.mxu1 %v9217_v37 }
 0x1a5   : > { %1446 = vmatmul.mubr.bf16.gmra.mxu0 %v5264_v27  ;;  %1639 = vmatmul.mubr.bf16.gmra.mxu1 %v5264_v27 }
 0x1a6   : > { %1455 = vmatprep.mubr.bf16.mxu0 %v9217_v37  ;;  %1648 = vmatprep.mubr.bf16.mxu1 %v9217_v37 }
 0x1ad   : > { %1456 = vmatmul.mubr.bf16.gmra.mxu0 %v5265_v48  ;;  %1649 = vmatmul.mubr.bf16.gmra.mxu1 %v5265_v48 }
 0x1ae   : > { %1465 = vmatprep.mubr.bf16.mxu0 %v9217_v37  ;;  %1658 = vmatprep.mubr.bf16.mxu1 %v9217_v37 }
 0x1b5   : > { %1466 = vmatmul.mubr.bf16.gmra.mxu0 %v5266_v24  ;;  %1659 = vmatmul.mubr.bf16.gmra.mxu1 %v5266_v24 }
 0x1b6   : > { %1475 = vmatprep.mubr.bf16.mxu0 %v9217_v37  ;;  %1668 = vmatprep.mubr.bf16.mxu1 %v9217_v37 }
 0x1bd   : > { %1476 = vmatmul.mubr.bf16.gmra.mxu0 %v5267_v26  ;;  %1669 = vmatmul.mubr.bf16.gmra.mxu1 %v5267_v26  ;;  %v6487_v26 = vpop.permute.xlu1 %1224 }
 0x1be   : > { %1485 = vmatprep.mubr.bf16.mxu0 %v9217_v37  ;;  %1678 = vmatprep.mubr.bf16.mxu1 %v9217_v37  ;;  %9234 = vst [vmem:[#allocation18_spill] sm:$0xff] %v6487_v26  ;;  %v9246_v26 = vld [vmem:[#allocation33_spill] sm:$0xff] }
 0x1c5   : > { %1486 = vmatmul.mubr.bf16.gmra.mxu0 %v5268_v11  ;;  %1679 = vmatmul.mubr.bf16.gmra.mxu1 %v5268_v11 }
 0x1c6   : > { %1495 = vmatprep.mubr.bf16.mxu0 %v9217_v37  ;;  %1688 = vmatprep.mubr.bf16.mxu1 %v9217_v37 }
 0x1cd   : > { %1496 = vmatmul.mubr.bf16.gmra.mxu0 %v5269_v10  ;;  %1689 = vmatmul.mubr.bf16.gmra.mxu1 %v5269_v10 }
 0x1ce   : > { %1505 = vmatprep.mubr.bf16.mxu0 %v9217_v37  ;;  %1698 = vmatprep.mubr.bf16.mxu1 %v9217_v37 }
 0x1d5   : > { %1506 = vmatmul.mubr.bf16.gmra.mxu0 %v5270_v9  ;;  %1699 = vmatmul.mubr.bf16.gmra.mxu1 %v5270_v9 }
 0x1d6   : > { %1515 = vmatprep.mubr.bf16.mxu0 %v9217_v37  ;;  %1708 = vmatprep.mubr.bf16.mxu1 %v9217_v37  ;;  %v6481_v37 = vpop.permute.xlu0 %1229 }
 0x1d7   : > { %9231 = vst [vmem:[#allocation16_spill] sm:$0xff] %v6481_v37 }
 0x1da   : > { %v6485_v27 = vpop.permute.xlu0 %1219 }
 0x1db   : > { %9233 = vst [vmem:[#allocation21_spill] sm:$0xff] %v6485_v27 }
 0x1dd   : > { %1516 = vmatmul.mubr.bf16.gmra.mxu0 %v5271_v43  ;;  %1709 = vmatmul.mubr.bf16.gmra.mxu1 %v5271_v43 }
 0x225   : > { %v1367_v55 = vpop.f32.mrf.mxu0  ;;  %v1560_v41 = vpop.f32.mrf.mxu1 }
 0x226   : > { %v1368_v23 = vadd.f32 %v1367_v55, %v6447_v0  ;;  %v1561_v16 = vadd.f32 %v1560_v41, %v6447_v0  ;;  %v5274_v55 = vld [vmem:[%s8973_s5 + $0x4] ss:$8 sps:$4 sm:$0xff]   ;;  %v6494_v41 = vpop.permute.xlu0 %1209 }
 0x227   : > { %v6449_v53 = vpop.f32.mrf.mxu0  ;;  %v6452_v58 = vpop.f32.mrf.mxu1  ;;  %9235 = vst [vmem:[#allocation40_spill] sm:$0xff] %v6494_v41  ;;  %2711 = vmatprep.mubr.bf16.mxu0 %v5274_v55  ;;  %3064 = vmatprep.mubr.bf16.mxu1 %v5274_v55 }
 0x228   : > { %9219 = vst [vmem:[#allocation9_spill] sm:$0xff] %v6449_v53  ;;  %9220 = vst [vmem:[#allocation29_spill] sm:$0xff] %v6452_v58  ;;  %v1719_v56 = vmax.f32 %v1368_v23, 0.0  ;;  %v1721_v15 = vmax.f32 %v1561_v16, 0.0  ;;  %v9261_v53 = vld [vmem:[#allocation22_spill] sm:$0xff] }
 0x229   : > { %v1371_v7 = vpop.f32.mrf.mxu0  ;;  %v1564_v59 = vpop.f32.mrf.mxu1 }
 0x22a   : > { %v1372_v38 = vadd.f32 %v1371_v7, %v6454_v45  ;;  %v1565_v61 = vadd.f32 %v1564_v59, %v6454_v45  ;;  %v6496_v7 = vpop.permute.xlu1 %1214 }
 0x22b   : > { %v6459_v29 = vpop.f32.mrf.mxu0  ;;  %v6461_v36 = vpop.f32.mrf.mxu1  ;;  %9236 = vst [vmem:[#allocation39_spill] sm:$0xff] %v6496_v7 }
 0x22c   : > { %v1723_v33 = vmax.f32 %v1372_v38, 0.0  ;;  %9222 = vst [vmem:[#allocation44_spill] sm:$0xff] %v6461_v36  ;;  %v1725_v12 = vmax.f32 %v1565_v61, 0.0  ;;  %v6511_v55 = vadd.f32 %v6459_v29, %v6454_v45  ;;  %v9251_v29 = vld [vmem:[#allocation34_spill] sm:$0xff]  ;;  %v9265_v36 = vld [vmem:[#allocation17_spill] sm:$0xff] }
 0x22d   : > { %v1377_v30 = vpop.f32.mrf.mxu0  ;;  %v1570_v21 = vpop.f32.mrf.mxu1 }
 0x22e   : > { %v6463_v32 = vpack.c.bf16 %v1723_v33, %v1719_v56  ;;  %v6465_v63 = vpack.c.bf16 %v1725_v12, %v1721_v15  ;;  %v1378_v18 = vadd.f32 %v1377_v30, %v9225_v3  ;;  %v1571_v47 = vadd.f32 %v1570_v21, %v9225_v3  ;;  %v6498_v33 = vpop.permute.xlu0 %1199  ;;  %v6500_v30 = vpop.permute.xlu1 %1204  ;;  %9243 = vst [vmem:[#allocation19_spill] sm:$0xff] %v6511_v55 }
 0x22f   : > { %v6467_v35 = vpop.f32.mrf.mxu0  ;;  %v6470_v60 = vpop.f32.mrf.mxu1  ;;  %9237 = vst [vmem:[#allocation41_spill] sm:$0xff] %v6498_v33  ;;  %9238 = vst [vmem:[#allocation42_spill] sm:$0xff] %v6500_v30 }
 0x230   : > { %9223 = vst [vmem:[#allocation43_spill] sm:$0xff] %v6463_v32  ;;  %9224 = vst [vmem:[#allocation45_spill] sm:$0xff] %v6465_v63  ;;  %v1727_v57 = vmax.f32 %v1378_v18, 0.0  ;;  %v1729_v22 = vmax.f32 %v1571_v47, 0.0  ;;  %v9256_v63 = vld [vmem:[#allocation32_spill] sm:$0xff] }
 0x231   : > { %9226 = vst [vmem:[#allocation46_spill] sm:$0xff] %v6470_v60  ;;  %v1381_v2 = vpop.f32.mrf.mxu0  ;;  %v1574_v13 = vpop.f32.mrf.mxu1 }
 0x232   : > { %v1382_v44 = vadd.f32 %v1381_v2, %v9227_v34  ;;  %v1575_v40 = vadd.f32 %v1574_v13, %v9227_v34 }
 0x233   : > { %v1383_v1 = vpop.f32.mrf.mxu0  ;;  %v1576_v50 = vpop.f32.mrf.mxu1 }
 0x234   : > { %v1731_v42 = vmax.f32 %v1382_v44, 0.0  ;;  %v1733_v51 = vmax.f32 %v1575_v40, 0.0  ;;  %v6502_v44 = vpop.permute.xlu0 %1189  ;;  %v9240_v40 = vld [vmem:[#allocation36_spill] sm:$0xff]  ;;  %v6514_v17 = vadd.f32 %v1383_v1, %v9227_v34  ;;  %v6517_v37 = vadd.f32 %v1576_v50, %v9227_v34 }
 0x235   : > { %v1387_v46 = vpop.f32.mrf.mxu0  ;;  %v6477_v54 = vpop.f32.mrf.mxu1  ;;  %9239 = vst [vmem:[#allocation13_spill] sm:$0xff] %v6502_v44 }
 0x236   : > { %v6475_v5 = vpack.c.bf16 %v1731_v42, %v1727_v57  ;;  %9229 = vst [vmem:[#allocation14_spill] sm:$0xff] %v6477_v54  ;;  %v6479_v62 = vpack.c.bf16 %v1733_v51, %v1729_v22  ;;  %v6507_v22 = vpop.permute.xlu1 %1194  ;;  %9244 = vst [vmem:[#allocation20_spill] sm:$0xff] %v6514_v17 }
 0x237   : > { %v1389_v52 = vpop.f32.mrf.mxu0  ;;  %v1582_v6 = vpop.f32.mrf.mxu1  ;;  %9242 = vst [vmem:[#allocation26_spill] sm:$0xff] %v6507_v22  ;;  %9245 = vst [vmem:[#allocation37_spill] sm:$0xff] %v6517_v37 }
 0x238   : > { %9228 = vst [vmem:[#allocation11_spill] sm:$0xff] %v6475_v5  ;;  %9230 = vst [vmem:[#allocation12_spill] sm:$0xff] %v6479_v62  ;;  %v6544_v44 = vpop.permute.xlu0 %1179 }
 0x239   : > { %v1391_v25 = vpop.f32.mrf.mxu0  ;;  %v1584_v4 = vpop.f32.mrf.mxu1  ;;  %9254 = vst [vmem:[#allocation48_spill] sm:$0xff] %v6544_v44 }
 0x23a   : > { %v6535_v34 = vadd.f32 %v1391_v25, %v9240_v40  ;;  %v6538_v50 = vadd.f32 %v1584_v4, %v9240_v40  ;;  %v6568_v62 = vpop.permute.xlu1 %1184 }
 0x23b   : > { %v1393_v8 = vpop.f32.mrf.mxu0  ;;  %v1586_v28 = vpop.f32.mrf.mxu1  ;;  %9258 = vst [vmem:[#allocation32_spill] sm:$0xff] %v6568_v62 }
 0x23c   : > { %v6505_v57 = vadd.f32 %v1393_v8, %v9240_v40  ;;  %v9247_v8 = vld [vmem:[#allocation35_spill] sm:$0xff]  ;;  %9252 = vst [vmem:[#allocation34_spill] sm:$0xff] %v6535_v34  ;;  %9253 = vst [vmem:[#allocation47_spill] sm:$0xff] %v6538_v50 }
 0x23d   : > { %v1397_v14 = vpop.f32.mrf.mxu0  ;;  %v1590_v19 = vpop.f32.mrf.mxu1  ;;  %v6523_v41 = vadd.f32 %v1387_v46, %v9247_v8  ;;  %v6526_v30 = vadd.f32 %v1389_v52, %v9247_v8  ;;  %v6529_v33 = vadd.f32 %v1582_v6, %v9247_v8  ;;  %v6542_v46 = vadd.f32 %v1586_v28, %v9240_v40 }
 0x23e   : > { %9241 = vst [vmem:[#allocation24_spill] sm:$0xff] %v6505_v57  ;;  %v6547_v6 = vadd.f32 %v1397_v14, %v9246_v26  ;;  %v9257_v14 = vld [vmem:[#allocation25_spill] sm:$0xff]  ;;  %v6628_v57 = vpop.permute.xlu1 %1174 }
 0x23f   : > { %v1399_v31 = vpop.f32.mrf.mxu0  ;;  %v1592_v20 = vpop.f32.mrf.mxu1  ;;  %9248 = vst [vmem:[#allocation38_spill] sm:$0xff] %v6523_v41  ;;  %9249 = vst [vmem:[#allocation36_spill] sm:$0xff] %v6526_v30  ;;  %v9264_v41 = vld [vmem:[#allocation15_spill] sm:$0xff] }
 0x240   : > { %v6520_v27 = vadd.f32 %v1399_v31, %v9246_v26  ;;  %9250 = vst [vmem:[#allocation33_spill] sm:$0xff] %v6529_v33  ;;  %v6553_v25 = vadd.f32 %v1592_v20, %v9246_v26  ;;  %v9260_v31 = vld [vmem:[#allocation28_spill] sm:$0xff] }
 0x241   : > { %v1401_v39 = vpop.f32.mrf.mxu0  ;;  %v1594_v49 = vpop.f32.mrf.mxu1 }
 0x242   : > { %v6560_v28 = vadd.f32 %v1401_v39, %v9251_v29  ;;  %v6563_v40 = vadd.f32 %v1594_v49, %v9251_v29 }
 0x243   : > { %v1403_v48 = vpop.f32.mrf.mxu0  ;;  %v1596_v24 = vpop.f32.mrf.mxu1 }
 0x244   : > { %v6532_v22 = vadd.f32 %v1403_v48, %v9251_v29  ;;  %v6550_v48 = vadd.f32 %v1590_v19, %v9246_v26  ;;  %v6572_v26 = vadd.f32 %v1596_v24, %v9251_v29 }
 0x245   : > { %v1407_v11 = vpop.f32.mrf.mxu0  ;;  %v6489_v10 = vpop.f32.mrf.mxu1 }
 0x246   : > { %9255 = vst [vmem:[#allocation49_spill] sm:$0xff] %v6550_v48 }
 0x247   : > { %v1409_v9 = vpop.f32.mrf.mxu0  ;;  %v1602_v43 = vpop.f32.mrf.mxu1 }
 0x249   : > { %v1411_v23 = vpop.f32.mrf.mxu0  ;;  %v1604_v16 = vpop.f32.mrf.mxu1 }
 0x24a   : > { %v6587_v62 = vadd.f32 %v1411_v23, %v9256_v63  ;;  %v6590_v20 = vadd.f32 %v1604_v16, %v9256_v63 }
 0x24b   : > { %v1413_v38 = vpop.f32.mrf.mxu0  ;;  %v1606_v59 = vpop.f32.mrf.mxu1 }
 0x24c   : > { %v6556_v4 = vadd.f32 %v1413_v38, %v9256_v63  ;;  %v9259_v38 = vld [vmem:[#allocation31_spill] sm:$0xff]  ;;  %v6594_v29 = vadd.f32 %v1606_v59, %v9256_v63  ;;  %v6610_v63 = vpop.permute.xlu0 %1169 }
 0x24d   : > { %v1417_v61 = vpop.f32.mrf.mxu0  ;;  %v1610_v56 = vpop.f32.mrf.mxu1  ;;  %v6575_v5 = vadd.f32 %v1407_v11, %v9259_v38  ;;  %v6581_v49 = vadd.f32 %v1409_v9, %v9259_v38  ;;  %9262 = vst [vmem:[#allocation25_spill] sm:$0xff] %v6610_v63 }
 0x24e   : > { %v6600_v9 = vadd.f32 %v1610_v56, %v9257_v14 }
 0x24f   : > { %v1419_v15 = vpop.f32.mrf.mxu0  ;;  %v1612_v12 = vpop.f32.mrf.mxu1 }
 0x250   : > { %v6566_v44 = vadd.f32 %v1419_v15, %v9257_v14  ;;  %v6584_v15 = vadd.f32 %v1602_v43, %v9259_v38  ;;  %v6604_v23 = vadd.f32 %v1612_v12, %v9257_v14  ;;  %v6640_v54 = vpop.permute.xlu0 %1159 }
 0x251   : > { %v1421_v21 = vpop.f32.mrf.mxu0  ;;  %v1614_v18 = vpop.f32.mrf.mxu1  ;;  %9266 = vst [vmem:[#allocation31_spill] sm:$0xff] %v6640_v54 }
 0x252   : > { %v6607_v16 = vadd.f32 %v1421_v21, %v9260_v31  ;;  %v6613_v59 = vadd.f32 %v1614_v18, %v9260_v31 }
 0x253   : > { %v1423_v47 = vpop.f32.mrf.mxu0  ;;  %v1616_v2 = vpop.f32.mrf.mxu1 }
 0x254   : > { %v6578_v39 = vadd.f32 %v1423_v47, %v9260_v31  ;;  %v6597_v47 = vadd.f32 %v1417_v61, %v9257_v14  ;;  %v6617_v56 = vadd.f32 %v1616_v2, %v9260_v31  ;;  %v9263_v14 = vld [vmem:[#allocation23_spill] sm:$0xff] }
 0x255   : > { %v1427_v13 = vpop.f32.mrf.mxu0  ;;  %v1620_v42 = vpop.f32.mrf.mxu1 }
 0x256   : > { %v6620_v58 = vadd.f32 %v1427_v13, %v9261_v53  ;;  %v6623_v21 = vadd.f32 %v1620_v42, %v9261_v53 }
 0x257   : > { %v1429_v51 = vpop.f32.mrf.mxu0  ;;  %v1622_v7 = vpop.f32.mrf.mxu1 }
 0x258   : > { %v1430_v11 = vadd.f32 %v1429_v51, %v9261_v53  ;;  %v1623_v17 = vadd.f32 %v1622_v7, %v9261_v53 }
 0x259   : > { %v1431_v1 = vpop.f32.mrf.mxu0  ;;  %v1624_v52 = vpop.f32.mrf.mxu1 }
 0x25a   : > { %v1768_v42 = vmax.f32 %v1430_v11, 0.0  ;;  %v1432_v34 = vadd.f32 %v1431_v1, %v9263_v14  ;;  %v1625_v33 = vadd.f32 %v1624_v52, %v9263_v14  ;;  %v1770_v1 = vmax.f32 %v1623_v17, 0.0 }
 0x25b   : > { %v1433_v32 = vpop.f32.mrf.mxu0  ;;  %v1626_v19 = vpop.f32.mrf.mxu1 }
 0x25c   : > { %v1434_v51 = vadd.f32 %v1433_v32, %v9263_v14  ;;  %v1627_v61 = vadd.f32 %v1626_v19, %v9263_v14  ;;  %v6647_v14 = vpop.permute.xlu1 %1164 }
 0x25d   : > { %v1437_v55 = vpop.f32.mrf.mxu0  ;;  %v1630_v24 = vpop.f32.mrf.mxu1  ;;  %9269 = vst [vmem:[#allocation23_spill] sm:$0xff] %v6647_v14 }
 0x25e   : > { %v1438_v2 = vadd.f32 %v1437_v55, %v9264_v41  ;;  %v1631_v32 = vadd.f32 %v1630_v24, %v9264_v41  ;;  %v1774_v53 = vmax.f32 %v1627_v61, 0.0 }
 0x25f   : > { %v1439_v43 = vpop.f32.mrf.mxu0  ;;  %v1632_v0 = vpop.f32.mrf.mxu1 }
 0x260   : > { %v1440_v37 = vadd.f32 %v1439_v43, %v9264_v41  ;;  %v1633_v13 = vadd.f32 %v1632_v0, %v9264_v41  ;;  %v1772_v0 = vmax.f32 %v1434_v51, 0.0  ;;  %v1775_v41 = vmax.f32 %v1438_v2, 0.0 }
 0x261   : > { %v1441_v12 = vpop.f32.mrf.mxu0  ;;  %v1634_v18 = vpop.f32.mrf.mxu1  ;;  %v1777_v8 = vmax.f32 %v1631_v32, 0.0  ;;  %v1773_v2 = vmax.f32 %v1625_v33, 0.0  ;;  %v1767_v32 = vmax.f32 %v6620_v58, 0.0  ;;  %v1769_v33 = vmax.f32 %v6623_v21, 0.0 }
 0x262   : > { %v1442_v45 = vadd.f32 %v1441_v12, %v9265_v36  ;;  %v1635_v31 = vadd.f32 %v1634_v18, %v9265_v36  ;;  %v1776_v48 = vmax.f32 %v1440_v37, 0.0  ;;  %v1778_v7 = vmax.f32 %v1633_v13, 0.0 }
 0x263   : > { %v1443_v50 = vpop.f32.mrf.mxu0  ;;  %v1636_v12 = vpop.f32.mrf.mxu1  ;;  %v1771_v37 = vmax.f32 %v1432_v34, 0.0  ;;  %v1872_v17 = vpack.c.bf16 %v1772_v0, %v1768_v42  ;;  %v9272_v21 = vmax.f32 %v6566_v44, 0.0  ;;  %v1761_v44 = vmax.f32 %v6600_v9, 0.0 }
 0x264   : > { %v1444_v43 = vadd.f32 %v1443_v50, %v9265_v36  ;;  %v1779_v19 = vmax.f32 %v1442_v45, 0.0  ;;  %v1637_v55 = vadd.f32 %v1636_v12, %v9265_v36  ;;  %v1781_v18 = vmax.f32 %v1635_v31, 0.0 }
 0x265   : > { %v1447_v60 = vpop.f32.mrf.mxu0  ;;  %v1640_v11 = vpop.f32.mrf.mxu1  ;;  %v1871_v58 = vpack.c.bf16 %v1771_v37, %v1767_v32 }
 0x266   : > { %v1780_v30 = vmax.f32 %v1444_v43, 0.0  ;;  %v1782_v50 = vmax.f32 %v1637_v55, 0.0  ;;  %v1448_v45 = vadd.f32 %v1447_v60, %v6640_v54  ;;  %v1875_v51 = vpack.c.bf16 %v1779_v19, %v1775_v41 }
 0x267   : > { %v6642_v24 = vpop.f32.mrf.mxu0  ;;  %v6645_v52 = vpop.f32.mrf.mxu1  ;;  %v1641_v31 = vadd.f32 %v1640_v11, %v6640_v54  ;;  %v1877_v13 = vpack.c.bf16 %v1781_v18, %v1777_v8  ;;  %v1766_v60 = vmax.f32 %v6617_v56, 0.0  ;;  %v1762_v19 = vmax.f32 %v6604_v23, 0.0 }
 0x268   : > { %9267 = vst [vmem:[#allocation28_spill] sm:$0xff] %v6642_v24  ;;  %9268 = vst [vmem:[#allocation22_spill] sm:$0xff] %v6645_v52  ;;  %v1876_v36 = vpack.c.bf16 %v1780_v30, %v1776_v48  ;;  %v1878_v61 = vpack.c.bf16 %v1782_v50, %v1778_v7  ;;  %v1874_v48 = vpack.c.bf16 %v1774_v53, %v1770_v1  ;;  %v1783_v8 = vmax.f32 %v1448_v45, 0.0  ;;  %v9324_v52 = vld [vmem:[#allocation42_spill] sm:$0xff]  ;;  %v9325_v24 = vld [vmem:[#allocation40_spill] sm:$0xff] }
 0x269   : > { %v1451_v43 = vpop.f32.mrf.mxu0  ;;  %v1644_v55 = vpop.f32.mrf.mxu1  ;;  %v1763_v56 = vmax.f32 %v6607_v16, 0.0  ;;  %v1785_v42 = vmax.f32 %v1641_v31, 0.0  ;;  %v1765_v7 = vmax.f32 %v6613_v59, 0.0  ;;  %v1873_v53 = vpack.c.bf16 %v1773_v2, %v1769_v33 }
 0x26a   : > { %v1452_v12 = vadd.f32 %v1451_v43, %v6647_v14  ;;  %2679 = vmatprep.subr.bf16.mxu0 %v1876_v36  ;;  %v1645_v30 = vadd.f32 %v1644_v55, %v6647_v14  ;;  %3032 = vmatprep.subr.bf16.mxu1 %v1878_v61  ;;  %v9273_v1 = vmax.f32 %v6578_v39, 0.0  ;;  %v1758_v36 = vmax.f32 %v6594_v29, 0.0 }
 0x26b   : > { %v6654_v34 = vpop.f32.mrf.mxu0  ;;  %2680 = vmatpush1.bf16.msra.mxu0 %v1875_v51  ;;  %v6658_v11 = vpop.f32.mrf.mxu1  ;;  %3033 = vmatpush1.bf16.msra.mxu1 %v1877_v13  ;;  %v1759_v16 = vmax.f32 %v6597_v47, 0.0  ;;  %v1870_v31 = vpack.c.bf16 %v1766_v60, %v1762_v19  ;;  %v1601_v59 = vadd.f32 %v6489_v10, %v9259_v38  ;;  %v1752_v43 = vmax.f32 %v6581_v49, 0.0 }
 0x26c   : > { %v1787_v18 = vmax.f32 %v1452_v12, 0.0  ;;  %9270 = vst [vmem:[#allocation15_spill] sm:$0xff] %v6658_v11  ;;  %2681 = vmatprep.subr.bf16.mxu0 %v1872_v17  ;;  %v1789_v0 = vmax.f32 %v1645_v30, 0.0  ;;  %3034 = vmatprep.subr.bf16.mxu1 %v1874_v48  ;;  %v1868_v45 = vpack.c.bf16 %v9273_v1, %v9272_v21  ;;  %v1754_v29 = vmax.f32 %v6584_v15, 0.0 }
 0x26d   : > { %v1457_v41 = vpop.f32.mrf.mxu0  ;;  %v1650_v23 = vpop.f32.mrf.mxu1  ;;  %v1755_v47 = vmax.f32 %v6587_v62, 0.0  ;;  %v1867_v2 = vpack.c.bf16 %v1763_v56, %v1759_v16  ;;  %v1757_v10 = vmax.f32 %v6590_v20, 0.0  ;;  %v1869_v38 = vpack.c.bf16 %v1765_v7, %v1761_v44  ;;  %v9285_v16 = vld [vmem:[#allocation14_spill] sm:$0xff] }
 0x26e   : > { %v6662_v50 = vpack.c.bf16 %v1787_v18, %v1783_v8  ;;  %v6670_v37 = vpack.c.bf16 %v1789_v0, %v1785_v42  ;;  %v1458_v39 = vadd.f32 %v1457_v41, %v6610_v63  ;;  %v1651_v13 = vadd.f32 %v1650_v23, %v6610_v63 }
 0x26f   : > { %v6672_v51 = vpop.f32.mrf.mxu0  ;;  %2682 = vmatpush1.bf16.msra.mxu0 %v1871_v58  ;;  %v6679_v61 = vpop.f32.mrf.mxu1  ;;  %3035 = vmatpush1.bf16.msra.mxu1 %v1873_v53  ;;  %v9277_v55 = vmax.f32 %v6556_v4, 0.0  ;;  %v1750_v60 = vmax.f32 %v6572_v26, 0.0  ;;  %v1751_v15 = vmax.f32 %v6575_v5, 0.0  ;;  %v1866_v30 = vpack.c.bf16 %v1758_v36, %v1754_v29  ;;  %v9284_v36 = vld [vmem:[#allocation35_spill] sm:$0xff] }
 0x270   : > { %9271 = vst [vmem:[#allocation17_spill] sm:$0xff] %v6662_v50  ;;  %9274 = vst [vmem:[#allocation50_spill] sm:$0xff] %v6670_v37  ;;  %2683 = vmatprep.subr.bf16.mxu0 %v1868_v45  ;;  %3036 = vmatprep.subr.bf16.mxu1 %v1870_v31  ;;  %v1746_v48 = vmax.f32 %v6553_v25, 0.0  ;;  %v1753_v20 = vmax.f32 %v1601_v59, 0.0  ;;  %v1791_v19 = vmax.f32 %v1458_v39, 0.0  ;;  %v1747_v4 = vmax.f32 %v6560_v28, 0.0 }
 0x271   : > { %9275 = vst [vmem:[#allocation51_spill] sm:$0xff] %v6672_v51  ;;  %9276 = vst [vmem:[#allocation52_spill] sm:$0xff] %v6679_v61  ;;  %v1461_v12 = vpop.f32.mrf.mxu0  ;;  %v1654_v9 = vpop.f32.mrf.mxu1  ;;  %v1864_v17 = vpack.c.bf16 %v9277_v55, %v1752_v43  ;;  %v1863_v26 = vpack.c.bf16 %v1755_v47, %v1751_v15  ;;  %v1793_v18 = vmax.f32 %v1651_v13, 0.0  ;;  %v1749_v58 = vmax.f32 %v6563_v40, 0.0  ;;  %v9289_v39 = vld [vmem:[#allocation33_spill] sm:$0xff]  ;;  %v9290_v47 = vld [vmem:[#allocation34_spill] sm:$0xff] }
 0x272   : > { %v1462_v49 = vadd.f32 %v1461_v12, %v6628_v57  ;;  %v1655_v62 = vadd.f32 %v1654_v9, %v6628_v57  ;;  %v1865_v42 = vpack.c.bf16 %v1757_v10, %v1753_v20  ;;  %v9281_v41 = vmax.f32 %v6520_v27, 0.0  ;;  %v9286_v27 = vld [vmem:[#allocation36_spill] sm:$0xff]  ;;  %v9319_v37 = vld [vmem:[#allocation13_spill] sm:$0xff]  ;;  %v9322_v50 = vld [vmem:[#allocation26_spill] sm:$0xff] }
 0x273   : > { %v6691_v32 = vpop.f32.mrf.mxu0  ;;  %2684 = vmatpush1.bf16.msra.mxu0 %v1867_v2  ;;  %v6694_v8 = vpop.f32.mrf.mxu1  ;;  %3037 = vmatpush1.bf16.msra.mxu1 %v1869_v38  ;;  %v9282_v7 = vmax.f32 %v6532_v22, 0.0  ;;  %v1742_v28 = vmax.f32 %v6542_v46, 0.0  ;;  %v1743_v23 = vmax.f32 %v6547_v6, 0.0  ;;  %v1862_v40 = vpack.c.bf16 %v1750_v60, %v1746_v48  ;;  %v9287_v22 = vld [vmem:[#allocation49_spill] sm:$0xff]  ;;  %v9288_v46 = vld [vmem:[#allocation46_spill] sm:$0xff]  ;;  %v9292_v12 = vld [vmem:[#allocation20_spill] sm:$0xff] }
 0x274   : > { %v1795_v33 = vmax.f32 %v1462_v49, 0.0  ;;  %2685 = vmatprep.subr.bf16.mxu0 %v1864_v17  ;;  %v1797_v5 = vmax.f32 %v1655_v62, 0.0  ;;  %3038 = vmatprep.subr.bf16.mxu1 %v1866_v30  ;;  %v1380_v45 = vadd.f32 %v6467_v35, %v9225_v3  ;;  %v1581_v31 = vadd.f32 %v9285_v16, %v9284_v36  ;;  %v9293_v38 = vld [vmem:[#allocation47_spill] sm:$0xff]  ;;  %v9295_v17 = vld [vmem:[#allocation24_spill] sm:$0xff]  ;;  %v9297_v62 = vld [vmem:[#allocation30_spill] sm:$0xff] }
 0x275   : > { %v6697_v56 = vpop.f32.mrf.mxu0  ;;  %v6702_v25 = vpop.f32.mrf.mxu1  ;;  %v1860_v53 = vpack.c.bf16 %v9282_v7, %v9281_v41  ;;  %v1736_v59 = vmax.f32 %v9286_v27, 0.0  ;;  %v1745_v43 = vmax.f32 %v9287_v22, 0.0  ;;  %v1573_v6 = vadd.f32 %v9288_v46, %v9225_v3  ;;  %v9298_v3 = vld [vmem:[#allocation44_spill] sm:$0xff]  ;;  %v9299_v48 = vld [vmem:[#allocation37_spill] sm:$0xff]  ;;  %v9304_v27 = vld [vmem:[#allocation19_spill] sm:$0xff] }
 0x276   : > { %9278 = vst [vmem:[#allocation53_spill] sm:$0xff] %v6697_v56  ;;  %v6700_v0 = vpack.c.bf16 %v1795_v33, %v1791_v19  ;;  %9280 = vst [vmem:[#allocation55_spill] sm:$0xff] %v6702_v25  ;;  %v6710_v21 = vpack.c.bf16 %v1797_v5, %v1793_v18  ;;  %v1738_v29 = vmax.f32 %v9289_v39, 0.0  ;;  %v1739_v2 = vmax.f32 %v9290_v47, 0.0  ;;  %v9300_v19 = vld [vmem:[#allocation38_spill] sm:$0xff]  ;;  %v9301_v18 = vld [vmem:[#allocation27_spill] sm:$0xff] }
 0x277   : > { %v6712_v1 = vpop.f32.mrf.mxu0  ;;  %2686 = vmatpush1.bf16.msra.mxu0 %v1863_v26  ;;  %v6720_v44 = vpop.f32.mrf.mxu1  ;;  %3039 = vmatpush1.bf16.msra.mxu1 %v1865_v42  ;;  %v1859_v13 = vpack.c.bf16 %v1747_v4, %v1743_v23  ;;  %v1732_v10 = vmax.f32 %v9292_v12, 0.0  ;;  %v1741_v49 = vmax.f32 %v9293_v38, 0.0  ;;  %v1861_v9 = vpack.c.bf16 %v1749_v58, %v1745_v43  ;;  %v9302_v5 = vld [vmem:[#allocation9_spill] sm:$0xff]  ;;  %v9306_v38 = vld [vmem:[#allocation11_spill] sm:$0xff] }
 0x278   : > { %9279 = vst [vmem:[#allocation54_spill] sm:$0xff] %v6700_v0  ;;  %9283 = vst [vmem:[#allocation56_spill] sm:$0xff] %v6710_v21  ;;  %2687 = vmatprep.subr.bf16.mxu0 %v1860_v53  ;;  %3040 = vmatprep.subr.bf16.mxu1 %v1862_v40  ;;  %v9296_v60 = vmax.f32 %v9295_v17, 0.0  ;;  %v1567_v30 = vadd.f32 %v9298_v3, %v9297_v62  ;;  %v1734_v20 = vmax.f32 %v9299_v48, 0.0  ;;  %v1735_v33 = vmax.f32 %v9300_v19, 0.0  ;;  %v9303_v53 = vld [vmem:[#allocation29_spill] sm:$0xff] }
 0x279   : > { %v6726_v35 = vpop.f32.mrf.mxu0  ;;  %v6730_v55 = vpop.f32.mrf.mxu1  ;;  %v1858_v26 = vpack.c.bf16 %v1742_v28, %v1738_v29  ;;  %v1370_v42 = vadd.f32 %v9302_v5, %v9301_v18  ;;  %v1728_v58 = vmax.f32 %v1380_v45, 0.0  ;;  %v1737_v41 = vmax.f32 %v1581_v31, 0.0  ;;  %v9308_v62 = vld [vmem:[#allocation43_spill] sm:$0xff]  ;;  %v9323_v0 = vld [vmem:[#allocation41_spill] sm:$0xff] }
 0x27a   : > { %9291 = vst [vmem:[#allocation35_spill] sm:$0xff] %v6726_v35  ;;  %9294 = vst [vmem:[#allocation14_spill] sm:$0xff] %v6730_v55  ;;  %v1856_v15 = vpack.c.bf16 %v9296_v60, %v1736_v59  ;;  %v1563_v23 = vadd.f32 %v9303_v53, %v9301_v18  ;;  %v1730_v40 = vmax.f32 %v1573_v6, 0.0  ;;  %v1855_v36 = vpack.c.bf16 %v1739_v2, %v1735_v33 }
 0x27b   : > { %v6738_v4 = vpop.f32.mrf.mxu0  ;;  %2688 = vmatpush1.bf16.msra.mxu0 %v1859_v13  ;;  %v6742_v7 = vpop.f32.mrf.mxu1  ;;  %3041 = vmatpush1.bf16.msra.mxu1 %v1861_v9  ;;  %v1724_v59 = vmax.f32 %v9304_v27, 0.0  ;;  %v1857_v28 = vpack.c.bf16 %v1741_v49, %v1737_v41  ;;  %v1852_v43 = vpack.c.bf16 %v1732_v10, %v1728_v58  ;;  %v1726_v45 = vmax.f32 %v1567_v30, 0.0  ;;  %v9307_v9 = vld [vmem:[#allocation12_spill] sm:$0xff]  ;;  %v9309_v30 = vld [vmem:[#allocation45_spill] sm:$0xff] }
 0x27c   : > { %2689 = vmatprep.subr.bf16.mxu0 %v1856_v15  ;;  %3042 = vmatprep.subr.bf16.mxu1 %v1858_v26  ;;  %v1854_v46 = vpack.c.bf16 %v1734_v20, %v1730_v40  ;;  %v1720_v39 = vmax.f32 %v1370_v42, 0.0  ;;  %v1722_v47 = vmax.f32 %v1563_v23, 0.0 }
 0x27d   : > { %v6746_v16 = vpop.f32.mrf.mxu0  ;;  %v6749_v22 = vpop.f32.mrf.mxu1 }
 0x27e   : > { %9305 = vst [vmem:[#allocation36_spill] sm:$0xff] %v6749_v22  ;;  %v1848_v13 = vpack.c.bf16 %v1724_v59, %v1720_v39  ;;  %v1850_v49 = vpack.c.bf16 %v1726_v45, %v1722_v47  ;;  %v6777_v47 = vadd.f32 %v6691_v32, %v6628_v57 }
 0x27f   : > { %v1479_v31 = vpop.f32.mrf.mxu0  ;;  %2690 = vmatpush1.bf16.msra.mxu0 %v1855_v36  ;;  %v1672_v29 = vpop.f32.mrf.mxu1  ;;  %3043 = vmatpush1.bf16.msra.mxu1 %v1857_v28 }
 0x280   : > { %2691 = vmatprep.subr.bf16.mxu0 %v1852_v43  ;;  %3044 = vmatprep.subr.bf16.mxu1 %v1854_v46  ;;  %v6773_v46 = vadd.f32 %v6654_v34, %v6647_v14  ;;  %9311 = vst [vmem:[#allocation46_spill] sm:$0xff] %v6777_v47  ;;  %v9316_v34 = vld [vmem:[#allocation32_spill] sm:$0xff]  ;;  %v9327_v14 = vld [vmem:[#allocation21_spill] sm:$0xff]  ;;  %v9328_v47 = vld [vmem:[#allocation18_spill] sm:$0xff] }
 0x281   : > { %v6751_v6 = vpop.f32.mrf.mxu0  ;;  %v6753_v2 = vpop.f32.mrf.mxu1  ;;  %v6797_v32 = vadd.f32 %v6742_v7, %v9316_v34 }
 0x282   : > { %9310 = vst [vmem:[#allocation49_spill] sm:$0xff] %v6773_v46 }
 0x283   : > { %v1483_v12 = vpop.f32.mrf.mxu0  ;;  %2692 = vmatpush1.bf16.msra.mxu0 %v9306_v38  ;;  %v1676_v10 = vpop.f32.mrf.mxu1  ;;  %3045 = vmatpush1.bf16.msra.mxu1 %v9307_v9  ;;  %v9313_v38 = vld [vmem:[#allocation48_spill] sm:$0xff]  ;;  %9318 = vst [vmem:[#allocation24_spill] sm:$0xff] %v6797_v32 }
 0x284   : > { %2693 = vmatprep.subr.bf16.mxu0 %v1848_v13  ;;  %3046 = vmatprep.subr.bf16.mxu1 %v1850_v49  ;;  %v6781_v13 = vadd.f32 %v6694_v8, %v6628_v57  ;;  %v6785_v49 = vadd.f32 %v6712_v1, %v9313_v38  ;;  %v6789_v9 = vadd.f32 %v6720_v44, %v9313_v38 }
 0x285   : > { %v6757_v17 = vpop.f32.mrf.mxu0  ;;  %v6759_v60 = vpop.f32.mrf.mxu1  ;;  %v6800_v57 = vadd.f32 %v1479_v31, %v9319_v37  ;;  %v6803_v8 = vadd.f32 %v1672_v29, %v9319_v37  ;;  %v6806_v21 = vadd.f32 %v1483_v12, %v9322_v50  ;;  %v6809_v44 = vadd.f32 %v1676_v10, %v9322_v50 }
 0x286   : > { %9312 = vst [vmem:[#allocation33_spill] sm:$0xff] %v6781_v13  ;;  %9314 = vst [vmem:[#allocation34_spill] sm:$0xff] %v6785_v49  ;;  %v9326_v13 = vld [vmem:[#allocation39_spill] sm:$0xff]  ;;  %v9330_v49 = vld [vmem:[#allocation10_spill] sm:$0xff] }
 0x287   : > { %v1489_v15 = vpop.f32.mrf.mxu0  ;;  %2694 = vmatpush1.bf16.msra.mxu0 %v9308_v62  ;;  %v1682_v3 = vpop.f32.mrf.mxu1  ;;  %3047 = vmatpush1.bf16.msra.mxu1 %v9309_v30  ;;  %9315 = vst [vmem:[#allocation20_spill] sm:$0xff] %v6789_v9  ;;  %v6793_v30 = vadd.f32 %v6738_v4, %v9316_v34  ;;  %9320 = vst [vmem:[#allocation30_spill] sm:$0xff] %v6800_v57 }
 0x288   : > { %9321 = vst [vmem:[#allocation44_spill] sm:$0xff] %v6803_v8  ;;  %v6812_v4 = vadd.f32 %v1489_v15, %v9323_v0  ;;  %v6815_v46 = vadd.f32 %v1682_v3, %v9323_v0 }
 0x289   : > { %v6763_v48 = vpop.f32.mrf.mxu0  ;;  %v6765_v20 = vpop.f32.mrf.mxu1  ;;  %9317 = vst [vmem:[#allocation47_spill] sm:$0xff] %v6793_v30 }
 0x28b   : > { %v1493_v19 = vpop.f32.mrf.mxu0  ;;  %v1686_v33 = vpop.f32.mrf.mxu1 }
 0x28c   : > { %v6818_v31 = vadd.f32 %v1493_v19, %v9324_v52  ;;  %v6821_v29 = vadd.f32 %v1686_v33, %v9324_v52 }
 0x28d   : > { %v6767_v26 = vpop.f32.mrf.mxu0  ;;  %v6769_v18 = vpop.f32.mrf.mxu1 }
 0x28f   : > { %v1499_v5 = vpop.f32.mrf.mxu0  ;;  %v1692_v42 = vpop.f32.mrf.mxu1 }
 0x290   : > { %v6824_v54 = vadd.f32 %v1499_v5, %v9325_v24  ;;  %v6827_v12 = vadd.f32 %v1692_v42, %v9325_v24  ;;  %v9329_v42 = vld [vmem:[#allocation16_spill] sm:$0xff] }
 0x291   : > { %v1501_v58 = vpop.f32.mrf.mxu0  ;;  %v1694_v41 = vpop.f32.mrf.mxu1 }
 0x292   : > { %v6830_v15 = vadd.f32 %v1501_v58, %v9326_v13  ;;  %v6833_v3 = vadd.f32 %v1694_v41, %v9326_v13 }
 0x293   : > { %v1503_v53 = vpop.f32.mrf.mxu0  ;;  %v1696_v23 = vpop.f32.mrf.mxu1 }
 0x294   : > { %v6836_v11 = vadd.f32 %v1503_v53, %v9326_v13  ;;  %v6839_v19 = vadd.f32 %v1696_v23, %v9326_v13 }
 0x295   : > { %v1507_v40 = vpop.f32.mrf.mxu0  ;;  %v1700_v36 = vpop.f32.mrf.mxu1 }
 0x296   : > { %v1508_v5 = vadd.f32 %v1507_v40, %v9327_v14 }
 0x297   : > { %v1509_v27 = vpop.f32.mrf.mxu0  ;;  %v1702_v59 = vpop.f32.mrf.mxu1 }
 0x298   : > { %v1510_v13 = vadd.f32 %v1509_v27, %v9327_v14  ;;  %v1703_v40 = vadd.f32 %v1702_v59, %v9327_v14 }
 0x299   : > { %v1511_v28 = vpop.f32.mrf.mxu0  ;;  %v1704_v43 = vpop.f32.mrf.mxu1 }
 0x29a   : > { %v1834_v22 = vmax.f32 %v1703_v40, 0.0  ;;  %v9333_v40 = vld [vmem:[#allocation30_spill] sm:$0xff] }
 0x29b   : > { %v1513_v45 = vpop.f32.mrf.mxu0  ;;  %v1706_v39 = vpop.f32.mrf.mxu1 }
 0x29c   : > { %v1514_v9 = vadd.f32 %v1513_v45, %v9328_v47  ;;  %v1707_v51 = vadd.f32 %v1706_v39, %v9328_v47  ;;  %v1705_v39 = vadd.f32 %v1704_v43, %v9328_v47 }
 0x29d   : > { %v1517_v62 = vpop.f32.mrf.mxu0  ;;  %v1710_v1 = vpop.f32.mrf.mxu1 }
 0x29e   : > { %v1518_v41 = vadd.f32 %v1517_v62, %v9329_v42  ;;  %v1711_v45 = vadd.f32 %v1710_v1, %v9329_v42  ;;  %v1838_v8 = vmax.f32 %v1707_v51, 0.0  ;;  %v1701_v1 = vadd.f32 %v1700_v36, %v9327_v14 }
 0x29f   : > { %v1519_v7 = vpop.f32.mrf.mxu0  ;;  %v1712_v10 = vpop.f32.mrf.mxu1  ;;  %v1498_v51 = vadd.f32 %v6767_v26, %v9325_v24  ;;  %v1492_v36 = vadd.f32 %v6763_v48, %v9324_v52  ;;  %v1685_v26 = vadd.f32 %v6765_v20, %v9324_v52  ;;  %v1829_v48 = vmax.f32 %v6833_v3, 0.0 }
 0x2a0   : > { %v1520_v61 = vadd.f32 %v1519_v7, %v9329_v42  ;;  %v1713_v53 = vadd.f32 %v1712_v10, %v9329_v42  ;;  %v1836_v10 = vmax.f32 %v1514_v9, 0.0  ;;  %v1839_v27 = vmax.f32 %v1518_v41, 0.0 }
 0x2a1   : > { %v1521_v33 = vpop.f32.mrf.mxu0  ;;  %v1714_v58 = vpop.f32.mrf.mxu1  ;;  %v1832_v42 = vmax.f32 %v1510_v13, 0.0  ;;  %v1831_v9 = vmax.f32 %v1508_v5, 0.0  ;;  %v1906_v14 = vpack.c.bf16 %v1838_v8, %v1834_v22  ;;  %v1820_v22 = vmax.f32 %v6818_v31, 0.0 }
 0x2a2   : > { %v1522_v25 = vadd.f32 %v1521_v33, %v9330_v49  ;;  %v1715_v63 = vadd.f32 %v1714_v58, %v9330_v49  ;;  %v1512_v33 = vadd.f32 %v1511_v28, %v9328_v47  ;;  %v1840_v38 = vmax.f32 %v1520_v61, 0.0 }
 0x2a3   : > { %v1523_v23 = vpop.f32.mrf.mxu0  ;;  %v1716_v32 = vpop.f32.mrf.mxu1  ;;  %v1842_v55 = vmax.f32 %v1713_v53, 0.0  ;;  %v1837_v47 = vmax.f32 %v1705_v39, 0.0  ;;  %v1830_v61 = vmax.f32 %v6839_v19, 0.0  ;;  %v1482_v20 = vadd.f32 %v6751_v6, %v9322_v50 }
 0x2a4   : > { %v1524_v7 = vadd.f32 %v1523_v23, %v9330_v49  ;;  %v1843_v56 = vmax.f32 %v1522_v25, 0.0  ;;  %v1717_v62 = vadd.f32 %v1716_v32, %v9330_v49  ;;  %v1845_v58 = vmax.f32 %v1715_v63, 0.0 }
 0x2a5   : > { %v1841_v23 = vmax.f32 %v1711_v45, 0.0  ;;  %v1835_v28 = vmax.f32 %v1512_v33, 0.0  ;;  %v1828_v25 = vmax.f32 %v6836_v11, 0.0  ;;  %v1904_v63 = vpack.c.bf16 %v1836_v10, %v1832_v42  ;;  %v9336_v10 = vld [vmem:[#allocation47_spill] sm:$0xff]  ;;  %v9337_v42 = vld [vmem:[#allocation48_spill] sm:$0xff] }
 0x2a6   : > { %v1844_v30 = vmax.f32 %v1524_v7, 0.0  ;;  %v1846_v59 = vmax.f32 %v1717_v62, 0.0  ;;  %v1907_v35 = vpack.c.bf16 %v1843_v56, %v1839_v27  ;;  %v1691_v56 = vadd.f32 %v6769_v18, %v9325_v24  ;;  %v9334_v7 = vld [vmem:[#allocation14_spill] sm:$0xff] }
 0x2a7   : > { %v1909_v49 = vpack.c.bf16 %v1845_v58, %v1841_v23  ;;  %v1824_v11 = vmax.f32 %v6824_v54, 0.0  ;;  %v1488_v54 = vadd.f32 %v6757_v17, %v9323_v0  ;;  %v1822_v18 = vmax.f32 %v6821_v29, 0.0 }
 0x2a8   : > { %v1908_v57 = vpack.c.bf16 %v1844_v30, %v1840_v38  ;;  %v1910_v43 = vpack.c.bf16 %v1846_v59, %v1842_v55  ;;  %v1833_v55 = vmax.f32 %v1701_v1, 0.0  ;;  %v1826_v38 = vmax.f32 %v6827_v12, 0.0 }
 0x2a9   : > { %v1827_v30 = vmax.f32 %v6830_v15, 0.0  ;;  %v1900_v24 = vpack.c.bf16 %v1828_v25, %v1824_v11  ;;  %v1681_v8 = vadd.f32 %v6759_v60, %v9323_v0  ;;  %v1816_v31 = vmax.f32 %v6812_v4, 0.0 }
 0x2aa   : > { %2695 = vmatprep.subr.bf16.mxu0 %v1908_v57  ;;  %3048 = vmatprep.subr.bf16.mxu1 %v1910_v43  ;;  %v1905_v32 = vpack.c.bf16 %v1837_v47, %v1833_v55  ;;  %v1823_v57 = vmax.f32 %v1498_v51, 0.0  ;;  %v1902_v52 = vpack.c.bf16 %v1830_v61, %v1826_v38  ;;  %v1825_v12 = vmax.f32 %v1691_v56, 0.0  ;;  %v9342_v51 = vld [vmem:[#allocation55_spill] sm:$0xff]  ;;  %v9344_v56 = vld [vmem:[#allocation52_spill] sm:$0xff] }
 0x2ab   : > { %2696 = vmatpush2.bf16.msra.mxu0 %v1907_v35  ;;  %3049 = vmatpush2.bf16.msra.mxu1 %v1909_v49  ;;  %v1903_v35 = vpack.c.bf16 %v1835_v28, %v1831_v9  ;;  %v1675_v15 = vadd.f32 %v6753_v2, %v9322_v50  ;;  %v1818_v17 = vmax.f32 %v6815_v46, 0.0  ;;  %v1819_v29 = vmax.f32 %v1492_v36, 0.0  ;;  %v9331_v50 = vld [vmem:[#allocation35_spill] sm:$0xff]  ;;  %v9332_v46 = vld [vmem:[#allocation36_spill] sm:$0xff]  ;;  %v9340_v49 = vld [vmem:[#allocation25_spill] sm:$0xff] }
 0x2ac   : > { %2697 = vmatprep.subr.bf16.mxu0 %v1904_v63  ;;  %3050 = vmatprep.subr.bf16.mxu1 %v1906_v14  ;;  %v1899_v3 = vpack.c.bf16 %v1827_v30, %v1823_v57  ;;  %v1812_v19 = vmax.f32 %v6806_v21, 0.0  ;;  %v1821_v5 = vmax.f32 %v1685_v26, 0.0  ;;  %v1901_v6 = vpack.c.bf16 %v1829_v48, %v1825_v12  ;;  %v9339_v28 = vld [vmem:[#allocation24_spill] sm:$0xff]  ;;  %v9343_v9 = vld [vmem:[#allocation34_spill] sm:$0xff]  ;;  %v9350_v12 = vld [vmem:[#allocation31_spill] sm:$0xff] }
 0x2ad   : > { %v1896_v41 = vpack.c.bf16 %v1820_v22, %v1816_v31  ;;  %v1478_v0 = vadd.f32 %v6746_v16, %v9319_v37  ;;  %v1814_v60 = vmax.f32 %v6809_v44, 0.0  ;;  %v1815_v4 = vmax.f32 %v1488_v54, 0.0  ;;  %v9335_v16 = vld [vmem:[#allocation44_spill] sm:$0xff]  ;;  %v9347_v54 = vld [vmem:[#allocation23_spill] sm:$0xff] }
 0x2ae   : > { %v1898_v53 = vpack.c.bf16 %v1822_v18, %v1818_v17  ;;  %v1472_v2 = vadd.f32 %v9331_v50, %v9316_v34  ;;  %v1671_v13 = vadd.f32 %v9332_v46, %v9319_v37  ;;  %v1808_v45 = vmax.f32 %v9333_v40, 0.0  ;;  %v9338_v37 = vld [vmem:[#allocation53_spill] sm:$0xff]  ;;  %v9345_v55 = vld [vmem:[#allocation20_spill] sm:$0xff]  ;;  %v9348_v18 = vld [vmem:[#allocation15_spill] sm:$0xff] }
 0x2af   : > { %2698 = vmatpush2.bf16.msra.mxu0 %v1903_v35  ;;  %3051 = vmatpush2.bf16.msra.mxu1 %v1905_v32  ;;  %v1817_v21 = vmax.f32 %v1681_v8, 0.0  ;;  %v1665_v33 = vadd.f32 %v9334_v7, %v9316_v34  ;;  %v1810_v39 = vmax.f32 %v9335_v16, 0.0  ;;  %v1811_v44 = vmax.f32 %v1482_v20, 0.0  ;;  %v9341_v34 = vld [vmem:[#allocation51_spill] sm:$0xff]  ;;  %v9346_v35 = vld [vmem:[#allocation46_spill] sm:$0xff]  ;;  %v9355_v7 = vld [vmem:[#allocation56_spill] sm:$0xff] }
 0x2b0   : > { %2699 = vmatprep.subr.bf16.mxu0 %v1900_v24  ;;  %3052 = vmatprep.subr.bf16.mxu1 %v1902_v52  ;;  %v1895_v62 = vpack.c.bf16 %v1819_v29, %v1815_v4  ;;  %v1804_v58 = vmax.f32 %v9336_v10, 0.0  ;;  %v1813_v27 = vmax.f32 %v1675_v15, 0.0  ;;  %v1892_v1 = vpack.c.bf16 %v1812_v19, %v1808_v45  ;;  %v9349_v52 = vld [vmem:[#allocation33_spill] sm:$0xff]  ;;  %v9351_v15 = vld [vmem:[#allocation28_spill] sm:$0xff]  ;;  %v9352_v19 = vld [vmem:[#allocation22_spill] sm:$0xff] }
 0x2b1   : > { %v1897_v59 = vpack.c.bf16 %v1821_v5, %v1817_v21  ;;  %v1468_v23 = vadd.f32 %v9338_v37, %v9337_v42  ;;  %v1806_v43 = vmax.f32 %v9339_v28, 0.0  ;;  %v1807_v25 = vmax.f32 %v1478_v0, 0.0  ;;  %v9353_v0 = vld [vmem:[#allocation49_spill] sm:$0xff]  ;;  %v9354_v45 = vld [vmem:[#allocation54_spill] sm:$0xff]  ;;  %v5289_v37 = vld [vmem:[%s8973_s5 + $0x54] ss:$8 sps:$4 sm:$0xff]  }
 0x2b2   : > { %v1894_v47 = vpack.c.bf16 %v1814_v60, %v1810_v39  ;;  %v1460_v63 = vadd.f32 %v9341_v34, %v9340_v49  ;;  %v1661_v61 = vadd.f32 %v9342_v51, %v9337_v42  ;;  %v1800_v14 = vmax.f32 %v9343_v9, 0.0  ;;  %v9356_v16 = vld [vmem:[#allocation17_spill] sm:$0xff]  ;;  %v5275_v39 = vld [vmem:[%s8973_s5 + $0x14] ss:$8 sps:$4 sm:$0xff]   ;;  %v5299_v51 = vld [vmem:[%s8973_s5 + $0x90] ss:$8 sps:$4 sm:$0xff]  }
 0x2b3   : > { %2700 = vmatpush2.bf16.msra.mxu0 %v1899_v3  ;;  %3053 = vmatpush2.bf16.msra.mxu1 %v1901_v6  ;;  %v1809_v36 = vmax.f32 %v1671_v13, 0.0  ;;  %v1653_v11 = vadd.f32 %v9344_v56, %v9340_v49  ;;  %v1802_v26 = vmax.f32 %v9345_v55, 0.0  ;;  %v1803_v38 = vmax.f32 %v1472_v2, 0.0  ;;  %v5278_v10 = vld [vmem:[%s8973_s5 + $0x24] ss:$8 sps:$4 sm:$0xff]   ;;  %v6988_v56 = vpop.permute.xlu1 %2116 }
 0x2b4   : > { %2701 = vmatprep.subr.bf16.mxu0 %v1896_v41  ;;  %3054 = vmatprep.subr.bf16.mxu1 %v1898_v53  ;;  %v1891_v30 = vpack.c.bf16 %v1811_v44, %v1807_v25  ;;  %v1796_v22 = vmax.f32 %v9346_v35, 0.0  ;;  %v1805_v48 = vmax.f32 %v1665_v33, 0.0  ;;  %v1888_v24 = vpack.c.bf16 %v1804_v58, %v1800_v14  ;;  %v5272_v33 = vld [vmem:[%s8973_s5] ss:$8 sps:$4 sm:$0xff]   ;;  %v5292_v28 = vld [vmem:[%s8973_s5 + $0x64] ss:$8 sps:$4 sm:$0xff]  }
 0x2b5   : > { %v1893_v32 = vpack.c.bf16 %v1813_v27, %v1809_v36  ;;  %v1647_v57 = vadd.f32 %v9348_v18, %v9347_v54  ;;  %v1798_v20 = vmax.f32 %v9349_v52, 0.0  ;;  %v1799_v8 = vmax.f32 %v1468_v23, 0.0  ;;  %v9357_v44 = vld [vmem:[#allocation50_spill] sm:$0xff]  ;;  %v5281_v27 = vld [vmem:[%s8973_s5 + $0x34] ss:$8 sps:$4 sm:$0xff]   ;;  %v6986_v36 = vpop.permute.xlu0 %2111  ;;  %9359 = vst [vmem:[#allocation38_spill] sm:$0xff] %v6988_v56 }
 0x2b6   : > { %v1890_v31 = vpack.c.bf16 %v1806_v43, %v1802_v26  ;;  %v1450_v17 = vadd.f32 %v9351_v15, %v9350_v12  ;;  %v1792_v29 = vmax.f32 %v1460_v63, 0.0  ;;  %v1801_v3 = vmax.f32 %v1661_v61, 0.0  ;;  %v5280_v58 = vld [vmem:[%s8973_s5 + $0x20] ss:$8 sps:$4 sm:$0xff]   ;;  %v5287_v23 = vld [vmem:[%s8973_s5 + $0x50] ss:$8 sps:$4 sm:$0xff]  }
 0x2b7   : > { %2702 = vmatpush2.bf16.msra.mxu0 %v1895_v62  ;;  %3055 = vmatpush2.bf16.msra.mxu1 %v1897_v59  ;;  %v1643_v5 = vadd.f32 %v9352_v19, %v9350_v12  ;;  %v1794_v6 = vmax.f32 %v1653_v11, 0.0  ;;  %v1887_v41 = vpack.c.bf16 %v1803_v38, %v1799_v8  ;;  %v1788_v60 = vmax.f32 %v9353_v0, 0.0  ;;  %v5277_v62 = vld [vmem:[%s8973_s5 + $0x10] ss:$8 sps:$4 sm:$0xff]   ;;  %v5284_v42 = vld [vmem:[%s8973_s5 + $0x40] ss:$8 sps:$4 sm:$0xff]   ;;  %v6998_v38 = vpop.permute.xlu1 %2276 }
 0x2b8   : > { %2703 = vmatprep.subr.bf16.mxu0 %v1892_v1  ;;  %3056 = vmatprep.subr.bf16.mxu1 %v1894_v47  ;;  %v1889_v4 = vpack.c.bf16 %v1805_v48, %v1801_v3  ;;  %v1884_v53 = vpack.c.bf16 %v1796_v22, %v1792_v29  ;;  %v1790_v50 = vmax.f32 %v1647_v57, 0.0  ;;  %v1784_v46 = vmax.f32 %v1450_v17, 0.0  ;;  %v5283_v59 = vld [vmem:[%s8973_s5 + $0x30] ss:$8 sps:$4 sm:$0xff]   ;;  %v5286_v1 = vld [vmem:[%s8973_s5 + $0x44] ss:$8 sps:$4 sm:$0xff]  }
 0x2b9   : > { %v1886_v2 = vpack.c.bf16 %v1798_v20, %v1794_v6  ;;  %v1786_v13 = vmax.f32 %v1643_v5, 0.0  ;;  %v5290_v43 = vld [vmem:[%s8973_s5 + $0x60] ss:$8 sps:$4 sm:$0xff]   ;;  %v5295_v25 = vld [vmem:[%s8973_s5 + $0x74] ss:$8 sps:$4 sm:$0xff]   ;;  %9358 = vst [vmem:[#allocation37_spill] sm:$0xff] %v6986_v36  ;;  %v6990_v11 = vpop.permute.xlu0 %2271 }
 0x2ba   : > { %v1880_v40 = vpack.c.bf16 %v1788_v60, %v1784_v46  ;;  %v5293_v47 = vld [vmem:[%s8973_s5 + $0x70] ss:$8 sps:$4 sm:$0xff]   ;;  %v5298_v49 = vld [vmem:[%s8973_s5 + $0x84] ss:$8 sps:$4 sm:$0xff]   ;;  %v5296_v34 = vld [vmem:[%s8973_s5 + $0x80] ss:$8 sps:$4 sm:$0xff]  }
 0x2bb   : > { %2704 = vmatpush2.bf16.msra.mxu0 %v1891_v30  ;;  %3057 = vmatpush2.bf16.msra.mxu1 %v1893_v32  ;;  %v1882_v21 = vpack.c.bf16 %v1790_v50, %v1786_v13  ;;  %v5301_v63 = vld [vmem:[%s8973_s5 + $0x94] ss:$8 sps:$4 sm:$0xff]   ;;  %v5304_v61 = vld [vmem:[%s8973_s5 + $0xa4] ss:$8 sps:$4 sm:$0xff]   ;;  %v5302_v9 = vld [vmem:[%s8973_s5 + $0xa0] ss:$8 sps:$4 sm:$0xff]   ;;  %v7002_v35 = vpop.permute.xlu1 %2106 }
 0x2bc   : > { %2705 = vmatprep.subr.bf16.mxu0 %v1888_v24  ;;  %3058 = vmatprep.subr.bf16.mxu1 %v1890_v31  ;;  %v5307_v14 = vld [vmem:[%s8973_s5 + $0xb4] ss:$8 sps:$4 sm:$0xff]   ;;  %9360 = vst [vmem:[#allocation27_spill] sm:$0xff] %v6990_v11  ;;  %v5305_v55 = vld [vmem:[%s8973_s5 + $0xb0] ss:$8 sps:$4 sm:$0xff]   ;;  %9361 = vst [vmem:[#allocation9_spill] sm:$0xff] %v6998_v38 }
 0x2bd   : > { %v5310_v26 = vld [vmem:[%s8973_s5 + $0xc4] ss:$8 sps:$4 sm:$0xff]   ;;  %v7000_v30 = vpop.permute.xlu0 %2101  ;;  %9363 = vst [vmem:[#allocation19_spill] sm:$0xff] %v7002_v35  ;;  %v5308_v22 = vld [vmem:[%s8973_s5 + $0xc0] ss:$8 sps:$4 sm:$0xff]  }
 0x2be   : > { %9362 = vst [vmem:[#allocation29_spill] sm:$0xff] %v7000_v30  ;;  %v5313_v48 = vld [vmem:[%s8973_s5 + $0xd4] ss:$8 sps:$4 sm:$0xff]   ;;  %v5311_v54 = vld [vmem:[%s8973_s5 + $0xd0] ss:$8 sps:$4 sm:$0xff]  }
 0x2bf   : > { %2706 = vmatpush2.bf16.msra.mxu0 %v1887_v41  ;;  %3059 = vmatpush2.bf16.msra.mxu1 %v1889_v4  ;;  %v7012_v24 = vpop.permute.xlu1 %2266  ;;  %v5316_v18 = vld [vmem:[%s8973_s5 + $0xe4] ss:$8 sps:$4 sm:$0xff]   ;;  %v5314_v8 = vld [vmem:[%s8973_s5 + $0xe0] ss:$8 sps:$4 sm:$0xff]   ;;  %v5319_v31 = vld [vmem:[%s8973_s5 + $0xf4] ss:$8 sps:$4 sm:$0xff]  }
 0x2c0   : > { %2707 = vmatprep.subr.bf16.mxu0 %v1884_v53  ;;  %3060 = vmatprep.subr.bf16.mxu1 %v1886_v2  ;;  %9365 = vst [vmem:[#allocation12_spill] sm:$0xff] %v7012_v24  ;;  %v5317_v29 = vld [vmem:[%s8973_s5 + $0xf0] ss:$8 sps:$4 sm:$0xff]   ;;  %v5322_v3 = vld [vmem:[%s8973_s5 + $0x104] ss:$8 sps:$4 sm:$0xff]  }
 0x2c1   : > { %v7010_v32 = vpop.permute.xlu0 %2261  ;;  %v5320_v6 = vld [vmem:[%s8973_s5 + $0x100] ss:$8 sps:$4 sm:$0xff]   ;;  %v5325_v41 = vld [vmem:[%s8973_s5 + $0x114] ss:$8 sps:$4 sm:$0xff]   ;;  %v5323_v53 = vld [vmem:[%s8973_s5 + $0x110] ss:$8 sps:$4 sm:$0xff]  }
 0x2c2   : > { %9364 = vst [vmem:[#allocation11_spill] sm:$0xff] %v7010_v32  ;;  %v5328_v50 = vld [vmem:[%s8973_s5 + $0x124] ss:$8 sps:$4 sm:$0xff]  }
 0x2c3   : > { %2708 = vmatpush2.bf16.msra.mxu0 %v9354_v45  ;;  %3061 = vmatpush2.bf16.msra.mxu1 %v9355_v7  ;;  %v7022_v52 = vpop.permute.xlu1 %2096  ;;  %v5331_v45 = vld [vmem:[%s8973_s5 + $0x134] ss:$8 sps:$4 sm:$0xff]  }
 0x2c4   : > { %2709 = vmatprep.subr.bf16.mxu0 %v1880_v40  ;;  %3062 = vmatprep.subr.bf16.mxu1 %v1882_v21  ;;  %v5326_v40 = vld [vmem:[%s8973_s5 + $0x120] ss:$8 sps:$4 sm:$0xff]  }
 0x2c5   : > { %v7020_v57 = vpop.permute.xlu0 %2091 }
 0x2c6   : > { %9366 = vst [vmem:[#allocation43_spill] sm:$0xff] %v7020_v57 }
 0x2c7   : > { %2710 = vmatpush2.bf16.msra.mxu0 %v9356_v16  ;;  %3063 = vmatpush2.bf16.msra.mxu1 %v9357_v44  ;;  %v7032_v12 = vpop.permute.xlu1 %2256  ;;  %v5334_v16 = vld [vmem:[%s8973_s5 + $0x144] ss:$8 sps:$4 sm:$0xff]  }
 0x2c8   : > { %9368 = vst [vmem:[#allocation32_spill] sm:$0xff] %v7032_v12 }
 0x2c9   : > { %v7024_v20 = vpop.permute.xlu0 %2251 }
 0x2ca   : > { %2712 = vmatmul.mubr.bf16.vlgmr.msra.gmra.mxu0 %v5272_v33  ;;  %3065 = vmatmul.mubr.bf16.vlgmr.msra.gmra.mxu1 %v5272_v33  ;;  %9367 = vst [vmem:[#allocation45_spill] sm:$0xff] %v7024_v20  ;;  %v5329_v33 = vld [vmem:[%s8973_s5 + $0x130] ss:$8 sps:$4 sm:$0xff]  }
 0x2cb   : > { %2721 = vmatprep.mubr.bf16.mxu0 %v5275_v39  ;;  %3074 = vmatprep.mubr.bf16.mxu1 %v5275_v39  ;;  %v7036_v17 = vpop.permute.xlu1 %2086 }
 0x2cd   : > { %v7034_v15 = vpop.permute.xlu0 %2081 }
 0x2cf   : > { %v7046_v5 = vpop.permute.xlu1 %2246 }
 0x2d0   : > { %9370 = vst [vmem:[#allocation26_spill] sm:$0xff] %v7046_v5 }
 0x2d1   : > { %v7044_v19 = vpop.permute.xlu0 %2241 }
 0x2d2   : > { %2722 = vmatmul.mubr.bf16.gmra.mxu0 %v5277_v62  ;;  %3075 = vmatmul.mubr.bf16.gmra.mxu1 %v5277_v62  ;;  %9369 = vst [vmem:[#allocation13_spill] sm:$0xff] %v7044_v19 }
 0x2d3   : > { %2731 = vmatprep.mubr.bf16.mxu0 %v5278_v10  ;;  %3084 = vmatprep.mubr.bf16.mxu1 %v5278_v10  ;;  %v7056_v60 = vpop.permute.xlu1 %2076  ;;  %v5332_v10 = vld [vmem:[%s8973_s5 + $0x140] ss:$8 sps:$4 sm:$0xff]  }
 0x2d5   : > { %v7054_v0 = vpop.permute.xlu0 %2071 }
 0x2d7   : > { %v7066_v2 = vpop.permute.xlu1 %2236 }
 0x2d8   : > { %9372 = vst [vmem:[#allocation42_spill] sm:$0xff] %v7066_v2 }
 0x2d9   : > { %v7058_v4 = vpop.permute.xlu0 %2231 }
 0x2da   : > { %2732 = vmatmul.mubr.bf16.gmra.mxu0 %v5280_v58  ;;  %3085 = vmatmul.mubr.bf16.gmra.mxu1 %v5280_v58  ;;  %9371 = vst [vmem:[#allocation41_spill] sm:$0xff] %v7058_v4  ;;  %v5337_v58 = vld [vmem:[%s8973_s5 + $0x154] ss:$8 sps:$4 sm:$0xff]  }
 0x2db   : > { %2741 = vmatprep.mubr.bf16.mxu0 %v5281_v27  ;;  %3094 = vmatprep.mubr.bf16.mxu1 %v5281_v27  ;;  %v7070_v13 = vpop.permute.xlu1 %2066 }
 0x2dd   : > { %v7068_v46 = vpop.permute.xlu0 %2061 }
 0x2df   : > { %v7080_v7 = vpop.permute.xlu1 %2226 }
 0x2e0   : > { %9374 = vst [vmem:[#allocation39_spill] sm:$0xff] %v7080_v7 }
 0x2e1   : > { %v7078_v21 = vpop.permute.xlu0 %2221 }
 0x2e2   : > { %2742 = vmatmul.mubr.bf16.gmra.mxu0 %v5283_v59  ;;  %3095 = vmatmul.mubr.bf16.gmra.mxu1 %v5283_v59  ;;  %9373 = vst [vmem:[#allocation40_spill] sm:$0xff] %v7078_v21 }
 0x2e3   : > { %2751 = vmatprep.mubr.bf16.mxu0 %v5286_v1  ;;  %3104 = vmatprep.mubr.bf16.mxu1 %v5286_v1  ;;  %v7090_v44 = vpop.permute.xlu1 %2056 }
 0x2e5   : > { %v7088_v39 = vpop.permute.xlu0 %2051 }
 0x2e7   : > { %v7100_v27 = vpop.permute.xlu1 %2216 }
 0x2e8   : > { %9376 = vst [vmem:[#allocation18_spill] sm:$0xff] %v7100_v27 }
 0x2e9   : > { %v7092_v62 = vpop.permute.xlu0 %2211 }
 0x2ea   : > { %2752 = vmatmul.mubr.bf16.gmra.mxu0 %v5284_v42  ;;  %3105 = vmatmul.mubr.bf16.gmra.mxu1 %v5284_v42  ;;  %9375 = vst [vmem:[#allocation21_spill] sm:$0xff] %v7092_v62  ;;  %v5335_v42 = vld [vmem:[%s8973_s5 + $0x150] ss:$8 sps:$4 sm:$0xff]  }
 0x2eb   : > { %2761 = vmatprep.mubr.bf16.mxu0 %v5289_v37  ;;  %3114 = vmatprep.mubr.bf16.mxu1 %v5289_v37  ;;  %v2047_v1 = vpop.permute.xlu1 %2046  ;;  %v5340_v37 = vld [vmem:[%s8973_s5 + $0x164] ss:$8 sps:$4 sm:$0xff]  }
 0x2ed   : > { %v2042_v59 = vpop.permute.xlu0 %2041 }
 0x2f2   : > { %2762 = vmatmul.mubr.bf16.gmra.mxu0 %v5287_v23  ;;  %3115 = vmatmul.mubr.bf16.gmra.mxu1 %v5287_v23  ;;  %v7108_v23 = vpop.permute.xlu0 %2201 }
 0x2f3   : > { %2771 = vmatprep.mubr.bf16.mxu0 %v5292_v28  ;;  %3124 = vmatprep.mubr.bf16.mxu1 %v5292_v28  ;;  %9377 = vst [vmem:[#allocation16_spill] sm:$0xff] %v7108_v23  ;;  %v7110_v28 = vpop.permute.xlu1 %2206 }
 0x2f4   : > { %9378 = vst [vmem:[#allocation10_spill] sm:$0xff] %v7110_v28 }
 0x2fa   : > { %2772 = vmatmul.mubr.bf16.gmra.mxu0 %v5290_v43  ;;  %3125 = vmatmul.mubr.bf16.gmra.mxu1 %v5290_v43  ;;  %v5338_v43 = vld [vmem:[%s8973_s5 + $0x160] ss:$8 sps:$4 sm:$0xff]  }
 0x2fb   : > { %2781 = vmatprep.mubr.bf16.mxu0 %v5295_v25  ;;  %3134 = vmatprep.mubr.bf16.mxu1 %v5295_v25  ;;  %v5343_v25 = vld [vmem:[%s8973_s5 + $0x174] ss:$8 sps:$4 sm:$0xff]  }
 0x302   : > { %2782 = vmatmul.mubr.bf16.gmra.mxu0 %v5293_v47  ;;  %3135 = vmatmul.mubr.bf16.gmra.mxu1 %v5293_v47  ;;  %v7118_v47 = vpop.permute.xlu0 %2191 }
 0x303   : > { %2791 = vmatprep.mubr.bf16.mxu0 %v5298_v49  ;;  %3144 = vmatprep.mubr.bf16.mxu1 %v5298_v49  ;;  %9379 = vst [vmem:[#allocation35_spill] sm:$0xff] %v7118_v47  ;;  %v7120_v49 = vpop.permute.xlu1 %2196 }
 0x304   : > { %9380 = vst [vmem:[#allocation36_spill] sm:$0xff] %v7120_v49 }
 0x30a   : > { %2792 = vmatmul.mubr.bf16.gmra.mxu0 %v5296_v34  ;;  %3145 = vmatmul.mubr.bf16.gmra.mxu1 %v5296_v34  ;;  %v7122_v34 = vpop.permute.xlu0 %2351 }
 0x30b   : > { %2801 = vmatprep.mubr.bf16.mxu0 %v5301_v63  ;;  %3154 = vmatprep.mubr.bf16.mxu1 %v5301_v63  ;;  %9381 = vst [vmem:[#allocation30_spill] sm:$0xff] %v7122_v34  ;;  %v5341_v63 = vld [vmem:[%s8973_s5 + $0x170] ss:$8 sps:$4 sm:$0xff]  }
 0x312   : > { %2802 = vmatmul.mubr.bf16.gmra.mxu0 %v5299_v51  ;;  %3155 = vmatmul.mubr.bf16.gmra.mxu1 %v5299_v51  ;;  %v5346_v51 = vld [vmem:[%s8973_s5 + $0x184] ss:$8 sps:$4 sm:$0xff]  }
 0x313   : > { %2811 = vmatprep.mubr.bf16.mxu0 %v5304_v61  ;;  %3164 = vmatprep.mubr.bf16.mxu1 %v5304_v61  ;;  %v7130_v61 = vpop.permute.xlu1 %2356 }
 0x314   : > { %9382 = vst [vmem:[#allocation14_spill] sm:$0xff] %v7130_v61 }
 0x31a   : > { %2812 = vmatmul.mubr.bf16.gmra.mxu0 %v5302_v9  ;;  %3165 = vmatmul.mubr.bf16.gmra.mxu1 %v5302_v9  ;;  %v7132_v9 = vpop.permute.xlu0 %2181 }
 0x31b   : > { %2821 = vmatprep.mubr.bf16.mxu0 %v5307_v14  ;;  %3174 = vmatprep.mubr.bf16.mxu1 %v5307_v14  ;;  %9383 = vst [vmem:[#allocation44_spill] sm:$0xff] %v7132_v9  ;;  %v7134_v14 = vpop.permute.xlu1 %2186 }
 0x31c   : > { %9384 = vst [vmem:[#allocation47_spill] sm:$0xff] %v7134_v14 }
 0x322   : > { %2822 = vmatmul.mubr.bf16.gmra.mxu0 %v5305_v55  ;;  %3175 = vmatmul.mubr.bf16.gmra.mxu1 %v5305_v55  ;;  %v5344_v55 = vld [vmem:[%s8973_s5 + $0x180] ss:$8 sps:$4 sm:$0xff]  }
 0x323   : > { %2831 = vmatprep.mubr.bf16.mxu0 %v5310_v26  ;;  %3184 = vmatprep.mubr.bf16.mxu1 %v5310_v26  ;;  %v5349_v26 = vld [vmem:[%s8973_s5 + $0x194] ss:$8 sps:$4 sm:$0xff]  }
 0x32a   : > { %2832 = vmatmul.mubr.bf16.gmra.mxu0 %v5308_v22  ;;  %3185 = vmatmul.mubr.bf16.gmra.mxu1 %v5308_v22  ;;  %v7142_v22 = vpop.permute.xlu0 %2341 }
 0x32b   : > { %2841 = vmatprep.mubr.bf16.mxu0 %v5313_v48  ;;  %3194 = vmatprep.mubr.bf16.mxu1 %v5313_v48  ;;  %9385 = vst [vmem:[#allocation48_spill] sm:$0xff] %v7142_v22 }
 0x332   : > { %2842 = vmatmul.mubr.bf16.gmra.mxu0 %v5311_v54  ;;  %3195 = vmatmul.mubr.bf16.gmra.mxu1 %v5311_v54 }
 0x333   : > { %2851 = vmatprep.mubr.bf16.mxu0 %v5316_v18  ;;  %3204 = vmatprep.mubr.bf16.mxu1 %v5316_v18  ;;  %v7144_v18 = vpop.permute.xlu1 %2346 }
 0x334   : > { %9386 = vst [vmem:[#allocation53_spill] sm:$0xff] %v7144_v18 }
 0x33a   : > { %2852 = vmatmul.mubr.bf16.gmra.mxu0 %v5314_v8  ;;  %3205 = vmatmul.mubr.bf16.gmra.mxu1 %v5314_v8 }
 0x33b   : > { %2861 = vmatprep.mubr.bf16.mxu0 %v5319_v31  ;;  %3214 = vmatprep.mubr.bf16.mxu1 %v5319_v31 }
 0x342   : > { %2862 = vmatmul.mubr.bf16.gmra.mxu0 %v5317_v29  ;;  %3215 = vmatmul.mubr.bf16.gmra.mxu1 %v5317_v29 }
 0x343   : > { %2871 = vmatprep.mubr.bf16.mxu0 %v5322_v3  ;;  %3224 = vmatprep.mubr.bf16.mxu1 %v5322_v3 }
 0x34a   : > { %2872 = vmatmul.mubr.bf16.gmra.mxu0 %v5320_v6  ;;  %3225 = vmatmul.mubr.bf16.gmra.mxu1 %v5320_v6 }
 0x34b   : > { %2881 = vmatprep.mubr.bf16.mxu0 %v5325_v41  ;;  %3234 = vmatprep.mubr.bf16.mxu1 %v5325_v41  ;;  %v5347_v41 = vld [vmem:[%s8973_s5 + $0x190] ss:$8 sps:$4 sm:$0xff]  }
 0x352   : > { %2882 = vmatmul.mubr.bf16.gmra.mxu0 %v5323_v53  ;;  %3235 = vmatmul.mubr.bf16.gmra.mxu1 %v5323_v53 }
 0x353   : > { %2891 = vmatprep.mubr.bf16.mxu0 %v5328_v50  ;;  %3244 = vmatprep.mubr.bf16.mxu1 %v5328_v50 }
 0x35a   : > { %2892 = vmatmul.mubr.bf16.gmra.mxu0 %v5326_v40  ;;  %3245 = vmatmul.mubr.bf16.gmra.mxu1 %v5326_v40 }
 0x35b   : > { %2901 = vmatprep.mubr.bf16.mxu0 %v5331_v45  ;;  %3254 = vmatprep.mubr.bf16.mxu1 %v5331_v45  ;;  %v5352_v45 = vld [vmem:[%s8973_s5 + $0x1a4] ss:$8 sps:$4 sm:$0xff]  }
 0x362   : > { %2902 = vmatmul.mubr.bf16.gmra.mxu0 %v5329_v33  ;;  %3255 = vmatmul.mubr.bf16.gmra.mxu1 %v5329_v33  ;;  %v7152_v33 = vpop.permute.xlu0 %2171 }
 0x363   : > { %2911 = vmatprep.mubr.bf16.mxu0 %v5334_v16  ;;  %3264 = vmatprep.mubr.bf16.mxu1 %v5334_v16 }
 0x36a   : > { %2912 = vmatmul.mubr.bf16.gmra.mxu0 %v5332_v10  ;;  %3265 = vmatmul.mubr.bf16.gmra.mxu1 %v5332_v10 }
 0x36b   : > { %2921 = vmatprep.mubr.bf16.mxu0 %v5337_v58  ;;  %3274 = vmatprep.mubr.bf16.mxu1 %v5337_v58 }
 0x372   : > { %2922 = vmatmul.mubr.bf16.gmra.mxu0 %v5335_v42  ;;  %3275 = vmatmul.mubr.bf16.gmra.mxu1 %v5335_v42 }
 0x373   : > { %2931 = vmatprep.mubr.bf16.mxu0 %v5340_v37  ;;  %3284 = vmatprep.mubr.bf16.mxu1 %v5340_v37 }
 0x37a   : > { %2932 = vmatmul.mubr.bf16.gmra.mxu0 %v5338_v43  ;;  %3285 = vmatmul.mubr.bf16.gmra.mxu1 %v5338_v43 }
 0x37b   : > { %2941 = vmatprep.mubr.bf16.mxu0 %v5343_v25  ;;  %3294 = vmatprep.mubr.bf16.mxu1 %v5343_v25 }
 0x382   : > { %2942 = vmatmul.mubr.bf16.gmra.mxu0 %v5341_v63  ;;  %3295 = vmatmul.mubr.bf16.gmra.mxu1 %v5341_v63  ;;  %v7154_v63 = vpop.permute.xlu1 %2176 }
 0x383   : > { %2951 = vmatprep.mubr.bf16.mxu0 %v5346_v51  ;;  %3304 = vmatprep.mubr.bf16.mxu1 %v5346_v51 }
 0x38a   : > { %v2713_v48 = vpop.f32.mrf.mxu0  ;;  %2952 = vmatmul.mubr.bf16.gmra.mxu0 %v5344_v55  ;;  %v3066_v54 = vpop.f32.mrf.mxu1  ;;  %3305 = vmatmul.mubr.bf16.gmra.mxu1 %v5344_v55 }
 0x38b   : > { %2961 = vmatprep.mubr.bf16.mxu0 %v5349_v26  ;;  %3314 = vmatprep.mubr.bf16.mxu1 %v5349_v26  ;;  %v2714_v31 = vadd.f32 %v2713_v48, %v2042_v59  ;;  %v3067_v3 = vadd.f32 %v3066_v54, %v2042_v59 }
 0x38c   : > { %v2715_v8 = vpop.f32.mrf.mxu0  ;;  %v3068_v29 = vpop.f32.mrf.mxu1 }
 0x38d   : > { %v2716_v53 = vadd.f32 %v2715_v8, %v2042_v59  ;;  %v3069_v16 = vadd.f32 %v3068_v29, %v2042_v59  ;;  %v3385_v42 = vmax.f32 %v2714_v31, 0.0  ;;  %v3387_v51 = vmax.f32 %v3067_v3, 0.0 }
 0x38e   : > { %v2717_v6 = vpop.f32.mrf.mxu0  ;;  %v3070_v40 = vpop.f32.mrf.mxu1 }
 0x38f   : > { %v2718_v50 = vadd.f32 %v2717_v6, %v2047_v1  ;;  %v3071_v10 = vadd.f32 %v3070_v40, %v2047_v1  ;;  %v3386_v54 = vmax.f32 %v2716_v53, 0.0  ;;  %v3388_v59 = vmax.f32 %v3069_v16, 0.0 }
 0x390   : > { %v2719_v58 = vpop.f32.mrf.mxu0  ;;  %v3072_v25 = vpop.f32.mrf.mxu1 }
 0x391   : > { %v3389_v37 = vmax.f32 %v2718_v50, 0.0  ;;  %v2720_v43 = vadd.f32 %v2719_v58, %v2047_v1  ;;  %v3391_v55 = vmax.f32 %v3071_v10, 0.0  ;;  %v3073_v26 = vadd.f32 %v3072_v25, %v2047_v1  ;;  %v7163_v1 = vpop.permute.xlu0 %2331  ;;  %v7176_v25 = vpop.permute.xlu1 %2336 }
 0x392   : > { %v2723_v48 = vpop.f32.mrf.mxu0  ;;  %2962 = vmatmul.mubr.bf16.gmra.mxu0 %v5347_v41  ;;  %v3076_v22 = vpop.f32.mrf.mxu1  ;;  %3315 = vmatmul.mubr.bf16.gmra.mxu1 %v5347_v41  ;;  %9388 = vst [vmem:[#allocation25_spill] sm:$0xff] %v7163_v1  ;;  %v5350_v41 = vld [vmem:[%s8973_s5 + $0x1a0] ss:$8 sps:$4 sm:$0xff]   ;;  %9390 = vst [vmem:[#allocation55_spill] sm:$0xff] %v7176_v25 }
 0x393   : > { %v7156_v8 = vpack.c.bf16 %v3389_v37, %v3385_v42  ;;  %v3390_v6 = vmax.f32 %v2720_v43, 0.0  ;;  %2971 = vmatprep.mubr.bf16.mxu0 %v5352_v45  ;;  %v7158_v29 = vpack.c.bf16 %v3391_v55, %v3387_v51  ;;  %v3392_v31 = vmax.f32 %v3073_v26, 0.0  ;;  %3324 = vmatprep.mubr.bf16.mxu1 %v5352_v45  ;;  %v5355_v43 = vld [vmem:[%s8973_s5 + $0x1b4] ss:$8 sps:$4 sm:$0xff]  }
 0x394   : > { %v2725_v50 = vpop.f32.mrf.mxu0  ;;  %v2724_v40 = vadd.f32 %v2723_v48, %v7088_v39  ;;  %v3078_v3 = vpop.f32.mrf.mxu1  ;;  %v3077_v53 = vadd.f32 %v3076_v22, %v7088_v39 }
 0x395   : > { %9387 = vst [vmem:[#allocation24_spill] sm:$0xff] %v7158_v29  ;;  %v7161_v10 = vpack.c.bf16 %v3390_v6, %v3386_v54  ;;  %v7169_v16 = vpack.c.bf16 %v3392_v31, %v3388_v59  ;;  %v2726_v42 = vadd.f32 %v2725_v50, %v7088_v39  ;;  %v3079_v22 = vadd.f32 %v3078_v3, %v7088_v39  ;;  %v7186_v3 = vpop.permute.xlu0 %2161 }
 0x396   : > { %v2727_v58 = vpop.f32.mrf.mxu0  ;;  %v3080_v37 = vpop.f32.mrf.mxu1  ;;  %v3393_v26 = vmax.f32 %v2724_v40, 0.0  ;;  %v3395_v59 = vmax.f32 %v3077_v53, 0.0  ;;  %9391 = vst [vmem:[#allocation34_spill] sm:$0xff] %v7186_v3 }
 0x397   : > { %9389 = vst [vmem:[#allocation51_spill] sm:$0xff] %v7169_v16  ;;  %v2728_v45 = vadd.f32 %v2727_v58, %v7090_v44  ;;  %v3081_v51 = vadd.f32 %v3080_v37, %v7090_v44  ;;  %v3394_v1 = vmax.f32 %v2726_v42, 0.0  ;;  %v3396_v40 = vmax.f32 %v3079_v22, 0.0 }
 0x398   : > { %v2729_v55 = vpop.f32.mrf.mxu0  ;;  %v3082_v6 = vpop.f32.mrf.mxu1 }
 0x399   : > { %v3397_v48 = vmax.f32 %v2728_v45, 0.0  ;;  %v2730_v54 = vadd.f32 %v2729_v55, %v7090_v44  ;;  %v3399_v31 = vmax.f32 %v3081_v51, 0.0  ;;  %v3083_v50 = vadd.f32 %v3082_v6, %v7090_v44  ;;  %v7194_v55 = vpop.permute.xlu1 %2166 }
 0x39a   : > { %v7182_v58 = vpop.f32.mrf.mxu0  ;;  %2972 = vmatmul.mubr.bf16.gmra.mxu0 %v5350_v41  ;;  %v3086_v39 = vpop.f32.mrf.mxu1  ;;  %3325 = vmatmul.mubr.bf16.gmra.mxu1 %v5350_v41  ;;  %9393 = vst [vmem:[#allocation20_spill] sm:$0xff] %v7194_v55  ;;  %v5353_v41 = vld [vmem:[%s8973_s5 + $0x1b0] ss:$8 sps:$4 sm:$0xff]  }
 0x39b   : > { %v7184_v61 = vpack.c.bf16 %v3397_v48, %v3393_v26  ;;  %v3398_v25 = vmax.f32 %v2730_v54, 0.0  ;;  %2981 = vmatprep.mubr.bf16.mxu0 %v5355_v43  ;;  %v7188_v45 = vpack.c.bf16 %v3399_v31, %v3395_v59  ;;  %v3400_v37 = vmax.f32 %v3083_v50, 0.0  ;;  %3334 = vmatprep.mubr.bf16.mxu1 %v5355_v43  ;;  %v5358_v43 = vld [vmem:[%s8973_s5 + $0x1c4] ss:$8 sps:$4 sm:$0xff]   ;;  %v7211_v59 = vpop.permute.xlu0 %2321 }
 0x39c   : > { %v7190_v53 = vpop.f32.mrf.mxu0  ;;  %v3088_v44 = vpop.f32.mrf.mxu1  ;;  %v3087_v42 = vadd.f32 %v3086_v39, %v7068_v46  ;;  %9395 = vst [vmem:[#allocation23_spill] sm:$0xff] %v7211_v59 }
 0x39d   : > { %9392 = vst [vmem:[#allocation52_spill] sm:$0xff] %v7188_v45  ;;  %v7192_v51 = vpack.c.bf16 %v3398_v25, %v3394_v1  ;;  %v7202_v22 = vpack.c.bf16 %v3400_v37, %v3396_v40  ;;  %v3089_v1 = vadd.f32 %v3088_v44, %v7068_v46  ;;  %v7216_v34 = vpop.permute.xlu1 %2326 }
 0x39e   : > { %v7197_v26 = vpop.f32.mrf.mxu0  ;;  %v3090_v48 = vpop.f32.mrf.mxu1  ;;  %v3403_v31 = vmax.f32 %v3087_v42, 0.0  ;;  %9396 = vst [vmem:[#allocation15_spill] sm:$0xff] %v7216_v34 }
 0x39f   : > { %9394 = vst [vmem:[#allocation46_spill] sm:$0xff] %v7202_v22  ;;  %v3091_v25 = vadd.f32 %v3090_v48, %v7070_v13  ;;  %v3404_v44 = vmax.f32 %v3089_v1, 0.0  ;;  %v5361_v1 = vld [vmem:[%s8973_s5 + $0x1d4] ss:$8 sps:$4 sm:$0xff]  }
 0x3a0   : > { %v7209_v54 = vpop.f32.mrf.mxu0  ;;  %v3092_v6 = vpop.f32.mrf.mxu1 }
 0x3a1   : > { %v3407_v50 = vmax.f32 %v3091_v25, 0.0  ;;  %v3093_v39 = vadd.f32 %v3092_v6, %v7070_v13  ;;  %v5356_v6 = vld [vmem:[%s8973_s5 + $0x1c0] ss:$8 sps:$4 sm:$0xff]   ;;  %v7239_v34 = vpop.permute.xlu1 %2156 }
 0x3a2   : > { %v7214_v40 = vpop.f32.mrf.mxu0  ;;  %2982 = vmatmul.mubr.bf16.gmra.mxu0 %v5353_v41  ;;  %v3096_v37 = vpop.f32.mrf.mxu1  ;;  %3335 = vmatmul.mubr.bf16.gmra.mxu1 %v5353_v41  ;;  %9400 = vst [vmem:[#allocation22_spill] sm:$0xff] %v7239_v34 }
 0x3a3   : > { %2991 = vmatprep.mubr.bf16.mxu0 %v5358_v43  ;;  %v7218_v18 = vpack.c.bf16 %v3407_v50, %v3403_v31  ;;  %v3408_v48 = vmax.f32 %v3093_v39, 0.0  ;;  %3344 = vmatprep.mubr.bf16.mxu1 %v5358_v43  ;;  %v3097_v42 = vadd.f32 %v3096_v37, %v7054_v0  ;;  %v7233_v31 = vpop.permute.xlu0 %2151 }
 0x3a4   : > { %v7220_v29 = vpop.f32.mrf.mxu0  ;;  %v3098_v59 = vpop.f32.mrf.mxu1  ;;  %9399 = vst [vmem:[#allocation28_spill] sm:$0xff] %v7233_v31 }
 0x3a5   : > { %9397 = vst [vmem:[#allocation33_spill] sm:$0xff] %v7218_v18  ;;  %v7228_v41 = vpack.c.bf16 %v3408_v48, %v3404_v44  ;;  %v3099_v43 = vadd.f32 %v3098_v59, %v7054_v0  ;;  %v3411_v12 = vmax.f32 %v3097_v42, 0.0 }
 0x3a6   : > { %v7223_v25 = vpop.f32.mrf.mxu0  ;;  %v3100_v20 = vpop.f32.mrf.mxu1 }
 0x3a7   : > { %9398 = vst [vmem:[#allocation31_spill] sm:$0xff] %v7228_v41  ;;  %v3101_v50 = vadd.f32 %v3100_v20, %v7056_v60  ;;  %v3412_v45 = vmax.f32 %v3099_v43, 0.0  ;;  %v7250_v24 = vpop.permute.xlu0 %2311 }
 0x3a8   : > { %v7237_v39 = vpop.f32.mrf.mxu0  ;;  %v3102_v37 = vpop.f32.mrf.mxu1  ;;  %9403 = vst [vmem:[#allocation56_spill] sm:$0xff] %v7250_v24 }
 0x3a9   : > { %v3415_v16 = vmax.f32 %v3101_v50, 0.0  ;;  %v3103_v44 = vadd.f32 %v3102_v37, %v7056_v60 }
 0x3aa   : > { %v7242_v48 = vpop.f32.mrf.mxu0  ;;  %2992 = vmatmul.mubr.bf16.gmra.mxu0 %v5356_v6  ;;  %v3106_v32 = vpop.f32.mrf.mxu1  ;;  %3345 = vmatmul.mubr.bf16.gmra.mxu1 %v5356_v6  ;;  %v5359_v6 = vld [vmem:[%s8973_s5 + $0x1d0] ss:$8 sps:$4 sm:$0xff]  }
 0x3ab   : > { %3001 = vmatprep.mubr.bf16.mxu0 %v5361_v1  ;;  %v7244_v38 = vpack.c.bf16 %v3415_v16, %v3411_v12  ;;  %v3416_v59 = vmax.f32 %v3103_v44, 0.0  ;;  %3354 = vmatprep.mubr.bf16.mxu1 %v5361_v1  ;;  %v3107_v42 = vadd.f32 %v3106_v32, %v7034_v15  ;;  %v5364_v16 = vld [vmem:[%s8973_s5 + $0x1e4] ss:$8 sps:$4 sm:$0xff]   ;;  %v7263_v1 = vpop.permute.xlu1 %2316 }
 0x3ac   : > { %v7246_v20 = vpop.f32.mrf.mxu0  ;;  %v7248_v11 = vpop.f32.mrf.mxu1  ;;  %9405 = vst [vmem:[#allocation50_spill] sm:$0xff] %v7263_v1 }
 0x3ad   : > { %9401 = vst [vmem:[#allocation49_spill] sm:$0xff] %v7244_v38  ;;  %9402 = vst [vmem:[#allocation54_spill] sm:$0xff] %v7248_v11  ;;  %v7258_v37 = vpack.c.bf16 %v3416_v59, %v3412_v45  ;;  %v3419_v24 = vmax.f32 %v3107_v42, 0.0  ;;  %v7274_v59 = vpop.permute.xlu0 %2141  ;;  %v5362_v42 = vld [vmem:[%s8973_s5 + $0x1e0] ss:$8 sps:$4 sm:$0xff]  }
 0x3ae   : > { %v7253_v50 = vpop.f32.mrf.mxu0  ;;  %v3110_v12 = vpop.f32.mrf.mxu1 }
 0x3af   : > { %9404 = vst [vmem:[#allocation17_spill] sm:$0xff] %v7258_v37  ;;  %v3111_v43 = vadd.f32 %v3110_v12, %v7036_v17  ;;  %v7280_v38 = vpop.permute.xlu1 %2146 }
 0x3b0   : > { %v7266_v44 = vpop.f32.mrf.mxu0  ;;  %v7268_v32 = vpop.f32.mrf.mxu1 }
 0x3b1   : > { %9406 = vst [vmem:[#allocation57_spill] sm:$0xff] %v7268_v32  ;;  %v3423_v22 = vmax.f32 %v3111_v43, 0.0 }
 0x3b2   : > { %v7270_v18 = vpop.f32.mrf.mxu0  ;;  %3002 = vmatmul.mubr.bf16.gmra.mxu0 %v5359_v6  ;;  %v7272_v45 = vpop.f32.mrf.mxu1  ;;  %3355 = vmatmul.mubr.bf16.gmra.mxu1 %v5359_v6  ;;  %v5367_v6 = vld [vmem:[%s8973_s5 + $0x1f4] ss:$8 sps:$4 sm:$0xff]  }
 0x3b3   : > { %9407 = vst [vmem:[#allocation58_spill] sm:$0xff] %v7272_v45  ;;  %3011 = vmatprep.mubr.bf16.mxu0 %v5364_v16  ;;  %v7276_v41 = vpack.c.bf16 %v3423_v22, %v3419_v24  ;;  %3364 = vmatprep.mubr.bf16.mxu1 %v5364_v16  ;;  %v7292_v22 = vpop.permute.xlu0 %2301  ;;  %v7296_v45 = vpop.permute.xlu1 %2306 }
 0x3b4   : > { %v2765_v1 = vpop.f32.mrf.mxu0  ;;  %v7278_v12 = vpop.f32.mrf.mxu1  ;;  %9412 = vst [vmem:[#allocation63_spill] sm:$0xff] %v7292_v22  ;;  %9414 = vst [vmem:[#allocation65_spill] sm:$0xff] %v7296_v45  ;;  %v5370_v22 = vld [vmem:[%s8975_s7 + $0x4] ss:$16 sps:$4 sm:$0xff]  }
 0x3b5   : > { %9408 = vst [vmem:[#allocation59_spill] sm:$0xff] %v7276_v41  ;;  %9409 = vst [vmem:[#allocation60_spill] sm:$0xff] %v7278_v12  ;;  %v5365_v12 = vld [vmem:[%s8973_s5 + $0x1f0] ss:$8 sps:$4 sm:$0xff]  }
 0x3b6   : > { %v2767_v37 = vpop.f32.mrf.mxu0  ;;  %v7285_v43 = vpop.f32.mrf.mxu1 }
 0x3b7   : > { %9410 = vst [vmem:[#allocation61_spill] sm:$0xff] %v7285_v43  ;;  %v7312_v45 = vpop.permute.xlu1 %2136 }
 0x3b8   : > { %v2769_v5 = vpop.f32.mrf.mxu0  ;;  %v7290_v24 = vpop.f32.mrf.mxu1 }
 0x3b9   : > { %9411 = vst [vmem:[#allocation62_spill] sm:$0xff] %v7290_v24 }
 0x3ba   : > { %v2773_v16 = vpop.f32.mrf.mxu0  ;;  %3012 = vmatmul.mubr.bf16.gmra.mxu0 %v5362_v42  ;;  %v7294_v41 = vpop.f32.mrf.mxu1  ;;  %3365 = vmatmul.mubr.bf16.gmra.mxu1 %v5362_v42 }
 0x3bb   : > { %9413 = vst [vmem:[#allocation64_spill] sm:$0xff] %v7294_v41  ;;  %3021 = vmatprep.mubr.bf16.mxu0 %v5367_v6  ;;  %3374 = vmatprep.mubr.bf16.mxu1 %v5367_v6  ;;  %v7308_v41 = vpop.permute.xlu0 %2131  ;;  %v7325_v31 = vpop.permute.xlu1 %2296 }
 0x3bc   : > { %v2775_v11 = vpop.f32.mrf.mxu0  ;;  %v7298_v19 = vpop.f32.mrf.mxu1  ;;  %9422 = vst [vmem:[#allocation73_spill] sm:$0xff] %v7325_v31 }
 0x3bd   : > { %9415 = vst [vmem:[#allocation66_spill] sm:$0xff] %v7298_v19 }
 0x3be   : > { %v2777_v43 = vpop.f32.mrf.mxu0  ;;  %v7303_v32 = vpop.f32.mrf.mxu1 }
 0x3bf   : > { %9416 = vst [vmem:[#allocation67_spill] sm:$0xff] %v7303_v32  ;;  %v7318_v32 = vpop.permute.xlu0 %2291 }
 0x3c0   : > { %v2779_v42 = vpop.f32.mrf.mxu0  ;;  %v7310_v24 = vpop.f32.mrf.mxu1  ;;  %9420 = vst [vmem:[#allocation71_spill] sm:$0xff] %v7318_v32  ;;  %v2778_v32 = vadd.f32 %v2777_v43, %v7002_v35 }
 0x3c1   : > { %9417 = vst [vmem:[#allocation68_spill] sm:$0xff] %v7310_v24  ;;  %v2780_v21 = vadd.f32 %v2779_v42, %v7002_v35 }
 0x3c2   : > { %v2783_v6 = vpop.f32.mrf.mxu0  ;;  %3022 = vmatmul.mubr.bf16.gmra.mxu0 %v5365_v12  ;;  %v7314_v19 = vpop.f32.mrf.mxu1  ;;  %3375 = vmatmul.mubr.bf16.gmra.mxu1 %v5365_v12 }
 0x3c3   : > { %9418 = vst [vmem:[#allocation69_spill] sm:$0xff] %v7314_v19  ;;  %4089 = vmatprep.mubr.bf16.mxu0 %v5370_v22  ;;  %v2784_v19 = vadd.f32 %v2783_v6, %v6986_v36  ;;  %v2776_v22 = vadd.f32 %v2775_v11, %v7000_v30  ;;  %v7334_v31 = vpop.permute.xlu0 %2121  ;;  %v2774_v6 = vadd.f32 %v2773_v16, %v7000_v30 }
 0x3c4   : > { %v2785_v2 = vpop.f32.mrf.mxu0  ;;  %v7316_v4 = vpop.f32.mrf.mxu1  ;;  %9424 = vst [vmem:[#allocation75_spill] sm:$0xff] %v7334_v31 }
 0x3c5   : > { %9419 = vst [vmem:[#allocation70_spill] sm:$0xff] %v7316_v4  ;;  %v2786_v27 = vadd.f32 %v2785_v2, %v6986_v36  ;;  %v2770_v2 = vadd.f32 %v2769_v5, %v7022_v52  ;;  %v3441_v36 = vmax.f32 %v2784_v19, 0.0  ;;  %v7343_v5 = vpop.permute.xlu1 %2126  ;;  %v2760_v19 = vadd.f32 %v7266_v44, %v7036_v17 }
 0x3c6   : > { %v2787_v7 = vpop.f32.mrf.mxu0  ;;  %v7323_v62 = vpop.f32.mrf.mxu1  ;;  %v2758_v44 = vadd.f32 %v7253_v50, %v7036_v17  ;;  %v2754_v50 = vadd.f32 %v7242_v48, %v7034_v15 }
 0x3c7   : > { %v2788_v24 = vadd.f32 %v2787_v7, %v6988_v56  ;;  %9421 = vst [vmem:[#allocation72_spill] sm:$0xff] %v7323_v62  ;;  %v3438_v7 = vmax.f32 %v2780_v21, 0.0  ;;  %v3442_v28 = vmax.f32 %v2786_v27, 0.0  ;;  %v3437_v21 = vmax.f32 %v2778_v32, 0.0 }
 0x3c8   : > { %v2789_v12 = vpop.f32.mrf.mxu0  ;;  %v7330_v34 = vpop.f32.mrf.mxu1  ;;  %v3430_v30 = vmax.f32 %v2770_v2, 0.0 }
 0x3c9   : > { %v2790_v4 = vadd.f32 %v2789_v12, %v6988_v56  ;;  %9423 = vst [vmem:[#allocation74_spill] sm:$0xff] %v7330_v34  ;;  %v3445_v42 = vmax.f32 %v2788_v24, 0.0  ;;  %v2766_v12 = vadd.f32 %v2765_v1, %v7020_v57  ;;  %v3434_v34 = vmax.f32 %v2776_v22, 0.0 }
 0x3ca   : > { %v2793_v3 = vpop.f32.mrf.mxu0  ;;  %v3146_v55 = vpop.f32.mrf.mxu1 }
 0x3cb   : > { %v3446_v62 = vmax.f32 %v2790_v4, 0.0  ;;  %v2794_v43 = vadd.f32 %v2793_v3, %v7334_v31  ;;  %v2768_v4 = vadd.f32 %v2767_v37, %v7022_v52  ;;  %v3669_v27 = vpack.c.bf16 %v3445_v42, %v3441_v36 }
 0x3cc   : > { %v7337_v11 = vpop.f32.mrf.mxu0  ;;  %v7341_v24 = vpop.f32.mrf.mxu1  ;;  %v3147_v56 = vadd.f32 %v3146_v55, %v7334_v31  ;;  %v3666_v3 = vpack.c.bf16 %v3438_v7, %v3434_v34  ;;  %v3433_v37 = vmax.f32 %v2774_v6, 0.0  ;;  %v3426_v32 = vmax.f32 %v2766_v12, 0.0 }
 0x3cd   : > { %9425 = vst [vmem:[#allocation76_spill] sm:$0xff] %v7341_v24  ;;  %v3670_v35 = vpack.c.bf16 %v3446_v62, %v3442_v28  ;;  %v2756_v62 = vadd.f32 %v7246_v20, %v7034_v15  ;;  %v2764_v28 = vadd.f32 %v7270_v18, %v7020_v57  ;;  %v3449_v42 = vmax.f32 %v2794_v43, 0.0 }
 0x3ce   : > { %v2797_v16 = vpop.f32.mrf.mxu0  ;;  %v3150_v22 = vpop.f32.mrf.mxu1  ;;  %v3429_v34 = vmax.f32 %v2768_v4, 0.0  ;;  %v3665_v20 = vpack.c.bf16 %v3437_v21, %v3433_v37  ;;  %v3451_v7 = vmax.f32 %v3147_v56, 0.0  ;;  %v2750_v6 = vadd.f32 %v7237_v39, %v7056_v60 }
 0x3cf   : > { %v2798_v1 = vadd.f32 %v2797_v16, %v7343_v5  ;;  %4057 = vmatprep.subr.bf16.mxu0 %v3670_v35  ;;  %v3151_v36 = vadd.f32 %v3150_v22, %v7343_v5  ;;  %v3422_v22 = vmax.f32 %v2760_v19, 0.0  ;;  %v3662_v57 = vpack.c.bf16 %v3430_v30, %v3426_v32 }
 0x3d0   : > { %v7355_v55 = vpop.f32.mrf.mxu0  ;;  %4058 = vmatpush1.bf16.msra.mxu0 %v3669_v27  ;;  %v7359_v35 = vpop.f32.mrf.mxu1  ;;  %v3425_v12 = vmax.f32 %v2764_v28, 0.0  ;;  %v2746_v56 = vadd.f32 %v7220_v29, %v7054_v0  ;;  %v3418_v4 = vmax.f32 %v2756_v62, 0.0  ;;  %v2748_v30 = vadd.f32 %v7223_v25, %v7056_v60 }
 0x3d1   : > { %v3453_v2 = vmax.f32 %v2798_v1, 0.0  ;;  %9426 = vst [vmem:[#allocation77_spill] sm:$0xff] %v7359_v35  ;;  %4059 = vmatprep.subr.bf16.mxu0 %v3666_v3  ;;  %v3455_v16 = vmax.f32 %v3151_v36, 0.0  ;;  %v3421_v19 = vmax.f32 %v2758_v44, 0.0  ;;  %v2740_v37 = vadd.f32 %v7209_v54, %v7070_v13 }
 0x3d2   : > { %v2803_v18 = vpop.f32.mrf.mxu0  ;;  %v3156_v27 = vpop.f32.mrf.mxu1  ;;  %v3661_v48 = vpack.c.bf16 %v3429_v34, %v3425_v12  ;;  %v3414_v36 = vmax.f32 %v2750_v6, 0.0  ;;  %v3658_v32 = vpack.c.bf16 %v3422_v22, %v3418_v4  ;;  %v3417_v60 = vmax.f32 %v2754_v50, 0.0 }
 0x3d3   : > { %v7363_v24 = vpack.c.bf16 %v3453_v2, %v3449_v42  ;;  %v7367_v43 = vpack.c.bf16 %v3455_v16, %v3451_v7  ;;  %v2804_v39 = vadd.f32 %v2803_v18, %v7308_v41  ;;  %v3157_v3 = vadd.f32 %v3156_v27, %v7308_v41 }
 0x3d4   : > { %v7369_v1 = vpop.f32.mrf.mxu0  ;;  %4060 = vmatpush1.bf16.msra.mxu0 %v3665_v20  ;;  %v7374_v21 = vpop.f32.mrf.mxu1  ;;  %v2736_v42 = vadd.f32 %v7190_v53, %v7068_v46  ;;  %v2738_v54 = vadd.f32 %v7197_v26, %v7070_v13  ;;  %v3410_v2 = vmax.f32 %v2746_v56, 0.0  ;;  %v3413_v16 = vmax.f32 %v2748_v30, 0.0 }
 0x3d5   : > { %9427 = vst [vmem:[#allocation78_spill] sm:$0xff] %v7367_v43  ;;  %9428 = vst [vmem:[#allocation79_spill] sm:$0xff] %v7374_v21  ;;  %4061 = vmatprep.subr.bf16.mxu0 %v3662_v57  ;;  %v2744_v57 = vadd.f32 %v7214_v40, %v7054_v0  ;;  %v3457_v34 = vmax.f32 %v2804_v39, 0.0  ;;  %v3657_v53 = vpack.c.bf16 %v3421_v19, %v3417_v60  ;;  %v3459_v18 = vmax.f32 %v3157_v3, 0.0 }
 0x3d6   : > { %v2807_v28 = vpop.f32.mrf.mxu0  ;;  %v3160_v62 = vpop.f32.mrf.mxu1  ;;  %v3406_v40 = vmax.f32 %v2740_v37, 0.0  ;;  %v3654_v50 = vpack.c.bf16 %v3414_v36, %v3410_v2  ;;  %v2734_v13 = vadd.f32 %v7182_v58, %v7068_v46  ;;  %v3402_v4 = vmax.f32 %v2736_v42, 0.0 }
 0x3d7   : > { %v2808_v29 = vadd.f32 %v2807_v28, %v7312_v45  ;;  %v3161_v25 = vadd.f32 %v3160_v62, %v7312_v45  ;;  %v3409_v26 = vmax.f32 %v2744_v57, 0.0  ;;  %v3405_v30 = vmax.f32 %v2738_v54, 0.0 }
 0x3d8   : > { %v7387_v44 = vpop.f32.mrf.mxu0  ;;  %4062 = vmatpush1.bf16.msra.mxu0 %v3661_v48  ;;  %v7391_v7 = vpop.f32.mrf.mxu1  ;;  %v3650_v37 = vpack.c.bf16 %v3406_v40, %v3402_v4  ;;  %v3401_v36 = vmax.f32 %v2734_v13, 0.0 }
 0x3d9   : > { %v3461_v20 = vmax.f32 %v2808_v29, 0.0  ;;  %4063 = vmatprep.subr.bf16.mxu0 %v3658_v32  ;;  %v3463_v6 = vmax.f32 %v3161_v25, 0.0  ;;  %v3653_v19 = vpack.c.bf16 %v3413_v16, %v3409_v26 }
 0x3da   : > { %v7393_v0 = vpop.f32.mrf.mxu0  ;;  %v3166_v27 = vpop.f32.mrf.mxu1  ;;  %v3649_v62 = vpack.c.bf16 %v3405_v30, %v3401_v36 }
 0x3db   : > { %v7395_v22 = vpack.c.bf16 %v3461_v20, %v3457_v34  ;;  %v7399_v12 = vpack.c.bf16 %v3463_v6, %v3459_v18  ;;  %v3167_v48 = vadd.f32 %v3166_v27, %v7274_v59 }
 0x3dc   : > { %v7401_v56 = vpop.f32.mrf.mxu0  ;;  %4064 = vmatpush1.bf16.msra.mxu0 %v3657_v53  ;;  %v7403_v39 = vpop.f32.mrf.mxu1 }
 0x3dd   : > { %9429 = vst [vmem:[#allocation80_spill] sm:$0xff] %v7399_v12  ;;  %4065 = vmatprep.subr.bf16.mxu0 %v3654_v50  ;;  %v3467_v32 = vmax.f32 %v3167_v48, 0.0 }
 0x3de   : > { %v7406_v3 = vpop.f32.mrf.mxu0  ;;  %v3170_v28 = vpop.f32.mrf.mxu1 }
 0x3df   : > { %v3171_v46 = vadd.f32 %v3170_v28, %v7280_v38 }
 0x3e0   : > { %v7409_v58 = vpop.f32.mrf.mxu0  ;;  %4066 = vmatpush1.bf16.msra.mxu0 %v3653_v19  ;;  %v7411_v29 = vpop.f32.mrf.mxu1 }
 0x3e1   : > { %4067 = vmatprep.subr.bf16.mxu0 %v3650_v37  ;;  %v3471_v42 = vmax.f32 %v3171_v46, 0.0 }
 0x3e2   : > { %v7413_v57 = vpop.f32.mrf.mxu0  ;;  %v7415_v60 = vpop.f32.mrf.mxu1 }
 0x3e3   : > { %v7417_v25 = vpack.c.bf16 %v3471_v42, %v3467_v32 }
 0x3e4   : > { %v7419_v54 = vpop.f32.mrf.mxu0  ;;  %4068 = vmatpush1.bf16.msra.mxu0 %v3649_v62  ;;  %v7421_v2 = vpop.f32.mrf.mxu1 }
 0x3e5   : > { %9430 = vst [vmem:[#allocation81_spill] sm:$0xff] %v7417_v25  ;;  %9431 = vst [vmem:[#allocation82_spill] sm:$0xff] %v7421_v2  ;;  %4069 = vmatprep.subr.bf16.mxu0 %v7192_v51 }
 0x3e6   : > { %v7424_v34 = vpop.f32.mrf.mxu0  ;;  %v7426_v20 = vpop.f32.mrf.mxu1 }
 0x3e7   : > { %9432 = vst [vmem:[#allocation83_spill] sm:$0xff] %v7426_v20 }
 0x3e8   : > { %v7428_v16 = vpop.f32.mrf.mxu0  ;;  %4070 = vmatpush1.bf16.msra.mxu0 %v7184_v61  ;;  %v7431_v53 = vpop.f32.mrf.mxu1 }
 0x3e9   : > { %9433 = vst [vmem:[#allocation84_spill] sm:$0xff] %v7431_v53  ;;  %4071 = vmatprep.subr.bf16.mxu0 %v7161_v10 }
 0x3ea   : > { %v7434_v18 = vpop.f32.mrf.mxu0  ;;  %v7436_v6 = vpop.f32.mrf.mxu1 }
 0x3eb   : > { %9434 = vst [vmem:[#allocation85_spill] sm:$0xff] %v7436_v6 }
 0x3ec   : > { %v7438_v40 = vpop.f32.mrf.mxu0  ;;  %4072 = vmatpush1.bf16.msra.mxu0 %v7156_v8  ;;  %v7441_v51 = vpop.f32.mrf.mxu1 }
 0x3ed   : > { %9435 = vst [vmem:[#allocation86_spill] sm:$0xff] %v7441_v51 }
 0x3ee   : > { %v7443_v27 = vpop.f32.mrf.mxu0  ;;  %v7445_v50 = vpop.f32.mrf.mxu1 }
 0x3ef   : > { %9436 = vst [vmem:[#allocation87_spill] sm:$0xff] %v7445_v50 }
 0x3f0   : > { %v2839_v13 = vpop.f32.mrf.mxu0  ;;  %v7447_v61 = vpop.f32.mrf.mxu1 }
 0x3f1   : > { %9437 = vst [vmem:[#allocation88_spill] sm:$0xff] %v7447_v61 }
 0x3f2   : > { %v2843_v26 = vpop.f32.mrf.mxu0  ;;  %v7449_v4 = vpop.f32.mrf.mxu1 }
 0x3f3   : > { %9438 = vst [vmem:[#allocation89_spill] sm:$0xff] %v7449_v4 }
 0x3f4   : > { %v2845_v10 = vpop.f32.mrf.mxu0  ;;  %v7451_v30 = vpop.f32.mrf.mxu1 }
 0x3f5   : > { %9439 = vst [vmem:[#allocation90_spill] sm:$0xff] %v7451_v30 }
 0x3f6   : > { %v2847_v19 = vpop.f32.mrf.mxu0  ;;  %v7453_v48 = vpop.f32.mrf.mxu1 }
 0x3f7   : > { %9440 = vst [vmem:[#allocation91_spill] sm:$0xff] %v7453_v48 }
 0x3f8   : > { %v2849_v28 = vpop.f32.mrf.mxu0  ;;  %v7455_v8 = vpop.f32.mrf.mxu1 }
 0x3f9   : > { %9441 = vst [vmem:[#allocation92_spill] sm:$0xff] %v7455_v8 }
 0x3fa   : > { %v2853_v37 = vpop.f32.mrf.mxu0  ;;  %v7457_v36 = vpop.f32.mrf.mxu1 }
 0x3fb   : > { %9442 = vst [vmem:[#allocation93_spill] sm:$0xff] %v7457_v36 }
 0x3fc   : > { %v2855_v46 = vpop.f32.mrf.mxu0  ;;  %v7459_v62 = vpop.f32.mrf.mxu1 }
 0x3fd   : > { %9443 = vst [vmem:[#allocation94_spill] sm:$0xff] %v7459_v62 }
 0x3fe   : > { %v2857_v32 = vpop.f32.mrf.mxu0  ;;  %v7461_v42 = vpop.f32.mrf.mxu1 }
 0x3ff   : > { %9444 = vst [vmem:[#allocation95_spill] sm:$0xff] %v7461_v42 }
 0x400   : > { %v2859_v43 = vpop.f32.mrf.mxu0  ;;  %v7463_v12 = vpop.f32.mrf.mxu1 }
 0x401   : > { %9445 = vst [vmem:[#allocation96_spill] sm:$0xff] %v7463_v12  ;;  %v2860_v8 = vadd.f32 %v2859_v43, %v7134_v14  ;;  %v2856_v12 = vadd.f32 %v2855_v46, %v7132_v9  ;;  %v2850_v43 = vadd.f32 %v2849_v28, %v7154_v63  ;;  %v2846_v46 = vadd.f32 %v2845_v10, %v7152_v33  ;;  %v9454_v10 = vld [vmem:[#allocation34_spill] sm:$0xff] }
 0x402   : > { %v2863_v25 = vpop.f32.mrf.mxu0  ;;  %v7465_v30 = vpop.f32.mrf.mxu1 }
 0x403   : > { %9446 = vst [vmem:[#allocation97_spill] sm:$0xff] %v7465_v30  ;;  %v2864_v42 = vadd.f32 %v2863_v25, %v7118_v47 }
 0x404   : > { %v2865_v4 = vpop.f32.mrf.mxu0  ;;  %v7467_v51 = vpop.f32.mrf.mxu1 }
 0x405   : > { %9447 = vst [vmem:[#allocation98_spill] sm:$0xff] %v7467_v51  ;;  %v2866_v36 = vadd.f32 %v2865_v4, %v7118_v47  ;;  %v2858_v51 = vadd.f32 %v2857_v32, %v7134_v14  ;;  %v3502_v4 = vmax.f32 %v2860_v8, 0.0  ;;  %v3505_v25 = vmax.f32 %v2864_v42, 0.0  ;;  %v9452_v14 = vld [vmem:[#allocation20_spill] sm:$0xff] }
 0x406   : > { %v2867_v48 = vpop.f32.mrf.mxu0  ;;  %v7472_v62 = vpop.f32.mrf.mxu1  ;;  %v2848_v32 = vadd.f32 %v2847_v19, %v7154_v63  ;;  %v3494_v42 = vmax.f32 %v2850_v43, 0.0 }
 0x407   : > { %v2868_v61 = vadd.f32 %v2867_v48, %v7120_v49  ;;  %9448 = vst [vmem:[#allocation99_spill] sm:$0xff] %v7472_v62  ;;  %v3506_v53 = vmax.f32 %v2866_v36, 0.0  ;;  %v2854_v62 = vadd.f32 %v2853_v37, %v7132_v9  ;;  %v3501_v28 = vmax.f32 %v2858_v51, 0.0  ;;  %v9453_v9 = vld [vmem:[#allocation10_spill] sm:$0xff] }
 0x408   : > { %v2869_v50 = vpop.f32.mrf.mxu0  ;;  %v7477_v30 = vpop.f32.mrf.mxu1  ;;  %v2840_v37 = vadd.f32 %v2839_v13, %v9452_v14  ;;  %v3490_v13 = vmax.f32 %v2846_v46, 0.0 }
 0x409   : > { %v2870_v21 = vadd.f32 %v2869_v50, %v7120_v49  ;;  %9449 = vst [vmem:[#allocation100_spill] sm:$0xff] %v7477_v30  ;;  %v3509_v35 = vmax.f32 %v2868_v61, 0.0  ;;  %v3498_v50 = vmax.f32 %v2856_v12, 0.0 }
 0x40a   : > { %v2873_v6 = vpop.f32.mrf.mxu0  ;;  %v3226_v20 = vpop.f32.mrf.mxu1 }
 0x40b   : > { %v3510_v48 = vmax.f32 %v2870_v21, 0.0  ;;  %v2874_v30 = vadd.f32 %v2873_v6, %v7108_v23  ;;  %v3701_v8 = vpack.c.bf16 %v3509_v35, %v3505_v25  ;;  %v3227_v21 = vadd.f32 %v3226_v20, %v7108_v23 }
 0x40c   : > { %v7482_v47 = vpop.f32.mrf.mxu0  ;;  %v7486_v49 = vpop.f32.mrf.mxu1  ;;  %v3698_v12 = vpack.c.bf16 %v3502_v4, %v3498_v50  ;;  %v2836_v6 = vadd.f32 %v7438_v40, %v9454_v10  ;;  %v2838_v20 = vadd.f32 %v7443_v27, %v9452_v14  ;;  %v3493_v4 = vmax.f32 %v2848_v32, 0.0  ;;  %v9461_v32 = vld [vmem:[#allocation28_spill] sm:$0xff] }
 0x40d   : > { %9450 = vst [vmem:[#allocation101_spill] sm:$0xff] %v7482_v47  ;;  %9451 = vst [vmem:[#allocation102_spill] sm:$0xff] %v7486_v49  ;;  %v3702_v61 = vpack.c.bf16 %v3510_v48, %v3506_v53  ;;  %v2844_v53 = vadd.f32 %v2843_v26, %v7152_v33  ;;  %v3497_v48 = vmax.f32 %v2854_v62, 0.0  ;;  %v3513_v19 = vmax.f32 %v2874_v30, 0.0  ;;  %v9457_v62 = vld [vmem:[#allocation22_spill] sm:$0xff] }
 0x40e   : > { %v2877_v36 = vpop.f32.mrf.mxu0  ;;  %v3230_v2 = vpop.f32.mrf.mxu1  ;;  %v3515_v40 = vmax.f32 %v3227_v21, 0.0  ;;  %v3694_v23 = vpack.c.bf16 %v3494_v42, %v3490_v13  ;;  %v2834_v27 = vadd.f32 %v7434_v18, %v9454_v10  ;;  %v3482_v21 = vmax.f32 %v2836_v6, 0.0 }
 0x40f   : > { %v2878_v47 = vadd.f32 %v2877_v36, %v9453_v9  ;;  %4073 = vmatprep.subr.bf16.mxu0 %v3702_v61  ;;  %v3231_v51 = vadd.f32 %v3230_v2, %v9453_v9  ;;  %v3697_v50 = vpack.c.bf16 %v3501_v28, %v3497_v48  ;;  %v2830_v2 = vadd.f32 %v7428_v16, %v9457_v62 }
 0x410   : > { %v7496_v35 = vpop.f32.mrf.mxu0  ;;  %4074 = vmatpush2.bf16.msra.mxu0 %v3701_v8  ;;  %v7500_v25 = vpop.f32.mrf.mxu1  ;;  %v3486_v36 = vmax.f32 %v2840_v37, 0.0  ;;  %v2826_v28 = vadd.f32 %v7419_v54, %v9461_v32  ;;  %v2828_v42 = vadd.f32 %v7424_v34, %v9457_v62  ;;  %v3485_v48 = vmax.f32 %v2838_v20, 0.0 }
 0x411   : > { %9455 = vst [vmem:[#allocation20_spill] sm:$0xff] %v7496_v35  ;;  %v3517_v43 = vmax.f32 %v2878_v47, 0.0  ;;  %9456 = vst [vmem:[#allocation34_spill] sm:$0xff] %v7500_v25  ;;  %4075 = vmatprep.subr.bf16.mxu0 %v3698_v12  ;;  %v3519_v61 = vmax.f32 %v3231_v51, 0.0  ;;  %v3489_v47 = vmax.f32 %v2844_v53, 0.0  ;;  %v9462_v12 = vld [vmem:[#allocation21_spill] sm:$0xff]  ;;  %v2820_v13 = vadd.f32 %v7409_v58, %v7280_v38 }
 0x412   : > { %v2883_v26 = vpop.f32.mrf.mxu0  ;;  %v3236_v8 = vpop.f32.mrf.mxu1  ;;  %v3481_v34 = vmax.f32 %v2834_v27, 0.0  ;;  %v2818_v58 = vadd.f32 %v7406_v3, %v7280_v38  ;;  %v2810_v27 = vadd.f32 %v7387_v44, %v7312_v45  ;;  %v9482_v25 = vld [vmem:[#allocation69_spill] sm:$0xff] }
 0x413   : > { %v7504_v49 = vpack.c.bf16 %v3517_v43, %v3513_v19  ;;  %v7508_v30 = vpack.c.bf16 %v3519_v61, %v3515_v40  ;;  %v2884_v16 = vadd.f32 %v2883_v26, %v9462_v12  ;;  %v3693_v18 = vpack.c.bf16 %v3493_v4, %v3489_v47  ;;  %v9464_v43 = vld [vmem:[#allocation18_spill] sm:$0xff] }
 0x414   : > { %v7510_v46 = vpop.f32.mrf.mxu0  ;;  %4076 = vmatpush2.bf16.msra.mxu0 %v3697_v50  ;;  %v7515_v37 = vpop.f32.mrf.mxu1  ;;  %v3237_v53 = vadd.f32 %v3236_v8, %v9462_v12  ;;  %v3478_v19 = vmax.f32 %v2830_v2, 0.0  ;;  %v3690_v50 = vpack.c.bf16 %v3486_v36, %v3482_v21  ;;  %v2816_v40 = vadd.f32 %v7401_v56, %v7274_v59 }
 0x415   : > { %9458 = vst [vmem:[#allocation22_spill] sm:$0xff] %v7504_v49  ;;  %9459 = vst [vmem:[#allocation103_spill] sm:$0xff] %v7508_v30  ;;  %4077 = vmatprep.subr.bf16.mxu0 %v3694_v23  ;;  %v2824_v23 = vadd.f32 %v7413_v57, %v9461_v32  ;;  %v3474_v61 = vmax.f32 %v2826_v28, 0.0  ;;  %v3521_v26 = vmax.f32 %v2884_v16, 0.0  ;;  %v3477_v36 = vmax.f32 %v2828_v42, 0.0 }
 0x416   : > { %9460 = vst [vmem:[#allocation104_spill] sm:$0xff] %v7510_v46  ;;  %9463 = vst [vmem:[#allocation28_spill] sm:$0xff] %v7515_v37  ;;  %v2887_v51 = vpop.f32.mrf.mxu0  ;;  %v3240_v6 = vpop.f32.mrf.mxu1  ;;  %v3689_v56 = vpack.c.bf16 %v3485_v48, %v3481_v34  ;;  %v3523_v47 = vmax.f32 %v3237_v53, 0.0  ;;  %v2814_v28 = vadd.f32 %v7393_v0, %v7274_v59  ;;  %v2806_v48 = vadd.f32 %v7369_v1, %v7308_v41  ;;  %v9469_v34 = vld [vmem:[#allocation40_spill] sm:$0xff] }
 0x417   : > { %v2888_v54 = vadd.f32 %v2887_v51, %v9464_v43  ;;  %v3241_v20 = vadd.f32 %v3240_v6, %v9464_v43  ;;  %v3470_v51 = vmax.f32 %v2820_v13, 0.0  ;;  %v3686_v3 = vpack.c.bf16 %v3478_v19, %v3474_v61 }
 0x418   : > { %v7528_v4 = vpop.f32.mrf.mxu0  ;;  %4078 = vmatpush2.bf16.msra.mxu0 %v3693_v18  ;;  %v7532_v8 = vpop.f32.mrf.mxu1  ;;  %v3473_v16 = vmax.f32 %v2824_v23, 0.0  ;;  %v3466_v53 = vmax.f32 %v2816_v40, 0.0  ;;  %v3469_v44 = vmax.f32 %v2818_v58, 0.0  ;;  %v2800_v0 = vadd.f32 %v7355_v55, %v7343_v5 }
 0x419   : > { %v3525_v2 = vmax.f32 %v2888_v54, 0.0  ;;  %9465 = vst [vmem:[#allocation105_spill] sm:$0xff] %v7532_v8  ;;  %4079 = vmatprep.subr.bf16.mxu0 %v3690_v50  ;;  %v3527_v21 = vmax.f32 %v3241_v20, 0.0  ;;  %v3462_v23 = vmax.f32 %v2810_v27, 0.0  ;;  %v2796_v40 = vadd.f32 %v7337_v11, %v7334_v31  ;;  %v9472_v27 = vld [vmem:[#allocation38_spill] sm:$0xff]  ;;  %v9475_v11 = vld [vmem:[#allocation37_spill] sm:$0xff] }
 0x41a   : > { %v7534_v57 = vpop.f32.mrf.mxu0  ;;  %v3246_v6 = vpop.f32.mrf.mxu1  ;;  %v3685_v13 = vpack.c.bf16 %v3477_v36, %v3473_v16  ;;  %v3458_v58 = vmax.f32 %v2806_v48, 0.0  ;;  %v3454_v16 = vmax.f32 %v2800_v0, 0.0  ;;  %v9476_v48 = vld [vmem:[#allocation70_spill] sm:$0xff] }
 0x41b   : > { %v7538_v18 = vpack.c.bf16 %v3525_v2, %v3521_v26  ;;  %v7542_v54 = vpack.c.bf16 %v3527_v21, %v3523_v47  ;;  %v3247_v19 = vadd.f32 %v3246_v6, %v9469_v34  ;;  %v3682_v26 = vpack.c.bf16 %v3470_v51, %v3466_v53  ;;  %v9473_v51 = vld [vmem:[#allocation74_spill] sm:$0xff] }
 0x41c   : > { %v7544_v42 = vpop.f32.mrf.mxu0  ;;  %4080 = vmatpush2.bf16.msra.mxu0 %v3689_v56  ;;  %v7548_v50 = vpop.f32.mrf.mxu1  ;;  %v3465_v2 = vmax.f32 %v2814_v28, 0.0  ;;  %v9470_v56 = vld [vmem:[#allocation39_spill] sm:$0xff]  ;;  %v3143_v28 = vadd.f32 %v9473_v51, %v9472_v27 }
 0x41d   : > { %9466 = vst [vmem:[#allocation106_spill] sm:$0xff] %v7538_v18  ;;  %9467 = vst [vmem:[#allocation107_spill] sm:$0xff] %v7542_v54  ;;  %4081 = vmatprep.subr.bf16.mxu0 %v3686_v3  ;;  %v3531_v6 = vmax.f32 %v3247_v19, 0.0  ;;  %v3139_v54 = vadd.f32 %v9476_v48, %v9475_v11  ;;  %v9478_v19 = vld [vmem:[#allocation72_spill] sm:$0xff]  ;;  %v3137_v48 = vadd.f32 %v9482_v25, %v9475_v11 }
 0x41e   : > { %9468 = vst [vmem:[#allocation108_spill] sm:$0xff] %v7548_v50  ;;  %v7551_v20 = vpop.f32.mrf.mxu0  ;;  %v3250_v61 = vpop.f32.mrf.mxu1  ;;  %v3681_v21 = vpack.c.bf16 %v3469_v44, %v3465_v2  ;;  %v3141_v2 = vadd.f32 %v9478_v19, %v9472_v27  ;;  %v9484_v27 = vld [vmem:[#allocation29_spill] sm:$0xff] }
 0x41f   : > { %v3251_v47 = vadd.f32 %v3250_v61, %v9470_v56  ;;  %v3678_v61 = vpack.c.bf16 %v3462_v23, %v3458_v58  ;;  %v9480_v23 = vld [vmem:[#allocation19_spill] sm:$0xff]  ;;  %v9481_v58 = vld [vmem:[#allocation68_spill] sm:$0xff]  ;;  %v3444_v19 = vmax.f32 %v3139_v54, 0.0 }
 0x420   : > { %v7556_v1 = vpop.f32.mrf.mxu0  ;;  %4082 = vmatpush2.bf16.msra.mxu0 %v3685_v13  ;;  %v7560_v36 = vpop.f32.mrf.mxu1  ;;  %v7600_v54 = vld [vmem:[%s8975_s7] ss:$16 sps:$4 sm:$0xff]  }
 0x421   : > { %9471 = vst [vmem:[#allocation109_spill] sm:$0xff] %v7560_v36  ;;  %4083 = vmatprep.subr.bf16.mxu0 %v3682_v26  ;;  %v3535_v3 = vmax.f32 %v3251_v47, 0.0  ;;  %v3450_v26 = vmax.f32 %v2796_v40, 0.0  ;;  %v9479_v47 = vld [vmem:[#allocation41_spill] sm:$0xff]  ;;  %v9483_v40 = vld [vmem:[#allocation42_spill] sm:$0xff]  ;;  %9489 = vst [vmem:[#allocation70_spill] sm:$0xff] %v7600_v54 }
 0x422   : > { %v7562_v55 = vpop.f32.mrf.mxu0  ;;  %v3256_v53 = vpop.f32.mrf.mxu1 }
 0x423   : > { %v7566_v30 = vpack.c.bf16 %v3535_v3, %v3531_v6  ;;  %v3257_v51 = vadd.f32 %v3256_v53, %v9479_v47  ;;  %v3133_v6 = vadd.f32 %v9481_v58, %v9480_v23  ;;  %v3448_v3 = vmax.f32 %v3143_v28, 0.0  ;;  %v9487_v28 = vld [vmem:[#allocation67_spill] sm:$0xff] }
 0x424   : > { %v7568_v13 = vpop.f32.mrf.mxu0  ;;  %4084 = vmatpush2.bf16.msra.mxu0 %v3681_v21  ;;  %v7572_v44 = vpop.f32.mrf.mxu1  ;;  %v3674_v21 = vpack.c.bf16 %v3454_v16, %v3450_v26  ;;  %v3131_v58 = vadd.f32 %v9487_v28, %v9480_v23  ;;  %v3447_v16 = vmax.f32 %v3141_v2, 0.0  ;;  %v3443_v23 = vmax.f32 %v3137_v48, 0.0  ;;  %v9495_v28 = vld [vmem:[#allocation60_spill] sm:$0xff] }
 0x425   : > { %9474 = vst [vmem:[#allocation38_spill] sm:$0xff] %v7566_v30  ;;  %9477 = vst [vmem:[#allocation74_spill] sm:$0xff] %v7572_v44  ;;  %4085 = vmatprep.subr.bf16.mxu0 %v3678_v61  ;;  %v9485_v61 = vld [vmem:[#allocation66_spill] sm:$0xff]  ;;  %v3539_v26 = vmax.f32 %v3257_v51, 0.0  ;;  %v3440_v44 = vmax.f32 %v3133_v6, 0.0  ;;  %v3672_v49 = vpack.c.bf16 %v3448_v3, %v3444_v19  ;;  %v9493_v6 = vld [vmem:[#allocation57_spill] sm:$0xff] }
 0x426   : > { %v7577_v0 = vpop.f32.mrf.mxu0  ;;  %v3260_v30 = vpop.f32.mrf.mxu1  ;;  %v3129_v53 = vadd.f32 %v9485_v61, %v9484_v27  ;;  %v7612_v51 = vld [vmem:[%s8975_s7 + $0x24] ss:$16 sps:$4 sm:$0xff]   ;;  %v3113_v3 = vadd.f32 %v9493_v6, %v7036_v17  ;;  %v9498_v17 = vld [vmem:[#allocation54_spill] sm:$0xff] }
 0x427   : > { %v3261_v37 = vadd.f32 %v3260_v30, %v9483_v40  ;;  %v9488_v30 = vld [vmem:[#allocation62_spill] sm:$0xff]  ;;  %9492 = vst [vmem:[#allocation19_spill] sm:$0xff] %v7612_v51  ;;  %v9494_v19 = vld [vmem:[#allocation43_spill] sm:$0xff]  ;;  %v3109_v6 = vadd.f32 %v9498_v17, %v7034_v15 }
 0x428   : > { %v7584_v8 = vpop.f32.mrf.mxu0  ;;  %4086 = vmatpush2.bf16.msra.mxu0 %v7395_v22  ;;  %v7589_v50 = vpop.f32.mrf.mxu1  ;;  %v3123_v11 = vadd.f32 %v9488_v30, %v7022_v52  ;;  %v3119_v30 = vadd.f32 %v9495_v28, %v9494_v19  ;;  %v9499_v28 = vld [vmem:[#allocation58_spill] sm:$0xff]  ;;  %v3424_v15 = vmax.f32 %v3113_v3, 0.0 }
 0x429   : > { %9486 = vst [vmem:[#allocation37_spill] sm:$0xff] %v7589_v50  ;;  %4087 = vmatprep.subr.bf16.mxu0 %v3674_v21  ;;  %v3543_v36 = vmax.f32 %v3261_v37, 0.0  ;;  %v9490_v21 = vld [vmem:[#allocation64_spill] sm:$0xff]  ;;  %v9497_v50 = vld [vmem:[#allocation13_spill] sm:$0xff]  ;;  %v3117_v35 = vadd.f32 %v9499_v28, %v9494_v19 }
 0x42a   : > { %v7593_v25 = vpop.f32.mrf.mxu0  ;;  %v3266_v22 = vpop.f32.mrf.mxu1  ;;  %v3127_v61 = vadd.f32 %v9490_v21, %v9484_v27  ;;  %v9496_v27 = vld [vmem:[#allocation61_spill] sm:$0xff]  ;;  %v3439_v21 = vmax.f32 %v3131_v58, 0.0  ;;  %v3428_v17 = vmax.f32 %v3119_v30, 0.0 }
 0x42b   : > { %v7604_v2 = vpack.c.bf16 %v3543_v36, %v3539_v26  ;;  %v3121_v48 = vadd.f32 %v9496_v27, %v7022_v52  ;;  %v3436_v36 = vmax.f32 %v3129_v53, 0.0  ;;  %v3267_v18 = vadd.f32 %v3266_v22, %v9497_v50 }
 0x42c   : > { %v7606_v37 = vpop.f32.mrf.mxu0  ;;  %4088 = vmatpush2.bf16.msra.mxu0 %v7363_v24  ;;  %v3268_v26 = vpop.f32.mrf.mxu1  ;;  %v5394_v24 = vld [vmem:[%s8975_s7 + $0xc] ss:$16 sps:$4 sm:$0xff]   ;;  %v3432_v52 = vmax.f32 %v3123_v11, 0.0  ;;  %v3435_v27 = vmax.f32 %v3127_v61, 0.0 }
 0x42d   : > { %9491 = vst [vmem:[#allocation72_spill] sm:$0xff] %v7604_v2  ;;  %4283 = vmatprep.subr.bf16.mxu0 %v3672_v49  ;;  %v3671_v2 = vpack.c.bf16 %v3447_v16, %v3443_v23  ;;  %v3668_v49 = vpack.c.bf16 %v3440_v44, %v3436_v36  ;;  %4202 = vmatprep.mubr.bf16.mxu1 %v5394_v24  ;;  %v9500_v16 = vld [vmem:[#allocation26_spill] sm:$0xff]  ;;  %v3431_v9 = vmax.f32 %v3121_v48, 0.0  ;;  %v3547_v28 = vmax.f32 %v3267_v18, 0.0 }
 0x42e   : > { %v7624_v31 = vpop.f32.mrf.mxu0  ;;  %v3270_v53 = vpop.f32.mrf.mxu1  ;;  %v3269_v58 = vadd.f32 %v3268_v26, %v9497_v50  ;;  %v3667_v11 = vpack.c.bf16 %v3439_v21, %v3435_v27  ;;  %v3420_v36 = vmax.f32 %v3109_v6, 0.0  ;;  %v3427_v26 = vmax.f32 %v3117_v35, 0.0  ;;  %v7653_v21 = vld [vmem:[%s8975_s7 + $0x44] ss:$16 sps:$4 sm:$0xff]  }
 0x42f   : > { %4090 = vmatmul.mubr.bf16.vlgmr.msra.gmra.mxu0 %v7600_v54  ;;  %v3271_v23 = vadd.f32 %v3270_v53, %v9500_v16  ;;  %v3664_v53 = vpack.c.bf16 %v3432_v52, %v3428_v17  ;;  %9504 = vst [vmem:[#allocation29_spill] sm:$0xff] %v7653_v21  ;;  %v7667_v27 = vadd.f32 %v7411_v29, %v7280_v38  ;;  %v9514_v29 = vld [vmem:[#allocation85_spill] sm:$0xff] }
 0x430   : > { %v7633_v22 = vpop.f32.mrf.mxu0  ;;  %4284 = vmatpush1.bf16.msra.mxu0 %v3671_v2  ;;  %4099 = vmatprep.mubr.bf16.mxu0 %v7612_v51  ;;  %v3272_v19 = vpop.f32.mrf.mxu1  ;;  %v7644_v2 = vld [vmem:[%s8975_s7 + $0x20] ss:$16 sps:$4 sm:$0xff]   ;;  %v3548_v3 = vmax.f32 %v3269_v58, 0.0  ;;  %v3663_v35 = vpack.c.bf16 %v3431_v9, %v3427_v26  ;;  %v3660_v52 = vpack.c.bf16 %v3424_v15, %v3420_v36  ;;  %v7675_v9 = vadd.f32 %v7415_v60, %v9461_v32  ;;  %v9510_v15 = vld [vmem:[#allocation82_spill] sm:$0xff] }
 0x431   : > { %4285 = vmatprep.subr.bf16.mxu0 %v3668_v49  ;;  %v3551_v54 = vmax.f32 %v3271_v23, 0.0  ;;  %v3273_v44 = vadd.f32 %v3272_v19, %v9500_v16  ;;  %9502 = vst [vmem:[#allocation69_spill] sm:$0xff] %v7644_v2  ;;  %v7659_v49 = vadd.f32 %v7391_v7, %v7312_v45  ;;  %9508 = vst [vmem:[#allocation64_spill] sm:$0xff] %v7667_v27  ;;  %v9511_v7 = vld [vmem:[#allocation83_spill] sm:$0xff]  ;;  %v9515_v60 = vld [vmem:[#allocation77_spill] sm:$0xff] }
 0x432   : > { %v7637_v61 = vpop.f32.mrf.mxu0  ;;  %v7639_v24 = vpop.f32.mrf.mxu1  ;;  %v3179_v45 = vadd.f32 %v9510_v15, %v9461_v32  ;;  %v7681_v17 = vadd.f32 %v9511_v7, %v9457_v62  ;;  %v3187_v19 = vadd.f32 %v9514_v29, %v9454_v10  ;;  %v7695_v32 = vadd.f32 %v9515_v60, %v7343_v5  ;;  %v9523_v60 = vld [vmem:[#allocation88_spill] sm:$0xff]  ;;  %v9528_v5 = vld [vmem:[#allocation47_spill] sm:$0xff]  ;;  %v9540_v51 = vld [vmem:[#allocation93_spill] sm:$0xff] }
 0x433   : > { %9501 = vst [vmem:[#allocation68_spill] sm:$0xff] %v7639_v24  ;;  %v7646_v30 = vpack.c.bf16 %v3551_v54, %v3547_v28  ;;  %v3552_v48 = vmax.f32 %v3273_v44, 0.0  ;;  %9506 = vst [vmem:[#allocation67_spill] sm:$0xff] %v7659_v49  ;;  %v7663_v54 = vadd.f32 %v7403_v39, %v7274_v59  ;;  %v9512_v59 = vld [vmem:[#allocation84_spill] sm:$0xff]  ;;  %v9517_v28 = vld [vmem:[#allocation79_spill] sm:$0xff] }
 0x434   : > { %v7648_v18 = vpop.f32.mrf.mxu0  ;;  %4286 = vmatpush1.bf16.msra.mxu0 %v3667_v11  ;;  %v7655_v6 = vpop.f32.mrf.mxu1  ;;  %v3183_v39 = vadd.f32 %v9512_v59, %v9457_v62  ;;  %9516 = vst [vmem:[#allocation60_spill] sm:$0xff] %v7695_v32  ;;  %v7699_v44 = vadd.f32 %v9517_v28, %v7308_v41  ;;  %v3476_v15 = vmax.f32 %v3179_v45, 0.0  ;;  %v3483_v29 = vmax.f32 %v3187_v19, 0.0  ;;  %v7731_v41 = vld [vmem:[%s8975_s7 + $0x64] ss:$16 sps:$4 sm:$0xff]  }
 0x435   : > { %9503 = vst [vmem:[#allocation42_spill] sm:$0xff] %v7646_v30  ;;  %9505 = vst [vmem:[#allocation66_spill] sm:$0xff] %v7655_v6  ;;  %4287 = vmatprep.subr.bf16.mxu0 %v3664_v53  ;;  %v7669_v58 = vpack.c.bf16 %v3552_v48, %v3548_v3  ;;  %v9520_v3 = vld [vmem:[#allocation87_spill] sm:$0xff]  ;;  %v3193_v28 = vadd.f32 %v9523_v60, %v9452_v14  ;;  %v9525_v53 = vld [vmem:[#allocation92_spill] sm:$0xff] }
 0x436   : > { %9507 = vst [vmem:[#allocation62_spill] sm:$0xff] %v7663_v54  ;;  %v7671_v23 = vpop.f32.mrf.mxu0  ;;  %v7685_v38 = vpop.f32.mrf.mxu1  ;;  %9518 = vst [vmem:[#allocation61_spill] sm:$0xff] %v7699_v44  ;;  %v3191_v48 = vadd.f32 %v9520_v3, %v9452_v14  ;;  %v3480_v7 = vmax.f32 %v3183_v39, 0.0  ;;  %v9524_v3 = vld [vmem:[#allocation91_spill] sm:$0xff]  ;;  %v3203_v45 = vadd.f32 %v9525_v53, %v7154_v63  ;;  %v9530_v14 = vld [vmem:[#allocation96_spill] sm:$0xff] }
 0x437   : > { %9509 = vst [vmem:[#allocation57_spill] sm:$0xff] %v7669_v58  ;;  %9513 = vst [vmem:[#allocation43_spill] sm:$0xff] %v7685_v38  ;;  %4100 = vmatmul.mubr.bf16.gmra.mxu0 %v7644_v2  ;;  %v3201_v36 = vadd.f32 %v9524_v3, %v7154_v63  ;;  %v9526_v39 = vld [vmem:[#allocation59_spill] sm:$0xff]  ;;  %v3213_v60 = vadd.f32 %v9530_v14, %v9528_v5  ;;  %v9531_v58 = vld [vmem:[#allocation36_spill] sm:$0xff] }
 0x438   : > { %v7690_v11 = vpop.f32.mrf.mxu0  ;;  %4288 = vmatpush1.bf16.msra.mxu0 %v3663_v35  ;;  %4109 = vmatprep.mubr.bf16.mxu0 %v7653_v21  ;;  %v7701_v62 = vpop.f32.mrf.mxu1  ;;  %9527 = vst [vmem:[#allocation26_spill] sm:$0xff] %v7731_v41  ;;  %v9529_v19 = vld [vmem:[#allocation95_spill] sm:$0xff]  ;;  %v9533_v63 = vld [vmem:[#allocation100_spill] sm:$0xff]  ;;  %v9536_v6 = vld [vmem:[#allocation86_spill] sm:$0xff] }
 0x439   : > { %9519 = vst [vmem:[#allocation13_spill] sm:$0xff] %v7701_v62  ;;  %4289 = vmatprep.subr.bf16.mxu0 %v3660_v52  ;;  %v7717_v52 = vld [vmem:[%s8975_s7 + $0x40] ss:$16 sps:$4 sm:$0xff]   ;;  %v3211_v30 = vadd.f32 %v9529_v19, %v9528_v5  ;;  %v3223_v53 = vadd.f32 %v9533_v63, %v9531_v58  ;;  %v3487_v62 = vmax.f32 %v3191_v48, 0.0  ;;  %v9538_v2 = vld [vmem:[#allocation90_spill] sm:$0xff] }
 0x43a   : > { %v7708_v35 = vpop.f32.mrf.mxu0  ;;  %v7712_v59 = vpop.f32.mrf.mxu1  ;;  %9522 = vst [vmem:[#allocation58_spill] sm:$0xff] %v7717_v52  ;;  %v9532_v3 = vld [vmem:[#allocation99_spill] sm:$0xff]  ;;  %v9537_v21 = vld [vmem:[#allocation89_spill] sm:$0xff]  ;;  %v3199_v5 = vadd.f32 %v9538_v2, %v7152_v33  ;;  %v3496_v2 = vmax.f32 %v3203_v45, 0.0 }
 0x43b   : > { %9521 = vst [vmem:[#allocation54_spill] sm:$0xff] %v7712_v59  ;;  %v3221_v24 = vadd.f32 %v9532_v3, %v9531_v58  ;;  %v3189_v59 = vadd.f32 %v9536_v6, %v9454_v10  ;;  %v3197_v19 = vadd.f32 %v9537_v21, %v7152_v33  ;;  %v9539_v3 = vld [vmem:[#allocation44_spill] sm:$0xff]  ;;  %v9541_v58 = vld [vmem:[#allocation94_spill] sm:$0xff]  ;;  %v3488_v21 = vmax.f32 %v3193_v28, 0.0  ;;  %v9546_v27 = vld [vmem:[#allocation49_spill] sm:$0xff] }
 0x43c   : > { %v7725_v26 = vpop.f32.mrf.mxu0  ;;  %4290 = vmatpush1.bf16.msra.mxu0 %v9526_v39  ;;  %v7741_v38 = vpop.f32.mrf.mxu1  ;;  %v9535_v39 = vld [vmem:[#allocation17_spill] sm:$0xff]  ;;  %v3207_v49 = vadd.f32 %v9540_v51, %v9539_v3  ;;  %v3209_v63 = vadd.f32 %v9541_v58, %v9539_v3  ;;  %v9544_v10 = vld [vmem:[#allocation98_spill] sm:$0xff]  ;;  %v3495_v33 = vmax.f32 %v3201_v36, 0.0  ;;  %v7765_v51 = vpack.c.bf16 %v3480_v7, %v3476_v15 }
 0x43d   : > { %9534 = vst [vmem:[#allocation82_spill] sm:$0xff] %v7741_v38  ;;  %4291 = vmatprep.subr.bf16.mxu0 %v9535_v39  ;;  %v9542_v38 = vld [vmem:[#allocation35_spill] sm:$0xff]  ;;  %v9543_v39 = vld [vmem:[#allocation97_spill] sm:$0xff]  ;;  %v3503_v3 = vmax.f32 %v3211_v30, 0.0  ;;  %v3504_v58 = vmax.f32 %v3213_v60, 0.0  ;;  %v3512_v54 = vmax.f32 %v3223_v53, 0.0 }
 0x43e   : > { %v7750_v14 = vpop.f32.mrf.mxu0  ;;  %v3217_v32 = vadd.f32 %v9543_v39, %v9542_v38  ;;  %v3219_v6 = vadd.f32 %v9544_v10, %v9542_v38  ;;  %v7760_v48 = vpop.f32.mrf.mxu1  ;;  %v3511_v39 = vmax.f32 %v3221_v24, 0.0  ;;  %v9548_v38 = vld [vmem:[#allocation31_spill] sm:$0xff]  ;;  %v3484_v10 = vmax.f32 %v3189_v59, 0.0  ;;  %v9550_v59 = vld [vmem:[#allocation33_spill] sm:$0xff] }
 0x43f   : > { %9545 = vst [vmem:[#allocation83_spill] sm:$0xff] %v7760_v48  ;;  %4110 = vmatmul.mubr.bf16.gmra.mxu0 %v7717_v52  ;;  %v7770_v48 = vpack.c.bf16 %v3487_v62, %v3483_v29  ;;  %v3491_v36 = vmax.f32 %v3197_v19, 0.0  ;;  %v3492_v28 = vmax.f32 %v3199_v5, 0.0  ;;  %v3499_v52 = vmax.f32 %v3207_v49, 0.0  ;;  %v7777_v24 = vld [vmem:[%s8975_s7 + $0x60] ss:$16 sps:$4 sm:$0xff]  }
 0x440   : > { %v2939_v44 = vpop.f32.mrf.mxu0  ;;  %4292 = vmatpush1.bf16.msra.mxu0 %v9546_v27  ;;  %4119 = vmatprep.mubr.bf16.mxu0 %v7731_v41  ;;  %v7767_v46 = vpop.f32.mrf.mxu1  ;;  %v3500_v27 = vmax.f32 %v3209_v63, 0.0  ;;  %v3507_v12 = vmax.f32 %v3217_v32, 0.0  ;;  %v3508_v41 = vmax.f32 %v3219_v6, 0.0  ;;  %v7783_v62 = vadd.f32 %v7556_v1, %v9470_v56  ;;  %v7789_v49 = vld [vmem:[%s8975_s7 + $0x84] ss:$16 sps:$4 sm:$0xff]   ;;  %v9551_v1 = vld [vmem:[#allocation46_spill] sm:$0xff] }
 0x441   : > { %9547 = vst [vmem:[#allocation84_spill] sm:$0xff] %v7767_v46  ;;  %4293 = vmatprep.subr.bf16.mxu0 %v9548_v38  ;;  %v7779_v30 = vpack.c.bf16 %v3495_v33, %v3491_v36  ;;  %v7791_v32 = vpack.c.bf16 %v3496_v2, %v3492_v28  ;;  %v7793_v29 = vpack.c.bf16 %v3488_v21, %v3484_v10  ;;  %v9553_v2 = vld [vmem:[#allocation27_spill] sm:$0xff]  ;;  %v9556_v10 = vld [vmem:[#allocation52_spill] sm:$0xff]  ;;  %v2287_v46 = vpop.permute.xlu1 %2286 }
 0x442   : > { %v2943_v45 = vpop.f32.mrf.mxu0  ;;  %v7772_v15 = vpop.f32.mrf.mxu1  ;;  %v7795_v60 = vpack.c.bf16 %v3503_v3, %v3499_v52  ;;  %v7797_v53 = vpack.c.bf16 %v3511_v39, %v3507_v12  ;;  %v3704_v5 = vpack.c.bf16 %v3512_v54, %v3508_v41  ;;  %v7802_v63 = vpack.c.bf16 %v3504_v58, %v3500_v27  ;;  %v9552_v41 = vld [vmem:[#allocation12_spill] sm:$0xff]  ;;  %v9554_v58 = vld [vmem:[#allocation9_spill] sm:$0xff] }
 0x443   : > { %9549 = vst [vmem:[#allocation85_spill] sm:$0xff] %v7772_v15  ;;  %v7806_v6 = vadd.f32 %v7528_v4, %v9464_v43  ;;  %v7810_v33 = vadd.f32 %v7534_v57, %v9469_v34  ;;  %v7814_v52 = vadd.f32 %v7544_v42, %v9469_v34  ;;  %v7818_v12 = vadd.f32 %v7551_v20, %v9470_v56 }
 0x444   : > { %v2945_v7 = vpop.f32.mrf.mxu0  ;;  %4294 = vmatpush1.bf16.msra.mxu0 %v9550_v59  ;;  %v7799_v19 = vpop.f32.mrf.mxu1  ;;  %v7822_v54 = vadd.f32 %v7562_v55, %v9479_v47  ;;  %v2940_v4 = vadd.f32 %v2939_v44, %v9552_v41  ;;  %v7833_v20 = vadd.f32 %v7568_v13, %v9479_v47  ;;  %v7837_v55 = vadd.f32 %v7633_v22, %v9500_v16  ;;  %v9557_v13 = vld [vmem:[#allocation11_spill] sm:$0xff] }
 0x445   : > { %4295 = vmatprep.subr.bf16.mxu0 %v9551_v1  ;;  %v2946_v3 = vadd.f32 %v2945_v7, %v9553_v2  ;;  %v2944_v44 = vadd.f32 %v2943_v45, %v9553_v2  ;;  %v7844_v36 = vadd.f32 %v7584_v8, %v9483_v40  ;;  %v7848_v28 = vadd.f32 %v7593_v25, %v9497_v50  ;;  %v9558_v45 = vld [vmem:[#allocation51_spill] sm:$0xff] }
 0x446   : > { %v2947_v21 = vpop.f32.mrf.mxu0  ;;  %v7827_v39 = vpop.f32.mrf.mxu1  ;;  %v2936_v27 = vadd.f32 %v7725_v26, %v9557_v13  ;;  %v7858_v59 = vadd.f32 %v7606_v37, %v9497_v50  ;;  %v7862_v8 = vadd.f32 %v7624_v31, %v9500_v16  ;;  %v2938_v25 = vadd.f32 %v7750_v14, %v9552_v41  ;;  %v9559_v26 = vld [vmem:[#allocation32_spill] sm:$0xff]  ;;  %v7871_v50 = vld [vmem:[%s8975_s7 + $0x80] ss:$16 sps:$4 sm:$0xff]  }
 0x447   : > { %v2948_v57 = vadd.f32 %v2947_v21, %v9554_v58  ;;  %9555 = vst [vmem:[#allocation77_spill] sm:$0xff] %v7827_v39  ;;  %4120 = vmatmul.mubr.bf16.gmra.mxu0 %v7777_v24  ;;  %v3570_v42 = vmax.f32 %v2946_v3, 0.0  ;;  %v2282_v37 = vpop.permute.xlu0 %2281  ;;  %v9560_v16 = vld [vmem:[#allocation45_spill] sm:$0xff]  ;;  %v3569_v34 = vmax.f32 %v2944_v44, 0.0  ;;  %v2928_v3 = vadd.f32 %v7671_v23, %v9559_v26 }
 0x448   : > { %v2949_v38 = vpop.f32.mrf.mxu0  ;;  %4296 = vmatpush1.bf16.msra.mxu0 %v9556_v10  ;;  %4129 = vmatprep.mubr.bf16.mxu0 %v7789_v49  ;;  %v7853_v7 = vpop.f32.mrf.mxu1  ;;  %v3566_v10 = vmax.f32 %v2940_v4, 0.0  ;;  %v2926_v14 = vadd.f32 %v7648_v18, %v9560_v16  ;;  %v9561_v4 = vld [vmem:[#allocation24_spill] sm:$0xff]  ;;  %v2924_v31 = vadd.f32 %v7637_v61, %v9560_v16  ;;  %v3565_v18 = vmax.f32 %v2938_v25, 0.0  ;;  %v7886_v44 = vld [vmem:[%s8975_s7 + $0xa4] ss:$16 sps:$4 sm:$0xff]  }
 0x449   : > { %v2950_v22 = vadd.f32 %v2949_v38, %v9554_v58  ;;  %4297 = vmatprep.subr.bf16.mxu0 %v9558_v45  ;;  %v3573_v1 = vmax.f32 %v2948_v57, 0.0  ;;  %v2930_v38 = vadd.f32 %v7690_v11, %v9559_v26  ;;  %v2934_v57 = vadd.f32 %v7708_v35, %v9557_v13 }
 0x44a   : > { %v2953_v21 = vpop.f32.mrf.mxu0  ;;  %v3306_v45 = vpop.f32.mrf.mxu1 }
 0x44b   : > { %v3574_v43 = vmax.f32 %v2950_v22, 0.0  ;;  %v3562_v22 = vmax.f32 %v2936_v27, 0.0  ;;  %v2954_v47 = vadd.f32 %v2953_v21, %v2282_v37  ;;  %v3733_v41 = vpack.c.bf16 %v3573_v1, %v3569_v34 }
 0x44c   : > { %v2955_v11 = vpop.f32.mrf.mxu0  ;;  %4298 = vmatpush1.bf16.msra.mxu0 %v9561_v4  ;;  %v3308_v15 = vpop.f32.mrf.mxu1  ;;  %v3307_v39 = vadd.f32 %v3306_v45, %v2282_v37  ;;  %v3558_v4 = vmax.f32 %v2930_v38, 0.0  ;;  %v3561_v21 = vmax.f32 %v2934_v57, 0.0  ;;  %v3557_v1 = vmax.f32 %v2928_v3, 0.0 }
 0x44d   : > { %v3734_v56 = vpack.c.bf16 %v3574_v43, %v3570_v42  ;;  %4299 = vmatprep.subr.bf16.mxu0 %v3704_v5  ;;  %v3730_v23 = vpack.c.bf16 %v3566_v10, %v3562_v22  ;;  %v2956_v27 = vadd.f32 %v2955_v11, %v2282_v37  ;;  %v3554_v5 = vmax.f32 %v2926_v14, 0.0 }
 0x44e   : > { %v2957_v35 = vpop.f32.mrf.mxu0  ;;  %v3310_v42 = vpop.f32.mrf.mxu1  ;;  %v3309_v61 = vadd.f32 %v3308_v15, %v2282_v37  ;;  %v3577_v45 = vmax.f32 %v2954_v47, 0.0  ;;  %v3729_v10 = vpack.c.bf16 %v3565_v18, %v3561_v21  ;;  %v3579_v11 = vmax.f32 %v3307_v39, 0.0  ;;  %v7897_v47 = vld [vmem:[%s8975_s7 + $0xa0] ss:$16 sps:$4 sm:$0xff]  }
 0x44f   : > { %v2958_v43 = vadd.f32 %v2957_v35, %v2287_v46  ;;  %4130 = vmatmul.mubr.bf16.gmra.mxu0 %v7871_v50  ;;  %4170 = vmatprep.subr.bf16.mxu1 %v3734_v56  ;;  %v3311_v25 = vadd.f32 %v3310_v42, %v2287_v46  ;;  %v3726_v15 = vpack.c.bf16 %v3558_v4, %v3554_v5  ;;  %v3578_v37 = vmax.f32 %v2956_v27, 0.0  ;;  %v9563_v4 = vld [vmem:[#allocation71_spill] sm:$0xff] }
 0x450   : > { %v2959_v34 = vpop.f32.mrf.mxu0  ;;  %4171 = vmatpush1.bf16.msra.mxu1 %v3733_v41  ;;  %4300 = vmatpush2.bf16.msra.mxu0 %v7797_v53  ;;  %v3312_v38 = vpop.f32.mrf.mxu1  ;;  %v3553_v3 = vmax.f32 %v2924_v31, 0.0  ;;  %v3549_v31 = vmax.f32 %v7862_v8, 0.0  ;;  %v9565_v21 = vmax.f32 %v7837_v55, 0.0 }
 0x451   : > { %v3581_v16 = vmax.f32 %v2958_v43, 0.0  ;;  %v2960_v26 = vadd.f32 %v2959_v34, %v2287_v46  ;;  %4172 = vmatprep.subr.bf16.mxu1 %v3730_v23  ;;  %4301 = vmatprep.subr.bf16.mxu0 %v7802_v63  ;;  %v3583_v22 = vmax.f32 %v3311_v25, 0.0  ;;  %v3313_v56 = vadd.f32 %v3312_v38, %v2287_v46  ;;  %v9566_v25 = vld [vmem:[#allocation73_spill] sm:$0xff] }
 0x452   : > { %v2963_v14 = vpop.f32.mrf.mxu0  ;;  %4139 = vmatprep.mubr.bf16.mxu0 %v7886_v44  ;;  %v3316_v57 = vpop.f32.mrf.mxu1  ;;  %v3580_v63 = vmax.f32 %v3309_v61, 0.0  ;;  %v3725_v43 = vpack.c.bf16 %v3557_v1, %v3553_v3  ;;  %v3538_v1 = vmax.f32 %v7833_v20, 0.0 }
 0x453   : > { %v7892_v41 = vpack.c.bf16 %v3581_v16, %v3577_v45  ;;  %v3582_v53 = vmax.f32 %v2960_v26, 0.0  ;;  %v7899_v18 = vpack.c.bf16 %v3583_v22, %v3579_v11  ;;  %v3584_v39 = vmax.f32 %v3313_v56, 0.0 }
 0x454   : > { %v2965_v46 = vpop.f32.mrf.mxu0  ;;  %4173 = vmatpush1.bf16.msra.mxu1 %v3729_v10  ;;  %4302 = vmatpush2.bf16.msra.mxu0 %v7795_v60  ;;  %v2908_v16 = vadd.f32 %v7577_v0, %v9483_v40  ;;  %v3546_v26 = vmax.f32 %v7858_v59, 0.0  ;;  %v2964_v23 = vadd.f32 %v2963_v14, %v9563_v4  ;;  %v3318_v27 = vpop.f32.mrf.mxu1  ;;  %v3317_v60 = vadd.f32 %v3316_v57, %v9563_v4  ;;  %v7916_v0 = vld [vmem:[%s8975_s7 + $0xc4] ss:$16 sps:$4 sm:$0xff]  }
 0x455   : > { %9562 = vst [vmem:[#allocation79_spill] sm:$0xff] %v7899_v18  ;;  %v7905_v35 = vpack.c.bf16 %v3582_v53, %v3578_v37  ;;  %4174 = vmatprep.subr.bf16.mxu1 %v3726_v15  ;;  %4303 = vmatprep.subr.bf16.mxu0 %v7791_v32  ;;  %v7910_v42 = vpack.c.bf16 %v3584_v39, %v3580_v63  ;;  %v3542_v59 = vmax.f32 %v7844_v36, 0.0  ;;  %v3545_v45 = vmax.f32 %v7848_v28, 0.0 }
 0x456   : > { %v2967_v5 = vpop.f32.mrf.mxu0  ;;  %v3722_v61 = vpack.c.bf16 %v9565_v21, %v3546_v26  ;;  %v2966_v32 = vadd.f32 %v2965_v46, %v9563_v4  ;;  %v3320_v34 = vpop.f32.mrf.mxu1  ;;  %v3319_v38 = vadd.f32 %v3318_v27, %v9563_v4  ;;  %v3541_v55 = vmax.f32 %v2908_v16, 0.0  ;;  %v7940_v46 = vld [vmem:[%s8975_s7 + $0xc0] ss:$16 sps:$4 sm:$0xff]  }
 0x457   : > { %9564 = vst [vmem:[#allocation87_spill] sm:$0xff] %v7910_v42  ;;  %v2968_v8 = vadd.f32 %v2967_v5, %v9566_v25  ;;  %4140 = vmatmul.mubr.bf16.gmra.mxu0 %v7897_v47  ;;  %v3321_v10 = vadd.f32 %v3320_v34, %v9566_v25  ;;  %v3585_v36 = vmax.f32 %v2964_v23, 0.0  ;;  %v3721_v20 = vpack.c.bf16 %v3549_v31, %v3545_v45  ;;  %v9571_v5 = vld [vmem:[#allocation104_spill] sm:$0xff]  ;;  %v9575_v34 = vld [vmem:[#allocation10_spill] sm:$0xff] }
 0x458   : > { %v2969_v11 = vpop.f32.mrf.mxu0  ;;  %4175 = vmatpush1.bf16.msra.mxu1 %v3725_v43  ;;  %4304 = vmatpush2.bf16.msra.mxu0 %v7779_v30  ;;  %v3322_v14 = vpop.f32.mrf.mxu1  ;;  %v3587_v15 = vmax.f32 %v3317_v60, 0.0  ;;  %v3586_v57 = vmax.f32 %v2966_v32, 0.0  ;;  %v3718_v39 = vpack.c.bf16 %v3542_v59, %v3538_v1  ;;  %v3588_v16 = vmax.f32 %v3319_v38, 0.0  ;;  %v9570_v60 = vld [vmem:[#allocation21_spill] sm:$0xff]  ;;  %v9576_v1 = vld [vmem:[#allocation20_spill] sm:$0xff]  ;;  %v9611_v42 = vld [vmem:[#allocation14_spill] sm:$0xff] }
 0x459   : > { %v3589_v22 = vmax.f32 %v2968_v8, 0.0  ;;  %v2970_v56 = vadd.f32 %v2969_v11, %v9566_v25  ;;  %4176 = vmatprep.subr.bf16.mxu1 %v3722_v61  ;;  %4305 = vmatprep.subr.bf16.mxu0 %v7793_v29  ;;  %v3591_v28 = vmax.f32 %v3321_v10, 0.0  ;;  %v3323_v37 = vadd.f32 %v3322_v14, %v9566_v25  ;;  %v9578_v11 = vld [vmem:[#allocation62_spill] sm:$0xff] }
 0x45a   : > { %v7932_v53 = vpop.f32.mrf.mxu0  ;;  %4149 = vmatprep.mubr.bf16.mxu0 %v7916_v0  ;;  %v3326_v63 = vpop.f32.mrf.mxu1  ;;  %v3537_v29 = vmax.f32 %v7822_v54, 0.0  ;;  %v9568_v27 = vmax.f32 %v7675_v9, 0.0  ;;  %v9569_v31 = vmax.f32 %v7681_v17, 0.0  ;;  %v2886_v59 = vadd.f32 %v9571_v5, %v9570_v60  ;;  %v9574_v9 = vld [vmem:[#allocation63_spill] sm:$0xff]  ;;  %v9588_v5 = vld [vmem:[#allocation60_spill] sm:$0xff] }
 0x45b   : > { %v7935_v30 = vpack.c.bf16 %v3589_v22, %v3585_v36  ;;  %v3590_v3 = vmax.f32 %v2970_v56, 0.0  ;;  %v7943_v26 = vpack.c.bf16 %v3591_v28, %v3587_v15  ;;  %v3592_v4 = vmax.f32 %v3323_v37, 0.0  ;;  %v9580_v36 = vld [vmem:[#allocation64_spill] sm:$0xff] }
 0x45c   : > { %v7945_v23 = vpop.f32.mrf.mxu0  ;;  %4177 = vmatpush1.bf16.msra.mxu1 %v3721_v20  ;;  %4306 = vmatpush2.bf16.msra.mxu0 %v7770_v48  ;;  %v3687_v43 = vpack.c.bf16 %v9569_v31, %v9568_v27  ;;  %v3530_v21 = vmax.f32 %v7814_v52, 0.0  ;;  %v7957_v61 = vpop.f32.mrf.mxu1  ;;  %v3533_v32 = vmax.f32 %v7818_v12, 0.0  ;;  %v3717_v48 = vpack.c.bf16 %v3541_v55, %v3537_v29  ;;  %v7969_v52 = vld [vmem:[%s8975_s7 + $0xe4] ss:$16 sps:$4 sm:$0xff]   ;;  %v9584_v37 = vld [vmem:[#allocation76_spill] sm:$0xff] }
 0x45d   : > { %9567 = vst [vmem:[#allocation88_spill] sm:$0xff] %v7943_v26  ;;  %v7955_v54 = vpack.c.bf16 %v3590_v3, %v3586_v57  ;;  %9572 = vst [vmem:[#allocation91_spill] sm:$0xff] %v7957_v61  ;;  %4178 = vmatprep.subr.bf16.mxu1 %v3718_v39  ;;  %4307 = vmatprep.subr.bf16.mxu0 %v7765_v51  ;;  %v7961_v25 = vpack.c.bf16 %v3592_v4, %v3588_v16  ;;  %v3526_v38 = vmax.f32 %v7806_v6, 0.0  ;;  %v9582_v20 = vld [vmem:[#allocation65_spill] sm:$0xff]  ;;  %v9583_v6 = vld [vmem:[#allocation75_spill] sm:$0xff] }
 0x45e   : > { %v3327_v17 = vadd.f32 %v3326_v63, %v9574_v9  ;;  %v7964_v8 = vpop.f32.mrf.mxu0  ;;  %v2880_v45 = vadd.f32 %v9576_v1, %v9575_v34  ;;  %v3330_v51 = vpop.f32.mrf.mxu1  ;;  %v9577_v12 = vmax.f32 %v7783_v62, 0.0  ;;  %v9579_v55 = vmax.f32 %v9578_v11, 0.0  ;;  %v9585_v3 = vld [vmem:[#allocation61_spill] sm:$0xff]  ;;  %v9586_v62 = vld [vmem:[#allocation16_spill] sm:$0xff]  ;;  %v9589_v1 = vld [vmem:[#allocation67_spill] sm:$0xff] }
 0x45f   : > { %9573 = vst [vmem:[#allocation92_spill] sm:$0xff] %v7961_v25  ;;  %4150 = vmatmul.mubr.bf16.gmra.mxu0 %v7940_v46  ;;  %v9581_v22 = vmax.f32 %v9580_v36, 0.0  ;;  %v3529_v14 = vmax.f32 %v7810_v33, 0.0  ;;  %v3331_v15 = vadd.f32 %v3330_v51, %v9582_v20  ;;  %v3149_v57 = vadd.f32 %v9584_v37, %v9583_v6  ;;  %v9587_v39 = vld [vmem:[#allocation101_spill] sm:$0xff] }
 0x460   : > { %v3714_v10 = vpack.c.bf16 %v9577_v12, %v3530_v21  ;;  %v7983_v28 = vpop.f32.mrf.mxu0  ;;  %4179 = vmatpush1.bf16.msra.mxu1 %v3717_v48  ;;  %4308 = vmatpush2.bf16.msra.mxu0 %v3687_v43  ;;  %v3460_v63 = vmax.f32 %v9585_v3, 0.0  ;;  %v2876_v29 = vadd.f32 %v9587_v39, %v9586_v62  ;;  %v3522_v16 = vmax.f32 %v2886_v59, 0.0  ;;  %v7999_v59 = vld [vmem:[%s8975_s7 + $0xe0] ss:$16 sps:$4 sm:$0xff]   ;;  %v5416_v6 = vld [vmem:[%s8975_s7 + $0x4] ss:$16 sps:$4 sm:$0xff]  }
 0x461   : > { %v3684_v56 = vpack.c.bf16 %v9581_v22, %v9579_v55  ;;  %v3713_v4 = vpack.c.bf16 %v3533_v32, %v3529_v14  ;;  %v3595_v27 = vmax.f32 %v3327_v17, 0.0  ;;  %v3599_v33 = vmax.f32 %v3331_v15, 0.0  ;;  %4159 = vmatprep.mubr.bf16.mxu0 %v7969_v52  ;;  %v9592_v17 = vld [vmem:[#allocation81_spill] sm:$0xff]  ;;  %v9594_v14 = vld [vmem:[#allocation80_spill] sm:$0xff]  ;;  %v9596_v3 = vld [vmem:[#allocation78_spill] sm:$0xff] }
 0x462   : > { %4180 = vmatprep.subr.bf16.mxu1 %v3714_v10  ;;  %v7990_v31 = vpop.f32.mrf.mxu0  ;;  %v3456_v43 = vmax.f32 %v9588_v5, 0.0  ;;  %v3518_v21 = vmax.f32 %v2880_v45, 0.0  ;;  %v3710_v48 = vpack.c.bf16 %v3526_v38, %v3522_v16  ;;  %v9590_v51 = vmax.f32 %v9589_v1, 0.0  ;;  %v9597_v39 = vld [vmem:[#allocation70_spill] sm:$0xff] }
 0x463   : > { %4309 = vmatprep.subr.bf16.mxu0 %v3684_v56  ;;  %v8001_v10 = vpack.c.bf16 %v3599_v33, %v3595_v27  ;;  %v3452_v11 = vmax.f32 %v3149_v57, 0.0  ;;  %v3514_v55 = vmax.f32 %v2876_v29, 0.0  ;;  %v9593_v56 = vld [vmem:[#allocation106_spill] sm:$0xff]  ;;  %v8025_v29 = vpop.f32.mrf.mxu1 }
 0x464   : > { %v3680_v12 = vpack.c.bf16 %v9590_v51, %v3460_v63  ;;  %v8003_v32 = vpop.f32.mrf.mxu0  ;;  %4181 = vmatpush1.bf16.msra.mxu1 %v3713_v4  ;;  %4310 = vmatpush2.bf16.msra.mxu0 %v9592_v17  ;;  %v9595_v57 = vld [vmem:[#allocation22_spill] sm:$0xff]  ;;  %9598 = vst [vmem:[#allocation47_spill] sm:$0xff] %v8025_v29  ;;  %v9599_v4 = vld [vmem:[#allocation19_spill] sm:$0xff]  ;;  %v9603_v51 = vld [vmem:[#allocation29_spill] sm:$0xff] }
 0x465   : > { %9591 = vst [vmem:[#allocation59_spill] sm:$0xff] %v8001_v10  ;;  %4182 = vmatprep.subr.bf16.mxu1 %v3710_v48  ;;  %v3706_v38 = vpack.c.bf16 %v3518_v21, %v3514_v55  ;;  %v3676_v36 = vpack.c.bf16 %v3456_v43, %v3452_v11  ;;  %v8028_v33 = vpop.f32.mrf.mxu1  ;;  %v9601_v21 = vld [vmem:[#allocation69_spill] sm:$0xff] }
 0x466   : > { %4311 = vmatprep.subr.bf16.mxu0 %v3680_v12  ;;  %v8006_v45 = vpop.f32.mrf.mxu0  ;;  %9600 = vst [vmem:[#allocation95_spill] sm:$0xff] %v8028_v33 }
 0x467   : > { %4160 = vmatmul.mubr.bf16.gmra.mxu0 %v7999_v59  ;;  %v8031_v48 = vpop.f32.mrf.mxu1 }
 0x468   : > { %v8009_v22 = vpop.f32.mrf.mxu0  ;;  %4183 = vmatpush1.bf16.msra.mxu1 %v9593_v56  ;;  %4312 = vmatpush2.bf16.msra.mxu0 %v9594_v14  ;;  %9602 = vst [vmem:[#allocation96_spill] sm:$0xff] %v8031_v48  ;;  %v9607_v14 = vld [vmem:[#allocation26_spill] sm:$0xff] }
 0x469   : > { %4184 = vmatprep.subr.bf16.mxu1 %v3706_v38  ;;  %4313 = vmatprep.subr.bf16.mxu0 %v3676_v36  ;;  %v8034_v17 = vpop.f32.mrf.mxu1  ;;  %v9605_v38 = vld [vmem:[#allocation58_spill] sm:$0xff] }
 0x46a   : > { %v8013_v15 = vpop.f32.mrf.mxu0  ;;  %4315 = vmatprep.mubr.bf16.mxu0 %v5416_v6  ;;  %9604 = vst [vmem:[#allocation36_spill] sm:$0xff] %v8034_v17  ;;  %v9614_v17 = vld [vmem:[#allocation55_spill] sm:$0xff] }
 0x46b   : > { %v8037_v36 = vpop.f32.mrf.mxu1 }
 0x46c   : > { %v8018_v37 = vpop.f32.mrf.mxu0  ;;  %4185 = vmatpush1.bf16.msra.mxu1 %v9595_v57  ;;  %4314 = vmatpush2.bf16.msra.mxu0 %v9596_v3  ;;  %9606 = vst [vmem:[#allocation99_spill] sm:$0xff] %v8037_v36 }
 0x46d   : > { %v8040_v57 = vpop.f32.mrf.mxu1 }
 0x46e   : > { %v8022_v63 = vpop.f32.mrf.mxu0  ;;  %9608 = vst [vmem:[#allocation100_spill] sm:$0xff] %v8040_v57 }
 0x46f   : > { %4316 = vmatmul.mubr.bf16.vlgmr.msra.gmra.mxu0 %v9597_v39  ;;  %v8046_v25 = vpop.f32.mrf.mxu1 }
 0x470   : > { %v2999_v16 = vpop.f32.mrf.mxu0  ;;  %4325 = vmatprep.mubr.bf16.mxu0 %v9599_v4  ;;  %v9609_v4 = vld [vmem:[#allocation53_spill] sm:$0xff]  ;;  %9612 = vst [vmem:[#allocation17_spill] sm:$0xff] %v8046_v25 }
 0x471   : > { %v9615_v25 = vld [vmem:[#allocation25_spill] sm:$0xff] }
 0x472   : > { %v3003_v27 = vpop.f32.mrf.mxu0 }
 0x474   : > { %v3005_v5 = vpop.f32.mrf.mxu0 }
 0x476   : > { %v3007_v43 = vpop.f32.mrf.mxu0 }
 0x477   : > { %4326 = vmatmul.mubr.bf16.gmra.mxu0 %v9601_v21 }
 0x478   : > { %v3009_v1 = vpop.f32.mrf.mxu0  ;;  %4335 = vmatprep.mubr.bf16.mxu0 %v9603_v51  ;;  %v9610_v51 = vld [vmem:[#allocation30_spill] sm:$0xff] }
 0x47a   : > { %v3013_v12 = vpop.f32.mrf.mxu0 }
 0x47c   : > { %v3015_v11 = vpop.f32.mrf.mxu0 }
 0x47e   : > { %v3017_v55 = vpop.f32.mrf.mxu0 }
 0x47f   : > { %4336 = vmatmul.mubr.bf16.gmra.mxu0 %v9605_v38  ;;  %v3018_v29 = vadd.f32 %v3017_v55, %v9609_v4  ;;  %v9616_v55 = vld [vmem:[#allocation15_spill] sm:$0xff] }
 0x480   : > { %v3019_v56 = vpop.f32.mrf.mxu0  ;;  %4345 = vmatprep.mubr.bf16.mxu0 %v9607_v14  ;;  %v9613_v14 = vld [vmem:[#allocation48_spill] sm:$0xff] }
 0x481   : > { %v3020_v21 = vadd.f32 %v3019_v56, %v9609_v4  ;;  %v3016_v61 = vadd.f32 %v3015_v11, %v9613_v14  ;;  %v3014_v36 = vadd.f32 %v3013_v12, %v9613_v14  ;;  %v3008_v11 = vadd.f32 %v3007_v43, %v9614_v17 }
 0x482   : > { %v3023_v6 = vpop.f32.mrf.mxu0 }
 0x483   : > { %v3024_v38 = vadd.f32 %v3023_v6, %v9610_v51  ;;  %v3630_v48 = vmax.f32 %v3020_v21, 0.0  ;;  %v3625_v12 = vmax.f32 %v3014_v36, 0.0  ;;  %v3621_v43 = vmax.f32 %v3008_v11, 0.0 }
 0x484   : > { %v3025_v3 = vpop.f32.mrf.mxu0 }
 0x485   : > { %v3026_v18 = vadd.f32 %v3025_v3, %v9610_v51  ;;  %v3010_v3 = vadd.f32 %v3009_v1, %v9614_v17  ;;  %v3633_v6 = vmax.f32 %v3024_v38, 0.0  ;;  %v3006_v51 = vadd.f32 %v3005_v5, %v9615_v25 }
 0x486   : > { %v3027_v39 = vpop.f32.mrf.mxu0 }
 0x487   : > { %v3028_v26 = vadd.f32 %v3027_v39, %v9611_v42  ;;  %4346 = vmatmul.mubr.bf16.gmra.mxu0 %v7777_v24  ;;  %v3634_v39 = vmax.f32 %v3026_v18, 0.0  ;;  %v8054_v24 = vpop.f32.mrf.mxu1  ;;  %v3622_v4 = vmax.f32 %v3010_v3, 0.0 }
 0x488   : > { %v3029_v10 = vpop.f32.mrf.mxu0  ;;  %4355 = vmatprep.mubr.bf16.mxu0 %v7789_v49  ;;  %v3626_v49 = vmax.f32 %v3016_v61, 0.0  ;;  %v9617_v61 = vld [vmem:[#allocation23_spill] sm:$0xff] }
 0x489   : > { %v3030_v33 = vadd.f32 %v3029_v10, %v9611_v42  ;;  %v3637_v56 = vmax.f32 %v3028_v26, 0.0  ;;  %v3629_v10 = vmax.f32 %v3018_v29, 0.0  ;;  %v3000_v26 = vadd.f32 %v2999_v16, %v9616_v55  ;;  %v8061_v18 = vpop.f32.mrf.mxu1 }
 0x48a   : > { %v3762_v1 = vpack.c.bf16 %v3630_v48, %v3626_v49  ;;  %v2996_v5 = vadd.f32 %v8018_v37, %v9617_v61  ;;  %v3618_v29 = vmax.f32 %v3006_v51, 0.0  ;;  %v2998_v16 = vadd.f32 %v8022_v63, %v9616_v55  ;;  %v9618_v48 = vld [vmem:[#allocation50_spill] sm:$0xff]  ;;  %v9619_v37 = vld [vmem:[#allocation56_spill] sm:$0xff] }
 0x48b   : > { %v3638_v57 = vmax.f32 %v3030_v33, 0.0  ;;  %v3765_v42 = vpack.c.bf16 %v3637_v56, %v3633_v6  ;;  %v3004_v33 = vadd.f32 %v3003_v27, %v9615_v25  ;;  %v2986_v36 = vadd.f32 %v8003_v32, %v9619_v37 }
 0x48c   : > { %v3758_v21 = vpack.c.bf16 %v3622_v4, %v3618_v29  ;;  %v3610_v51 = vmax.f32 %v2996_v5, 0.0  ;;  %v2988_v63 = vadd.f32 %v8006_v45, %v9618_v48  ;;  %v3613_v38 = vmax.f32 %v2998_v16, 0.0 }
 0x48d   : > { %v3766_v62 = vpack.c.bf16 %v3638_v57, %v3634_v39  ;;  %v3614_v57 = vmax.f32 %v3000_v26, 0.0  ;;  %v3617_v27 = vmax.f32 %v3004_v33, 0.0  ;;  %v2976_v32 = vadd.f32 %v7945_v23, %v9574_v9 }
 0x48e   : > { %v3602_v45 = vmax.f32 %v2986_v36, 0.0  ;;  %v3605_v49 = vmax.f32 %v2988_v63, 0.0 }
 0x48f   : > { %4186 = vmatprep.subr.bf16.mxu1 %v3766_v62  ;;  %4356 = vmatmul.mubr.bf16.gmra.mxu0 %v7871_v50  ;;  %v3761_v62 = vpack.c.bf16 %v3629_v10, %v3625_v12  ;;  %v2990_v50 = vadd.f32 %v8009_v22, %v9618_v48  ;;  %v3757_v56 = vpack.c.bf16 %v3621_v43, %v3617_v27 }
 0x490   : > { %4187 = vmatpush2.bf16.msra.mxu1 %v3765_v42  ;;  %4365 = vmatprep.mubr.bf16.mxu0 %v7886_v44  ;;  %v2994_v42 = vadd.f32 %v8013_v15, %v9617_v61  ;;  %v8073_v44 = vpop.f32.mrf.mxu1  ;;  %v2980_v22 = vadd.f32 %v7983_v28, %v9582_v20  ;;  %v3754_v3 = vpack.c.bf16 %v3614_v57, %v3610_v51  ;;  %v9622_v57 = vld [vmem:[#allocation84_spill] sm:$0xff] }
 0x491   : > { %4188 = vmatprep.subr.bf16.mxu1 %v3762_v1  ;;  %v3606_v4 = vmax.f32 %v2990_v50, 0.0  ;;  %v2984_v15 = vadd.f32 %v7990_v31, %v9619_v37  ;;  %v2978_v28 = vadd.f32 %v7964_v8, %v9582_v20  ;;  %v2974_v31 = vadd.f32 %v7932_v53, %v9574_v9  ;;  %v9621_v50 = vld [vmem:[#allocation12_spill] sm:$0xff] }
 0x492   : > { %v3609_v39 = vmax.f32 %v2994_v42, 0.0  ;;  %v8084_v6 = vpop.f32.mrf.mxu1  ;;  %v3303_v53 = vadd.f32 %v7853_v7, %v9554_v58  ;;  %v3299_v43 = vadd.f32 %v7799_v19, %v9553_v2  ;;  %v9623_v42 = vld [vmem:[#allocation85_spill] sm:$0xff]  ;;  %v9624_v19 = vld [vmem:[#allocation82_spill] sm:$0xff] }
 0x493   : > { %v3750_v10 = vpack.c.bf16 %v3606_v4, %v3602_v45  ;;  %v3601_v26 = vmax.f32 %v2984_v15, 0.0  ;;  %v3597_v33 = vmax.f32 %v2978_v28, 0.0  ;;  %v3593_v5 = vmax.f32 %v2974_v31, 0.0  ;;  %v9630_v45 = vld [vmem:[#allocation66_spill] sm:$0xff] }
 0x494   : > { %4189 = vmatpush2.bf16.msra.mxu1 %v3761_v62  ;;  %v3753_v11 = vpack.c.bf16 %v3613_v38, %v3609_v39  ;;  %v8093_v1 = vpop.f32.mrf.mxu1  ;;  %v3297_v7 = vadd.f32 %v9623_v42, %v9553_v2  ;;  %v3289_v36 = vadd.f32 %v9624_v19, %v9557_v13  ;;  %v9626_v38 = vld [vmem:[#allocation32_spill] sm:$0xff]  ;;  %v9635_v42 = vld [vmem:[#allocation74_spill] sm:$0xff] }
 0x495   : > { %4190 = vmatprep.subr.bf16.mxu1 %v3758_v21  ;;  %v3749_v23 = vpack.c.bf16 %v3605_v49, %v3601_v26  ;;  %v3745_v29 = vpack.c.bf16 %v3597_v33, %v3593_v5  ;;  %v3293_v21 = vadd.f32 %v9622_v57, %v9621_v50  ;;  %v8126_v2 = vld [vmem:[%s8975_s7 + $0x8] ss:$16 sps:$4 sm:$0xff]  }
 0x496   : > { %v8096_v8 = vpop.f32.mrf.mxu1  ;;  %v3571_v15 = vmax.f32 %v3297_v7, 0.0  ;;  %v3564_v49 = vmax.f32 %v3289_v36, 0.0  ;;  %v9637_v36 = vld [vmem:[#allocation109_spill] sm:$0xff] }
 0x497   : > { %4366 = vmatmul.mubr.bf16.gmra.mxu0 %v7897_v47  ;;  %v3598_v47 = vmax.f32 %v2980_v22, 0.0  ;;  %v3568_v22 = vmax.f32 %v3293_v21, 0.0  ;;  %v8156_v21 = vld [vmem:[%s8975_s7 + $0x4c] ss:$16 sps:$4 sm:$0xff]  }
 0x498   : > { %4191 = vmatpush2.bf16.msra.mxu1 %v3757_v56  ;;  %4375 = vmatprep.mubr.bf16.mxu0 %v7916_v0  ;;  %v3594_v0 = vmax.f32 %v2976_v32, 0.0  ;;  %v8101_v16 = vpop.f32.mrf.mxu1  ;;  %v9627_v56 = vld [vmem:[#allocation13_spill] sm:$0xff] }
 0x499   : > { %4192 = vmatprep.subr.bf16.mxu1 %v3754_v3  ;;  %v9629_v32 = vld [vmem:[#allocation45_spill] sm:$0xff]  ;;  %v3732_v26 = vpack.c.bf16 %v3568_v22, %v3564_v49  ;;  %v9643_v49 = vld [vmem:[#allocation42_spill] sm:$0xff] }
 0x49a   : > { %v3746_v12 = vpack.c.bf16 %v3598_v47, %v3594_v0  ;;  %v8113_v27 = vpop.f32.mrf.mxu1  ;;  %v3279_v28 = vadd.f32 %v9630_v45, %v9629_v32  ;;  %v9640_v22 = vld [vmem:[#allocation57_spill] sm:$0xff]  ;;  %v8172_v45 = vld [vmem:[%s8975_s7 + $0x48] ss:$16 sps:$4 sm:$0xff]  }
 0x49c   : > { %4193 = vmatpush2.bf16.msra.mxu1 %v3753_v11  ;;  %v8130_v39 = vpop.f32.mrf.mxu1  ;;  %v9631_v11 = vld [vmem:[#allocation43_spill] sm:$0xff] }
 0x49d   : > { %4194 = vmatprep.subr.bf16.mxu1 %v3750_v10  ;;  %v3281_v47 = vadd.f32 %v9631_v11, %v9626_v38  ;;  %v8178_v11 = vld [vmem:[%s8975_s7 + $0x6c] ss:$16 sps:$4 sm:$0xff]  }
 0x49f   : > { %4376 = vmatmul.mubr.bf16.gmra.mxu0 %v7940_v46  ;;  %v9620_v46 = vld [vmem:[#allocation77_spill] sm:$0xff]  ;;  %v3559_v5 = vmax.f32 %v3281_v47, 0.0  ;;  %v9644_v47 = vld [vmem:[#allocation28_spill] sm:$0xff] }
 0x4a0   : > { %4195 = vmatpush2.bf16.msra.mxu1 %v3749_v23  ;;  %4385 = vmatprep.mubr.bf16.mxu0 %v7969_v52  ;;  %v3301_v62 = vadd.f32 %v9620_v46, %v9554_v58  ;;  %v3576_v52 = vmax.f32 %v3303_v53, 0.0  ;;  %v9625_v58 = vld [vmem:[#allocation83_spill] sm:$0xff]  ;;  %v3372_v23 = vpop.f32.mrf.mxu1  ;;  %v9633_v53 = vld [vmem:[#allocation37_spill] sm:$0xff] }
 0x4a1   : > { %4196 = vmatprep.subr.bf16.mxu1 %v3746_v12  ;;  %v3291_v51 = vadd.f32 %v9625_v58, %v9621_v50  ;;  %v3556_v12 = vmax.f32 %v3279_v28, 0.0 }
 0x4a2   : > { %v3575_v63 = vmax.f32 %v3301_v62, 0.0  ;;  %v8151_v62 = vld [vmem:[%s8975_s7 + $0x28] ss:$16 sps:$4 sm:$0xff]   ;;  %v3376_v57 = vpop.f32.mrf.mxu1 }
 0x4a3   : > { %v3567_v10 = vmax.f32 %v3291_v51, 0.0 }
 0x4a4   : > { %4197 = vmatpush2.bf16.msra.mxu1 %v3745_v29  ;;  %v3378_v51 = vpop.f32.mrf.mxu1 }
 0x4a5   : > { %4198 = vmatprep.subr.bf16.mxu1 %v7955_v54  ;;  %v3572_v54 = vmax.f32 %v3299_v43, 0.0  ;;  %v3263_v43 = vadd.f32 %v9633_v53, %v9483_v40  ;;  %v9636_v40 = vld [vmem:[#allocation39_spill] sm:$0xff] }
 0x4a6   : > { %v3380_v28 = vpop.f32.mrf.mxu1 }
 0x4a7   : > { %4386 = vmatmul.mubr.bf16.gmra.mxu0 %v7999_v59  ;;  %v3283_v59 = vadd.f32 %v9627_v56, %v9626_v38  ;;  %v3736_v4 = vpack.c.bf16 %v3576_v52, %v3572_v54  ;;  %v9634_v52 = vld [vmem:[#allocation41_spill] sm:$0xff]  ;;  %v3253_v54 = vadd.f32 %v9637_v36, %v9636_v40  ;;  %v3544_v58 = vmax.f32 %v3263_v43, 0.0  ;;  %v9639_v38 = vld [vmem:[#allocation108_spill] sm:$0xff]  ;;  %v9651_v40 = vld [vmem:[#allocation30_spill] sm:$0xff] }
 0x4a8   : > { %4199 = vmatpush2.bf16.msra.mxu1 %v7935_v30  ;;  %v9628_v30 = vld [vmem:[#allocation54_spill] sm:$0xff]  ;;  %v3259_v7 = vadd.f32 %v9635_v42, %v9634_v52  ;;  %v3379_v36 = vadd.f32 %v3378_v51, %v9651_v40 }
 0x4a9   : > { %4200 = vmatprep.subr.bf16.mxu1 %v7905_v35  ;;  %v3287_v3 = vadd.f32 %v9628_v30, %v9557_v13  ;;  %v8136_v35 = vld [vmem:[%s8975_s7 + $0x2c] ss:$16 sps:$4 sm:$0xff]   ;;  %v3735_v13 = vpack.c.bf16 %v3575_v63, %v3571_v15  ;;  %v3560_v31 = vmax.f32 %v3283_v59, 0.0  ;;  %v9642_v30 = vld [vmem:[#allocation105_spill] sm:$0xff]  ;;  %v3536_v15 = vmax.f32 %v3253_v54, 0.0 }
 0x4aa   : > { %v9638_v63 = vld [vmem:[#allocation40_spill] sm:$0xff]  ;;  %v3540_v59 = vmax.f32 %v3259_v7, 0.0  ;;  %v9650_v42 = vld [vmem:[#allocation38_spill] sm:$0xff] }
 0x4ab   : > { %v3563_v33 = vmax.f32 %v3287_v3, 0.0  ;;  %v3728_v46 = vpack.c.bf16 %v3560_v31, %v3556_v12  ;;  %v3249_v56 = vadd.f32 %v9639_v38, %v9638_v63  ;;  %v9645_v31 = vld [vmem:[#allocation34_spill] sm:$0xff]  ;;  %v9646_v12 = vld [vmem:[#allocation72_spill] sm:$0xff] }
 0x4ac   : > { %4201 = vmatpush2.bf16.msra.mxu1 %v7892_v41  ;;  %v9632_v41 = vld [vmem:[#allocation68_spill] sm:$0xff] }
 0x4ad   : > { %4396 = vmatprep.subr.bf16.mxu1 %v3736_v4  ;;  %v3277_v0 = vadd.f32 %v9632_v41, %v9629_v32  ;;  %v3731_v29 = vpack.c.bf16 %v3567_v10, %v3563_v33  ;;  %v9641_v4 = vld [vmem:[#allocation18_spill] sm:$0xff]  ;;  %v3720_v32 = vpack.c.bf16 %v3544_v58, %v3540_v59  ;;  %v3239_v10 = vadd.f32 %v9644_v47, %v9570_v60  ;;  %v3382_v33 = vpop.f32.mrf.mxu1  ;;  %v9652_v58 = vld [vmem:[#allocation53_spill] sm:$0xff] }
 0x4ae   : > { %v3243_v3 = vadd.f32 %v9642_v30, %v9641_v4  ;;  %v8199_v7 = vld [vmem:[%s8975_s7 + $0x8c] ss:$16 sps:$4 sm:$0xff]   ;;  %v3373_v63 = vadd.f32 %v3372_v23, %v9652_v58  ;;  %v3377_v59 = vadd.f32 %v3376_v57, %v9651_v40  ;;  %v3369_v4 = vadd.f32 %v8113_v27, %v9613_v14  ;;  %v8217_v57 = vld [vmem:[%s8975_s7 + $0x88] ss:$16 sps:$4 sm:$0xff]  }
 0x4af   : > { %4203 = vmatmul.mubr.bf16.vlgmr.msra.gmra.mxu1 %v8126_v2  ;;  %v3555_v50 = vmax.f32 %v3277_v0, 0.0  ;;  %v3524_v43 = vmax.f32 %v3239_v10, 0.0  ;;  %v3636_v30 = vmax.f32 %v3379_v36, 0.0  ;;  %v3371_v51 = vadd.f32 %v8130_v39, %v9652_v58  ;;  %v8225_v39 = vld [vmem:[%s8975_s7 + $0xac] ss:$16 sps:$4 sm:$0xff]  }
 0x4b0   : > { %4397 = vmatpush1.bf16.msra.mxu1 %v3735_v13  ;;  %4212 = vmatprep.mubr.bf16.mxu1 %v8136_v35  ;;  %v3532_v13 = vmax.f32 %v3249_v56, 0.0  ;;  %v3528_v41 = vmax.f32 %v3243_v3, 0.0  ;;  %v3363_v23 = vadd.f32 %v8096_v8, %v9614_v17  ;;  %v3635_v27 = vmax.f32 %v3377_v59, 0.0 }
 0x4b1   : > { %4398 = vmatprep.subr.bf16.mxu1 %v3732_v26  ;;  %v3727_v19 = vpack.c.bf16 %v3559_v5, %v3555_v50  ;;  %v3233_v26 = vadd.f32 %v9645_v31, %v9575_v34  ;;  %v9647_v5 = vld [vmem:[#allocation16_spill] sm:$0xff]  ;;  %v3359_v8 = vadd.f32 %v8084_v6, %v9615_v25  ;;  %v3628_v47 = vmax.f32 %v3369_v4, 0.0  ;;  %v9655_v6 = vld [vmem:[#allocation17_spill] sm:$0xff] }
 0x4b2   : > { %v3716_v0 = vpack.c.bf16 %v3536_v15, %v3532_v13  ;;  %v3712_v52 = vpack.c.bf16 %v3528_v41, %v3524_v43  ;;  %v8193_v34 = vld [vmem:[%s8975_s7 + $0x68] ss:$16 sps:$4 sm:$0xff]   ;;  %v3632_v15 = vmax.f32 %v3373_v63, 0.0  ;;  %v3361_v10 = vadd.f32 %v8093_v1, %v9614_v17 }
 0x4b3   : > { %v3520_v60 = vmax.f32 %v3233_v26, 0.0  ;;  %v3631_v13 = vmax.f32 %v3371_v51, 0.0  ;;  %v3357_v41 = vadd.f32 %v8073_v44, %v9615_v25  ;;  %v3620_v17 = vmax.f32 %v3359_v8, 0.0  ;;  %v8246_v25 = vld [vmem:[%s8975_s7 + $0xa8] ss:$16 sps:$4 sm:$0xff]  }
 0x4b4   : > { %4399 = vmatpush1.bf16.msra.mxu1 %v3731_v29  ;;  %v9648_v29 = vld [vmem:[#allocation102_spill] sm:$0xff]  ;;  %v3764_v26 = vpack.c.bf16 %v3632_v15, %v3628_v47  ;;  %v3351_v1 = vadd.f32 %v8054_v24, %v9616_v55  ;;  %v9657_v44 = vld [vmem:[#allocation100_spill] sm:$0xff] }
 0x4b5   : > { %4400 = vmatprep.subr.bf16.mxu1 %v3728_v46  ;;  %v3229_v53 = vadd.f32 %v9648_v29, %v9647_v5  ;;  %v9649_v46 = vld [vmem:[#allocation14_spill] sm:$0xff]  ;;  %v9656_v5 = vld [vmem:[#allocation99_spill] sm:$0xff]  ;;  %v9664_v8 = vld [vmem:[#allocation92_spill] sm:$0xff] }
 0x4b6   : > { %v3383_v50 = vadd.f32 %v3382_v33, %v9649_v46  ;;  %v3381_v54 = vadd.f32 %v3380_v28, %v9649_v46  ;;  %v3367_v28 = vadd.f32 %v8101_v16, %v9613_v14  ;;  %v3353_v14 = vadd.f32 %v8061_v18, %v9616_v55  ;;  %v8253_v24 = vld [vmem:[%s8975_s7 + $0xcc] ss:$16 sps:$4 sm:$0xff]  }
 0x4b7   : > { %4213 = vmatmul.mubr.bf16.gmra.mxu1 %v8151_v62  ;;  %v3624_v16 = vmax.f32 %v3363_v23, 0.0  ;;  %v3349_v33 = vadd.f32 %v9655_v6, %v9617_v61  ;;  %v3623_v18 = vmax.f32 %v3361_v10, 0.0  ;;  %v3343_v29 = vadd.f32 %v9656_v5, %v9618_v48  ;;  %v9658_v55 = vld [vmem:[#allocation96_spill] sm:$0xff] }
 0x4b8   : > { %4401 = vmatpush1.bf16.msra.mxu1 %v3727_v19  ;;  %4222 = vmatprep.mubr.bf16.mxu1 %v8156_v21  ;;  %v3516_v19 = vmax.f32 %v3229_v53, 0.0  ;;  %v3640_v38 = vmax.f32 %v3383_v50, 0.0  ;;  %v3639_v3 = vmax.f32 %v3381_v54, 0.0  ;;  %v3616_v53 = vmax.f32 %v3353_v14, 0.0  ;;  %v9660_v54 = vld [vmem:[#allocation47_spill] sm:$0xff]  ;;  %v9665_v47 = vld [vmem:[#allocation88_spill] sm:$0xff] }
 0x4b9   : > { %4402 = vmatprep.subr.bf16.mxu1 %v9640_v22  ;;  %v9653_v22 = vld [vmem:[#allocation107_spill] sm:$0xff]  ;;  %v3760_v43 = vpack.c.bf16 %v3624_v16, %v3620_v17  ;;  %v3619_v46 = vmax.f32 %v3357_v41, 0.0  ;;  %v3339_v50 = vadd.f32 %v9658_v55, %v9619_v37  ;;  %v3615_v40 = vmax.f32 %v3351_v1, 0.0  ;;  %v5410_v23 = vld [vmem:[%s8975_s7 + $0xc8] ss:$16 sps:$4 sm:$0xff]  }
 0x4ba   : > { %v3708_v56 = vpack.c.bf16 %v3520_v60, %v3516_v19  ;;  %v3767_v31 = vpack.c.bf16 %v3639_v3, %v3635_v27  ;;  %v3347_v60 = vadd.f32 %v9657_v44, %v9617_v61  ;;  %v3333_v61 = vadd.f32 %v9660_v54, %v9582_v20  ;;  %v5413_v27 = vld [vmem:[%s8975_s7 + $0xe8] ss:$16 sps:$4 sm:$0xff]   ;;  %v5417_v10 = vld [vmem:[%s8975_s7 + $0xc] ss:$16 sps:$4 sm:$0xff]  }
 0x4bb   : > { %v3759_v36 = vpack.c.bf16 %v3623_v18, %v3619_v46  ;;  %v3608_v58 = vmax.f32 %v3343_v29, 0.0 }
 0x4bc   : > { %4403 = vmatpush1.bf16.msra.mxu1 %v9643_v49  ;;  %v9654_v49 = vld [vmem:[#allocation103_spill] sm:$0xff]  ;;  %v3611_v59 = vmax.f32 %v3347_v60, 0.0  ;;  %v3600_v3 = vmax.f32 %v3333_v61, 0.0 }
 0x4bd   : > { %4404 = vmatprep.subr.bf16.mxu1 %v3720_v32  ;;  %v3768_v32 = vpack.c.bf16 %v3640_v38, %v3636_v30  ;;  %v9661_v38 = vld [vmem:[#allocation95_spill] sm:$0xff] }
 0x4be   : > { %v3755_v51 = vpack.c.bf16 %v3615_v40, %v3611_v59 }
 0x4bf   : > { %4223 = vmatmul.mubr.bf16.gmra.mxu1 %v8172_v45 }
 0x4c0   : > { %4405 = vmatpush1.bf16.msra.mxu1 %v9646_v12  ;;  %4232 = vmatprep.mubr.bf16.mxu1 %v8178_v11 }
 0x4c1   : > { %4406 = vmatprep.subr.bf16.mxu1 %v3716_v0  ;;  %v3627_v0 = vmax.f32 %v3367_v28, 0.0 }
 0x4c3   : > { %v3763_v12 = vpack.c.bf16 %v3631_v13, %v3627_v0  ;;  %v9666_v13 = vld [vmem:[#allocation87_spill] sm:$0xff] }
 0x4c4   : > { %4407 = vmatpush1.bf16.msra.mxu1 %v9650_v42  ;;  %v9659_v42 = vld [vmem:[#allocation36_spill] sm:$0xff] }
 0x4c5   : > { %4408 = vmatprep.subr.bf16.mxu1 %v3712_v52  ;;  %v3612_v52 = vmax.f32 %v3349_v33, 0.0  ;;  %v3341_v19 = vadd.f32 %v9659_v42, %v9618_v48  ;;  %v3604_v48 = vmax.f32 %v3339_v50, 0.0 }
 0x4c7   : > { %4233 = vmatmul.mubr.bf16.gmra.mxu1 %v8193_v34  ;;  %v3756_v63 = vpack.c.bf16 %v3616_v53, %v3612_v52  ;;  %v3607_v30 = vmax.f32 %v3341_v19, 0.0  ;;  %v3752_v20 = vpack.c.bf16 %v3608_v58, %v3604_v48  ;;  %v8353_v52 = vpop.permute.xlu0 %3819 }
 0x4c8   : > { %4409 = vmatpush1.bf16.msra.mxu1 %v9653_v22  ;;  %4242 = vmatprep.mubr.bf16.mxu1 %v8199_v7  ;;  %v9662_v22 = vld [vmem:[#allocation91_spill] sm:$0xff] }
 0x4c9   : > { %4410 = vmatprep.subr.bf16.mxu1 %v3708_v56  ;;  %v3337_v56 = vadd.f32 %v9661_v38, %v9619_v37  ;;  %v3329_v4 = vadd.f32 %v9662_v22, %v9574_v9  ;;  %v5415_v37 = vld [vmem:[%s8975_s7 + $0xec] ss:$16 sps:$4 sm:$0xff]  }
 0x4cb   : > { %v3603_v15 = vmax.f32 %v3337_v56, 0.0  ;;  %v8372_v48 = vpop.permute.xlu0 %3829 }
 0x4cc   : > { %4411 = vmatpush1.bf16.msra.mxu1 %v9654_v49  ;;  %v9663_v49 = vld [vmem:[#allocation59_spill] sm:$0xff] }
 0x4cd   : > { %4412 = vmatprep.subr.bf16.mxu1 %v3768_v32  ;;  %v3596_v32 = vmax.f32 %v3329_v4, 0.0  ;;  %v3751_v28 = vpack.c.bf16 %v3607_v30, %v3603_v15 }
 0x4cf   : > { %4243 = vmatmul.mubr.bf16.gmra.mxu1 %v8217_v57  ;;  %v3748_v9 = vpack.c.bf16 %v3600_v3, %v3596_v32 }
 0x4d0   : > { %4413 = vmatpush2.bf16.msra.mxu1 %v3767_v31  ;;  %4252 = vmatprep.mubr.bf16.mxu1 %v8225_v39  ;;  %v9667_v31 = vld [vmem:[#allocation79_spill] sm:$0xff] }
 0x4d1   : > { %4414 = vmatprep.subr.bf16.mxu1 %v3764_v26 }
 0x4d4   : > { %4415 = vmatpush2.bf16.msra.mxu1 %v3763_v12 }
 0x4d5   : > { %4416 = vmatprep.subr.bf16.mxu1 %v3760_v43 }
 0x4d7   : > { %4253 = vmatmul.mubr.bf16.gmra.mxu1 %v8246_v25 }
 0x4d8   : > { %4417 = vmatpush2.bf16.msra.mxu1 %v3759_v36  ;;  %4262 = vmatprep.mubr.bf16.mxu1 %v8253_v24  ;;  %v8360_v36 = vpop.permute.xlu1 %3824 }
 0x4d9   : > { %4418 = vmatprep.subr.bf16.mxu1 %v3756_v63 }
 0x4dc   : > { %4419 = vmatpush2.bf16.msra.mxu1 %v3755_v51 }
 0x4dd   : > { %4420 = vmatprep.subr.bf16.mxu1 %v3752_v20 }
 0x4df   : > { %4263 = vmatmul.mubr.bf16.gmra.mxu1 %v5410_v23 }
 0x4e0   : > { %4421 = vmatpush2.bf16.msra.mxu1 %v3751_v28  ;;  %4272 = vmatprep.mubr.bf16.mxu1 %v5415_v37 }
 0x4e1   : > { %4422 = vmatprep.subr.bf16.mxu1 %v3748_v9  ;;  %v8408_v9 = vpop.permute.xlu1 %3834 }
 0x4e4   : > { %4423 = vmatpush2.bf16.msra.mxu1 %v9663_v49 }
 0x4e5   : > { %4424 = vmatprep.subr.bf16.mxu1 %v9664_v8 }
 0x4e7   : > { %4273 = vmatmul.mubr.bf16.gmra.mxu1 %v5413_v27 }
 0x4e8   : > { %4425 = vmatpush2.bf16.msra.mxu1 %v9665_v47  ;;  %4428 = vmatprep.mubr.bf16.mxu1 %v5417_v10 }
 0x4e9   : > { %4426 = vmatprep.subr.bf16.mxu1 %v9666_v13 }
 0x4ec   : > { %4427 = vmatpush2.bf16.msra.mxu1 %v9667_v31 }
 0x4ef   : > { %v4091_v14 = vpop.f32.mrf.mxu0  ;;  %4429 = vmatmul.mubr.bf16.vlgmr.msra.gmra.mxu1 %v8126_v2 }
 0x4f0   : > { %4438 = vmatprep.mubr.bf16.mxu1 %v8136_v35  ;;  %v4092_v19 = vadd.f32 %v4091_v14, %v8353_v52 }
 0x4f1   : > { %v4093_v16 = vpop.f32.mrf.mxu0 }
 0x4f2   : > { %v4094_v54 = vadd.f32 %v4093_v16, %v8353_v52 }
 0x4f3   : > { %v4095_v26 = vpop.f32.mrf.mxu0 }
 0x4f4   : > { %v4096_v38 = vadd.f32 %v4095_v26, %v8360_v36  ;;  %v8428_v26 = vpop.permute.xlu0 %3839 }
 0x4f5   : > { %v4097_v41 = vpop.f32.mrf.mxu0 }
 0x4f6   : > { %v4098_v22 = vadd.f32 %v4097_v41, %v8360_v36 }
 0x4f7   : > { %4439 = vmatmul.mubr.bf16.gmra.mxu1 %v8151_v62  ;;  %v8288_v0 = vpop.f32.mrf.mxu0 }
 0x4f8   : > { %4448 = vmatprep.mubr.bf16.mxu1 %v8156_v21  ;;  %v4102_v15 = vadd.f32 %v8288_v0, %v8372_v48 }
 0x4f9   : > { %v8292_v6 = vpop.f32.mrf.mxu0 }
 0x4fb   : > { %v8294_v33 = vpop.f32.mrf.mxu0 }
 0x4fc   : > { %v4106_v13 = vadd.f32 %v8294_v33, %v8408_v9 }
 0x4fd   : > { %v8298_v2 = vpop.f32.mrf.mxu0 }
 0x4fe   : > { %v4108_v41 = vadd.f32 %v8298_v2, %v8408_v9 }
 0x4ff   : > { %4449 = vmatmul.mubr.bf16.gmra.mxu1 %v8172_v45  ;;  %v8300_v35 = vpop.f32.mrf.mxu0 }
 0x500   : > { %4458 = vmatprep.mubr.bf16.mxu1 %v8178_v11 }
 0x501   : > { %v8304_v62 = vpop.f32.mrf.mxu0 }
 0x503   : > { %v8306_v21 = vpop.f32.mrf.mxu0 }
 0x505   : > { %v8310_v45 = vpop.f32.mrf.mxu0 }
 0x507   : > { %4459 = vmatmul.mubr.bf16.gmra.mxu1 %v8193_v34  ;;  %v8312_v11 = vpop.f32.mrf.mxu0 }
 0x508   : > { %4468 = vmatprep.mubr.bf16.mxu1 %v8199_v7 }
 0x509   : > { %v8314_v34 = vpop.f32.mrf.mxu0 }
 0x50b   : > { %v8316_v7 = vpop.f32.mrf.mxu0 }
 0x50f   : > { %4469 = vmatmul.mubr.bf16.gmra.mxu1 %v8217_v57  ;;  %v8318_v57 = vpop.f32.mrf.mxu0 }
 0x510   : > { %4478 = vmatprep.mubr.bf16.mxu1 %v8225_v39 }
 0x511   : > { %v8320_v39 = vpop.f32.mrf.mxu0 }
 0x513   : > { %v8322_v17 = vpop.f32.mrf.mxu0 }
 0x515   : > { %v8324_v1 = vpop.f32.mrf.mxu0 }
 0x517   : > { %4479 = vmatmul.mubr.bf16.gmra.mxu1 %v8246_v25  ;;  %v8326_v18 = vpop.f32.mrf.mxu0 }
 0x518   : > { %4488 = vmatprep.mubr.bf16.mxu1 %v8253_v24 }
 0x519   : > { %v8328_v12 = vpop.f32.mrf.mxu0 }
 0x51b   : > { %v8330_v5 = vpop.f32.mrf.mxu0 }
 0x51d   : > { %v8332_v29 = vpop.f32.mrf.mxu0 }
 0x51f   : > { %4489 = vmatmul.mubr.bf16.gmra.mxu1 %v5410_v23  ;;  %v8334_v53 = vpop.f32.mrf.mxu0  ;;  %v5530_v23 = vmov 0.0  }
 0x520   : > { %4498 = vmatprep.mubr.bf16.mxu1 %v5415_v37  ;;  %4642 = vst.msk [vmem:[#allocation2] sm:$0xff] %vm4641_vm1, %v5530_v23  ;;  %4643 = vst.msk [vmem:[#allocation2 + $0x8] sm:$0xff] %vm4641_vm1, %v5530_v23 }
 0x521   : > { %v8336_v43 = vpop.f32.mrf.mxu0  ;;  %4644 = vst.msk [vmem:[#allocation2 + $0x10] sm:$0xff] %vm4641_vm1, %v5530_v23  ;;  %4645 = vst.msk [vmem:[#allocation2 + $0x18] sm:$0xff] %vm4641_vm1, %v5530_v23 }
 0x522   : > { %4646 = vst.msk [vmem:[#allocation2 + $0x20] sm:$0xff] %vm4641_vm1, %v5530_v23  ;;  %4647 = vst.msk [vmem:[#allocation2 + $0x28] sm:$0xff] %vm4641_vm1, %v5530_v23 }
 0x523   : > { %v8338_v25 = vpop.f32.mrf.mxu0  ;;  %4648 = vst.msk [vmem:[#allocation2 + $0x30] sm:$0xff] %vm4641_vm1, %v5530_v23  ;;  %4649 = vst.msk [vmem:[#allocation2 + $0x38] sm:$0xff] %vm4641_vm1, %v5530_v23 }
 0x524   : > { %4650 = vst.msk [vmem:[#allocation2 + $0x40] sm:$0xff] %vm4641_vm1, %v5530_v23  ;;  %4651 = vst.msk [vmem:[#allocation2 + $0x48] sm:$0xff] %vm4641_vm1, %v5530_v23 }
 0x525   : > { %v8340_v44 = vpop.f32.mrf.mxu0  ;;  %4652 = vst.msk [vmem:[#allocation2 + $0x50] sm:$0xff] %vm4641_vm1, %v5530_v23  ;;  %4653 = vst.msk [vmem:[#allocation2 + $0x58] sm:$0xff] %vm4641_vm1, %v5530_v23 }
 0x526   : > { %4654 = vst.msk [vmem:[#allocation2 + $0x60] sm:$0xff] %vm4641_vm1, %v5530_v23  ;;  %4655 = vst.msk [vmem:[#allocation2 + $0x68] sm:$0xff] %vm4641_vm1, %v5530_v23 }
 0x527   : > { %4499 = vmatmul.mubr.bf16.gmra.mxu1 %v5413_v27  ;;  %v8342_v60 = vpop.f32.mrf.mxu0  ;;  %4656 = vst.msk [vmem:[#allocation2 + $0x70] sm:$0xff] %vm4641_vm1, %v5530_v23  ;;  %4657 = vst.msk [vmem:[#allocation2 + $0x78] sm:$0xff] %vm4641_vm1, %v5530_v23  ;;  %v4104_v27 = vadd.f32 %v8292_v6, %v8372_v48 }
 0x529   : > { %v8344_v46 = vpop.f32.mrf.mxu0 }
 0x52b   : > { %v8346_v24 = vpop.f32.mrf.mxu0 }
 0x52d   : > { %v8348_v55 = vpop.f32.mrf.mxu0 }
 0x52f   : > { %v8350_v50 = vpop.f32.mrf.mxu0 }
 0x531   : > { %v8355_v42 = vpop.f32.mrf.mxu0 }
 0x533   : > { %v8365_v58 = vpop.f32.mrf.mxu0 }
 0x535   : > { %v8382_v3 = vpop.f32.mrf.mxu0 }
 0x537   : > { %v8418_v47 = vpop.f32.mrf.mxu0 }
 0x539   : > { %v8438_v33 = vpop.f32.mrf.mxu0 }
 0x56f   : > { %v4204_v40 = vpop.f32.mrf.mxu1 }
 0x570   : > { %v8363_v61 = vadd.f32 %v4204_v40, %v4092_v19  ;;  %v4112_v40 = vadd.f32 %v8300_v35, %v8428_v26 }
 0x571   : > { %v4206_v63 = vpop.f32.mrf.mxu1 }
 0x572   : > { %v9118_v56 = vmax.f32 %v8363_v61, 0.0  ;;  %v8369_v59 = vadd.f32 %v4206_v63, %v4094_v54 }
 0x573   : > { %v4208_v4 = vpop.f32.mrf.mxu1 }
 0x574   : > { %4573 = vst [vmem:[%s8374_s30] sm:$0xff] %v9118_v56  ;;  %v9116_v30 = vmax.f32 %v8369_v59, 0.0  ;;  %v8380_v51 = vadd.f32 %v4208_v4, %v4096_v38  ;;  %v8448_v38 = vpop.permute.xlu1 %3844 }
 0x575   : > { %v4210_v20 = vpop.f32.mrf.mxu1 }
 0x576   : > { %4574 = vst [vmem:[%s8374_s30 + $0x8] sm:$0xff] %v9116_v30  ;;  %v9114_v37 = vmax.f32 %v8380_v51, 0.0  ;;  %v8406_v32 = vadd.f32 %v4210_v20, %v4098_v22  ;;  %v4114_v22 = vadd.f32 %v8304_v62, %v8428_v26  ;;  %v8458_v20 = vpop.f32.mrf.mxu0 }
 0x577   : > { %v4214_v28 = vpop.f32.mrf.mxu1 }
 0x578   : > { %4577 = vst [vmem:[%s8374_s30 + $0x20] sm:$0xff] %v9114_v37  ;;  %v9112_v49 = vmax.f32 %v8406_v32, 0.0  ;;  %v8416_v8 = vadd.f32 %v4214_v28, %v4102_v15  ;;  %v4116_v15 = vadd.f32 %v8306_v21, %v8448_v38 }
 0x579   : > { %v4216_v10 = vpop.f32.mrf.mxu1 }
 0x57a   : > { %4578 = vst [vmem:[%s8374_s30 + $0x28] sm:$0xff] %v9112_v49  ;;  %v9110_v31 = vmax.f32 %v8416_v8, 0.0  ;;  %v8426_v14 = vadd.f32 %v4216_v10, %v4104_v27  ;;  %v8468_v10 = vpop.permute.xlu0 %3849 }
 0x57b   : > { %v4218_v16 = vpop.f32.mrf.mxu1 }
 0x57c   : > { %4581 = vst [vmem:[%s8374_s30 + $0x40] sm:$0xff] %v9110_v31  ;;  %v9108_v0 = vmax.f32 %v8426_v14, 0.0  ;;  %v8436_v6 = vadd.f32 %v4218_v16, %v4106_v13  ;;  %v4118_v13 = vadd.f32 %v8310_v45, %v8448_v38 }
 0x57d   : > { %v4220_v19 = vpop.f32.mrf.mxu1 }
 0x57e   : > { %4582 = vst [vmem:[%s8374_s30 + $0x48] sm:$0xff] %v9108_v0  ;;  %v9106_v54 = vmax.f32 %v8436_v6, 0.0  ;;  %v8446_v2 = vadd.f32 %v4220_v19, %v4108_v41  ;;  %v8478_v41 = vpop.f32.mrf.mxu0 }
 0x57f   : > { %v4224_v63 = vpop.f32.mrf.mxu1 }
 0x580   : > { %4585 = vst [vmem:[%s8374_s30 + $0x60] sm:$0xff] %v9106_v54  ;;  %v9104_v4 = vmax.f32 %v8446_v2, 0.0  ;;  %v8456_v35 = vadd.f32 %v4224_v63, %v4112_v40  ;;  %v4122_v40 = vadd.f32 %v8312_v11, %v8468_v10 }
 0x581   : > { %v4226_v23 = vpop.f32.mrf.mxu1 }
 0x582   : > { %4586 = vst [vmem:[%s8374_s30 + $0x68] sm:$0xff] %v9104_v4  ;;  %v9102_v28 = vmax.f32 %v8456_v35, 0.0  ;;  %v8466_v62 = vadd.f32 %v4226_v23, %v4114_v22  ;;  %v8488_v23 = vpop.permute.xlu1 %3854  ;;  %v8508_v4 = vpop.permute.xlu0 %3859 }
 0x583   : > { %v4228_v27 = vpop.f32.mrf.mxu1 }
 0x584   : > { %4589 = vst [vmem:[%s8374_s30 + $0x80] sm:$0xff] %v9102_v28  ;;  %v9101_v16 = vmax.f32 %v8466_v62, 0.0  ;;  %v8476_v21 = vadd.f32 %v4228_v27, %v4116_v15  ;;  %v4124_v15 = vadd.f32 %v8314_v34, %v8468_v10 }
 0x585   : > { %v4230_v19 = vpop.f32.mrf.mxu1 }
 0x586   : > { %4590 = vst [vmem:[%s8374_s30 + $0x88] sm:$0xff] %v9101_v16  ;;  %v9103_v63 = vmax.f32 %v8476_v21, 0.0  ;;  %v8486_v45 = vadd.f32 %v4230_v19, %v4118_v13  ;;  %v8498_v16 = vpop.f32.mrf.mxu0  ;;  %v4126_v13 = vadd.f32 %v8316_v7, %v8488_v23  ;;  %v8528_v0 = vpop.permute.xlu1 %3864 }
 0x587   : > { %v4234_v22 = vpop.f32.mrf.mxu1  ;;  %v8548_v49 = vpop.permute.xlu0 %3869 }
 0x588   : > { %4593 = vst [vmem:[%s8374_s30 + $0xa0] sm:$0xff] %v9103_v63  ;;  %v9105_v27 = vmax.f32 %v8486_v45, 0.0  ;;  %v8496_v11 = vadd.f32 %v4234_v22, %v4122_v40  ;;  %v4128_v40 = vadd.f32 %v8318_v57, %v8488_v23 }
 0x589   : > { %v4236_v28 = vpop.f32.mrf.mxu1 }
 0x58a   : > { %4594 = vst [vmem:[%s8374_s30 + $0xa8] sm:$0xff] %v9105_v27  ;;  %v9107_v19 = vmax.f32 %v8496_v11, 0.0  ;;  %v8506_v34 = vadd.f32 %v4236_v28, %v4124_v15  ;;  %v8518_v27 = vpop.f32.mrf.mxu0  ;;  %v4132_v28 = vadd.f32 %v8320_v39, %v8508_v4  ;;  %v8568_v30 = vpop.permute.xlu1 %3874 }
 0x58b   : > { %v4238_v63 = vpop.f32.mrf.mxu1 }
 0x58c   : > { %4597 = vst [vmem:[%s8374_s30 + $0xc0] sm:$0xff] %v9107_v19  ;;  %v9109_v22 = vmax.f32 %v8506_v34, 0.0  ;;  %v8516_v7 = vadd.f32 %v4238_v63, %v4126_v13  ;;  %v4134_v63 = vadd.f32 %v8322_v17, %v8508_v4 }
 0x58d   : > { %v4240_v54 = vpop.f32.mrf.mxu1 }
 0x58e   : > { %4598 = vst [vmem:[%s8374_s30 + $0xc8] sm:$0xff] %v9109_v22  ;;  %v9111_v15 = vmax.f32 %v8516_v7, 0.0  ;;  %v8526_v57 = vadd.f32 %v4240_v54, %v4128_v40  ;;  %v8538_v22 = vpop.f32.mrf.mxu0  ;;  %v4136_v54 = vadd.f32 %v8324_v1, %v8528_v0 }
 0x58f   : > { %v4244_v19 = vpop.f32.mrf.mxu1 }
 0x590   : > { %4601 = vst [vmem:[%s8374_s30 + $0xe0] sm:$0xff] %v9111_v15  ;;  %v9113_v13 = vmax.f32 %v8526_v57, 0.0  ;;  %v8536_v39 = vadd.f32 %v4244_v19, %v4132_v28  ;;  %v4138_v19 = vadd.f32 %v8326_v18, %v8528_v0 }
 0x591   : > { %v4246_v31 = vpop.f32.mrf.mxu1 }
 0x592   : > { %4602 = vst [vmem:[%s8374_s30 + $0xe8] sm:$0xff] %v9113_v13  ;;  %v9115_v40 = vmax.f32 %v8536_v39, 0.0  ;;  %v8546_v17 = vadd.f32 %v4246_v31, %v4134_v63  ;;  %v8558_v13 = vpop.f32.mrf.mxu0  ;;  %v4142_v31 = vadd.f32 %v8328_v12, %v8548_v49 }
 0x593   : > { %v4248_v15 = vpop.f32.mrf.mxu1 }
 0x594   : > { %4605 = vst [vmem:[%s8374_s30 + $0x100] sm:$0xff] %v9115_v40  ;;  %v9117_v28 = vmax.f32 %v8546_v17, 0.0  ;;  %v8556_v1 = vadd.f32 %v4248_v15, %v4136_v54  ;;  %v4144_v15 = vadd.f32 %v8330_v5, %v8548_v49 }
 0x595   : > { %v4250_v37 = vpop.f32.mrf.mxu1 }
 0x596   : > { %9668 = vst [vmem:[#allocation86_spill] sm:$0xff] %v8556_v1  ;;  %4606 = vst [vmem:[%s8374_s30 + $0x108] sm:$0xff] %v9117_v28  ;;  %v9119_v63 = vmax.f32 %v8556_v1, 0.0  ;;  %v8566_v18 = vadd.f32 %v4250_v37, %v4138_v19  ;;  %v8578_v28 = vpop.f32.mrf.mxu0  ;;  %v4146_v37 = vadd.f32 %v8332_v29, %v8568_v30  ;;  %v8588_v1 = vpop.permute.xlu0 %3879 }
 0x597   : > { %v4254_v40 = vpop.f32.mrf.mxu1 }
 0x598   : > { %9669 = vst [vmem:[#allocation89_spill] sm:$0xff] %v8566_v18  ;;  %4609 = vst [vmem:[%s8374_s30 + $0x120] sm:$0xff] %v9119_v63  ;;  %v9121_v54 = vmax.f32 %v8566_v18, 0.0  ;;  %v8576_v12 = vadd.f32 %v4254_v40, %v4142_v31  ;;  %v4148_v40 = vadd.f32 %v8334_v53, %v8568_v30 }
 0x599   : > { %v4256_v56 = vpop.f32.mrf.mxu1 }
 0x59a   : > { %9670 = vst [vmem:[#allocation90_spill] sm:$0xff] %v8576_v12  ;;  %4610 = vst [vmem:[%s8374_s30 + $0x128] sm:$0xff] %v9121_v54  ;;  %v9123_v19 = vmax.f32 %v8576_v12, 0.0  ;;  %v8586_v5 = vadd.f32 %v4256_v56, %v4144_v15  ;;  %v8598_v54 = vpop.f32.mrf.mxu0  ;;  %v4152_v56 = vadd.f32 %v8336_v43, %v8588_v1  ;;  %v8608_v12 = vpop.permute.xlu1 %3884 }
 0x59b   : > { %v4258_v63 = vpop.f32.mrf.mxu1 }
 0x59c   : > { %9671 = vst [vmem:[#allocation44_spill] sm:$0xff] %v8586_v5  ;;  %4613 = vst [vmem:[%s8374_s30 + $0x140] sm:$0xff] %v9123_v19  ;;  %v9125_v31 = vmax.f32 %v8586_v5, 0.0  ;;  %v8596_v29 = vadd.f32 %v4258_v63, %v4146_v37  ;;  %v4154_v63 = vadd.f32 %v8338_v25, %v8588_v1 }
 0x59d   : > { %v4260_v18 = vpop.f32.mrf.mxu1 }
 0x59e   : > { %9672 = vst [vmem:[#allocation93_spill] sm:$0xff] %v8596_v29  ;;  %4614 = vst [vmem:[%s8374_s30 + $0x148] sm:$0xff] %v9125_v31  ;;  %v9127_v15 = vmax.f32 %v8596_v29, 0.0  ;;  %v8606_v53 = vadd.f32 %v4260_v18, %v4148_v40  ;;  %v8618_v31 = vpop.f32.mrf.mxu0  ;;  %v4156_v18 = vadd.f32 %v8340_v44, %v8608_v12  ;;  %v8628_v29 = vpop.permute.xlu0 %3889 }
 0x59f   : > { %v4264_v19 = vpop.f32.mrf.mxu1 }
 0x5a0   : > { %9673 = vst [vmem:[#allocation94_spill] sm:$0xff] %v8606_v53  ;;  %4617 = vst [vmem:[%s8374_s30 + $0x160] sm:$0xff] %v9127_v15  ;;  %v9129_v37 = vmax.f32 %v8606_v53, 0.0  ;;  %v8616_v43 = vadd.f32 %v4264_v19, %v4152_v56  ;;  %v4158_v19 = vadd.f32 %v8342_v60, %v8608_v12 }
 0x5a1   : > { %v4266_v5 = vpop.f32.mrf.mxu1 }
 0x5a2   : > { %9674 = vst [vmem:[#allocation35_spill] sm:$0xff] %v8616_v43  ;;  %4618 = vst [vmem:[%s8374_s30 + $0x168] sm:$0xff] %v9129_v37  ;;  %v9131_v40 = vmax.f32 %v8616_v43, 0.0  ;;  %v8626_v25 = vadd.f32 %v4266_v5, %v4154_v63  ;;  %v8638_v37 = vpop.f32.mrf.mxu0  ;;  %v4162_v5 = vadd.f32 %v8344_v46, %v8628_v29  ;;  %v8648_v43 = vpop.permute.xlu1 %3894 }
 0x5a3   : > { %v4268_v15 = vpop.f32.mrf.mxu1  ;;  %9678 = vst [vmem:[#allocation31_spill] sm:$0xff] %v8648_v43 }
 0x5a4   : > { %9675 = vst [vmem:[#allocation97_spill] sm:$0xff] %v8626_v25  ;;  %4621 = vst [vmem:[%s8374_s30 + $0x180] sm:$0xff] %v9131_v40  ;;  %v9133_v56 = vmax.f32 %v8626_v25, 0.0  ;;  %v8636_v44 = vadd.f32 %v4268_v15, %v4156_v18  ;;  %v4164_v15 = vadd.f32 %v8346_v24, %v8628_v29 }
 0x5a5   : > { %v4270_v53 = vpop.f32.mrf.mxu1 }
 0x5a6   : > { %9676 = vst [vmem:[#allocation98_spill] sm:$0xff] %v8636_v44  ;;  %4622 = vst [vmem:[%s8374_s30 + $0x188] sm:$0xff] %v9133_v56  ;;  %v9135_v63 = vmax.f32 %v8636_v44, 0.0  ;;  %v8646_v60 = vadd.f32 %v4270_v53, %v4158_v19  ;;  %v8658_v56 = vpop.f32.mrf.mxu0  ;;  %v4166_v53 = vadd.f32 %v8348_v55, %v8648_v43  ;;  %v4168_v44 = vadd.f32 %v8350_v50, %v8648_v43 }
 0x5a7   : > { %v4274_v40 = vpop.f32.mrf.mxu1 }
 0x5a8   : > { %9677 = vst [vmem:[#allocation49_spill] sm:$0xff] %v8646_v60  ;;  %4625 = vst [vmem:[%s8374_s30 + $0x1a0] sm:$0xff] %v9135_v63  ;;  %v9137_v18 = vmax.f32 %v8646_v60, 0.0  ;;  %v8656_v46 = vadd.f32 %v4274_v40, %v4162_v5  ;;  %v8676_v55 = vpop.f32.mrf.mxu0  ;;  %v4318_v60 = vadd.f32 %v8355_v42, %v8353_v52 }
 0x5a9   : > { %v4276_v25 = vpop.f32.mrf.mxu1 }
 0x5aa   : > { %9679 = vst [vmem:[#allocation33_spill] sm:$0xff] %v8656_v46  ;;  %4626 = vst [vmem:[%s8374_s30 + $0x1a8] sm:$0xff] %v9137_v18  ;;  %v9139_v24 = vmax.f32 %v8656_v46, 0.0  ;;  %v8666_v19 = vadd.f32 %v4276_v25, %v4164_v15  ;;  %v8692_v46 = vpop.f32.mrf.mxu0 }
 0x5ab   : > { %v4278_v63 = vpop.f32.mrf.mxu1 }
 0x5ac   : > { %9680 = vst [vmem:[#allocation46_spill] sm:$0xff] %v8666_v19  ;;  %4629 = vst [vmem:[%s8374_s30 + $0x1c0] sm:$0xff] %v9139_v24  ;;  %v9141_v40 = vmax.f32 %v8666_v19, 0.0  ;;  %v8674_v5 = vadd.f32 %v4278_v63, %v4166_v53  ;;  %v4320_v63 = vadd.f32 %v8365_v58, %v8353_v52 }
 0x5ad   : > { %v4280_v18 = vpop.f32.mrf.mxu1 }
 0x5ae   : > { %9681 = vst [vmem:[#allocation27_spill] sm:$0xff] %v8674_v5  ;;  %4630 = vst [vmem:[%s8374_s30 + $0x1c8] sm:$0xff] %v9141_v40  ;;  %v9143_v25 = vmax.f32 %v8674_v5, 0.0  ;;  %v8684_v50 = vadd.f32 %v4280_v18, %v4168_v44  ;;  %v4322_v40 = vadd.f32 %v8382_v3, %v8360_v36  ;;  %v9682_v44 = vmax.f32 %v8363_v61, 0.0  ;;  %v8708_v3 = vpop.f32.mrf.mxu0 }
 0x5af   : > { %v4430_v15 = vpop.f32.mrf.mxu1  ;;  %v9683_v18 = vmax.f32 %v8369_v59, 0.0  ;;  %v4328_v61 = vadd.f32 %v8438_v33, %v8372_v48 }
 0x5b0   : > { %4633 = vst [vmem:[%s8374_s30 + $0x1e0] sm:$0xff] %v9143_v25  ;;  %v4570_v53 = vmax.f32 %v8684_v50, 0.0  ;;  %v4431_v24 = vadd.f32 %v4430_v15, %v4318_v60  ;;  %v4324_v60 = vadd.f32 %v8418_v47, %v8360_v36 }
 0x5b1   : > { %v4432_v42 = vpop.f32.mrf.mxu1  ;;  %v4674_v19 = vadd.f32 %v9683_v18, %v9682_v44  ;;  %v9684_v44 = vmax.f32 %v8380_v51, 0.0  ;;  %v4332_v51 = vadd.f32 %v8478_v41, %v8408_v9 }
 0x5b2   : > { %4634 = vst [vmem:[%s8374_s30 + $0x1e8] sm:$0xff] %v4570_v53  ;;  %v4511_v52 = vmax.f32 %v4431_v24, 0.0  ;;  %v4433_v58 = vadd.f32 %v4432_v42, %v4320_v63  ;;  %v9685_v24 = vmax.f32 %v8406_v32, 0.0  ;;  %v8720_v32 = vpop.f32.mrf.mxu0 }
 0x5b3   : > { %v4434_v25 = vpop.f32.mrf.mxu1 }
 0x5b4   : > { %4575 = vst [vmem:[%s8374_s30 + $0x10] sm:$0xff] %v4511_v52  ;;  %v4675_v15 = vadd.f32 %v4674_v19, %v4511_v52  ;;  %v4512_v5 = vmax.f32 %v4433_v58, 0.0  ;;  %v4435_v43 = vadd.f32 %v4434_v25, %v4322_v40  ;;  %v4679_v63 = vadd.f32 %v9685_v24, %v9684_v44 }
 0x5b5   : > { %v4436_v59 = vpop.f32.mrf.mxu1  ;;  %v4330_v19 = vadd.f32 %v8458_v20, %v8372_v48 }
 0x5b6   : > { %4576 = vst [vmem:[%s8374_s30 + $0x18] sm:$0xff] %v4512_v5  ;;  %v4676_v42 = vadd.f32 %v4675_v15, %v4512_v5  ;;  %v4515_v18 = vmax.f32 %v4435_v43, 0.0  ;;  %v4437_v36 = vadd.f32 %v4436_v59, %v4324_v60  ;;  %v9686_v5 = vmax.f32 %v8416_v8, 0.0 }
 0x5b7   : > { %v4440_v47 = vpop.f32.mrf.mxu1  ;;  %v9687_v43 = vmax.f32 %v8426_v14, 0.0  ;;  %v4338_v8 = vadd.f32 %v8518_v27, %v8428_v26  ;;  %v8732_v14 = vpop.f32.mrf.mxu0 }
 0x5b8   : > { %4579 = vst [vmem:[%s8374_s30 + $0x30] sm:$0xff] %v4515_v18  ;;  %v4680_v33 = vadd.f32 %v4679_v63, %v4515_v18  ;;  %v4516_v40 = vmax.f32 %v4437_v36, 0.0  ;;  %v4441_v25 = vadd.f32 %v4440_v47, %v4328_v61  ;;  %4677 = vadd.xlane.f32.xlu0 %v4676_v42  ;;  %v4334_v61 = vadd.f32 %v8498_v16, %v8408_v9 }
 0x5b9   : > { %v4442_v52 = vpop.f32.mrf.mxu1  ;;  %v4684_v58 = vadd.f32 %v9687_v43, %v9686_v5  ;;  %v9688_v63 = vmax.f32 %v8436_v6, 0.0  ;;  %v9689_v42 = vmax.f32 %v8446_v2, 0.0  ;;  %v4342_v6 = vadd.f32 %v8558_v13, %v8448_v38  ;;  %v8744_v2 = vpop.f32.mrf.mxu0 }
 0x5ba   : > { %4580 = vst [vmem:[%s8374_s30 + $0x38] sm:$0xff] %v4516_v40  ;;  %v4681_v48 = vadd.f32 %v4680_v33, %v4516_v40  ;;  %v4519_v20 = vmax.f32 %v4441_v25, 0.0  ;;  %v4443_v60 = vadd.f32 %v4442_v52, %v4330_v19  ;;  %v4340_v19 = vadd.f32 %v8538_v22, %v8428_v26 }
 0x5bb   : > { %v4444_v15 = vpop.f32.mrf.mxu1  ;;  %v4689_v18 = vadd.f32 %v9689_v42, %v9688_v63  ;;  %v9691_v52 = vmax.f32 %v8466_v62, 0.0  ;;  %v8756_v62 = vpop.f32.mrf.mxu0 }
 0x5bc   : > { %4583 = vst [vmem:[%s8374_s30 + $0x50] sm:$0xff] %v4519_v20  ;;  %v4685_v41 = vadd.f32 %v4684_v58, %v4519_v20  ;;  %v4520_v59 = vmax.f32 %v4443_v60, 0.0  ;;  %v4445_v44 = vadd.f32 %v4444_v15, %v4332_v51  ;;  %4682 = vadd.xlane.f32.xlu1 %v4681_v48  ;;  %v9690_v51 = vmax.f32 %v8456_v35, 0.0 }
 0x5bd   : > { %v4446_v24 = vpop.f32.mrf.mxu1  ;;  %v4344_v48 = vadd.f32 %v8578_v28, %v8448_v38  ;;  %v4348_v35 = vadd.f32 %v8598_v54, %v8468_v10 }
 0x5be   : > { %4584 = vst [vmem:[%s8374_s30 + $0x58] sm:$0xff] %v4520_v59  ;;  %v4686_v9 = vadd.f32 %v4685_v41, %v4520_v59  ;;  %v4523_v16 = vmax.f32 %v4445_v44, 0.0  ;;  %v4447_v36 = vadd.f32 %v4446_v24, %v4334_v61  ;;  %v4694_v5 = vadd.f32 %v9691_v52, %v9690_v51 }
 0x5bf   : > { %v4450_v47 = vpop.f32.mrf.mxu1  ;;  %v9692_v61 = vmax.f32 %v8476_v21, 0.0  ;;  %v9693_v41 = vmax.f32 %v8486_v45, 0.0  ;;  %v4350_v24 = vadd.f32 %v8618_v31, %v8468_v10  ;;  %v4352_v21 = vadd.f32 %v8638_v37, %v8488_v23  ;;  %v8768_v45 = vpop.f32.mrf.mxu0 }
 0x5c0   : > { %4587 = vst [vmem:[%s8374_s30 + $0x70] sm:$0xff] %v4523_v16  ;;  %v4690_v27 = vadd.f32 %v4689_v18, %v4523_v16  ;;  %v4524_v33 = vmax.f32 %v4447_v36, 0.0  ;;  %v4451_v40 = vadd.f32 %v4450_v47, %v4338_v8  ;;  %4687 = vadd.xlane.f32.xlu0 %v4686_v9  ;;  %v9694_v9 = vmax.f32 %v8496_v11, 0.0 }
 0x5c1   : > { %v4452_v25 = vpop.f32.mrf.mxu1  ;;  %v4699_v59 = vadd.f32 %v9693_v41, %v9692_v61  ;;  %v9695_v16 = vmax.f32 %v8506_v34, 0.0  ;;  %v4358_v11 = vadd.f32 %v8676_v55, %v8508_v4  ;;  %v4377_v34 = vpop.f32.mrf.mxu0  ;;  %v9697_v51 = vmax.f32 %v8526_v57, 0.0 }
 0x5c2   : > { %4588 = vst [vmem:[%s8374_s30 + $0x78] sm:$0xff] %v4524_v33  ;;  %v4691_v26 = vadd.f32 %v4690_v27, %v4524_v33  ;;  %v4527_v22 = vmax.f32 %v4451_v40, 0.0  ;;  %v4453_v43 = vadd.f32 %v4452_v25, %v4340_v19  ;;  %v4354_v27 = vadd.f32 %v8658_v56, %v8488_v23 }
 0x5c3   : > { %v4454_v58 = vpop.f32.mrf.mxu1  ;;  %v4704_v36 = vadd.f32 %v9695_v16, %v9694_v9  ;;  %v9696_v25 = vmax.f32 %v8516_v7, 0.0  ;;  %v4362_v7 = vadd.f32 %v8708_v3, %v8528_v0  ;;  %v4379_v57 = vpop.f32.mrf.mxu0  ;;  %v4364_v61 = vadd.f32 %v8720_v32, %v8528_v0 }
 0x5c4   : > { %4591 = vst [vmem:[%s8374_s30 + $0x90] sm:$0xff] %v4527_v22  ;;  %v4695_v13 = vadd.f32 %v4694_v5, %v4527_v22  ;;  %v4528_v20 = vmax.f32 %v4453_v43, 0.0  ;;  %v4455_v60 = vadd.f32 %v4454_v58, %v4342_v6  ;;  %4692 = vadd.xlane.f32.xlu0 %v4691_v26  ;;  %v4360_v22 = vadd.f32 %v8692_v46, %v8508_v4 }
 0x5c5   : > { %v4456_v15 = vpop.f32.mrf.mxu1  ;;  %v4709_v52 = vadd.f32 %v9697_v51, %v9696_v25  ;;  %v4372_v16 = vadd.f32 %v8756_v62, %v8568_v30  ;;  %v4378_v51 = vadd.f32 %v4377_v34, %v8588_v1 }
 0x5c6   : > { %4592 = vst [vmem:[%s8374_s30 + $0x98] sm:$0xff] %v4528_v20  ;;  %v4696_v38 = vadd.f32 %v4695_v13, %v4528_v20  ;;  %v4531_v28 = vmax.f32 %v4455_v60, 0.0  ;;  %v4457_v44 = vadd.f32 %v4456_v15, %v4344_v48  ;;  %v9698_v13 = vmax.f32 %v8536_v39, 0.0 }
 0x5c7   : > { %v4460_v8 = vpop.f32.mrf.mxu1  ;;  %v9699_v20 = vmax.f32 %v8546_v17, 0.0  ;;  %v4368_v39 = vadd.f32 %v8732_v14, %v8548_v49  ;;  %v4381_v17 = vpop.f32.mrf.mxu0 }
 0x5c8   : > { %4595 = vst [vmem:[%s8374_s30 + $0xb0] sm:$0xff] %v4531_v28  ;;  %v4700_v54 = vadd.f32 %v4699_v59, %v4531_v28  ;;  %v4532_v63 = vmax.f32 %v4457_v44, 0.0  ;;  %v4461_v42 = vadd.f32 %v4460_v8, %v4348_v35  ;;  %4697 = vadd.xlane.f32.xlu1 %v4696_v38  ;;  %v9700_v28 = vld [vmem:[#allocation86_spill] sm:$0xff]  ;;  %v9702_v8 = vld [vmem:[#allocation89_spill] sm:$0xff] }
 0x5c9   : > { %v4462_v18 = vpop.f32.mrf.mxu1  ;;  %v4714_v60 = vadd.f32 %v9699_v20, %v9698_v13  ;;  %v9701_v44 = vmax.f32 %v9700_v28, 0.0  ;;  %v4382_v20 = vadd.f32 %v4381_v17, %v8608_v12 }
 0x5ca   : > { %4596 = vst [vmem:[%s8374_s30 + $0xb8] sm:$0xff] %v4532_v63  ;;  %v4701_v10 = vadd.f32 %v4700_v54, %v4532_v63  ;;  %v4535_v31 = vmax.f32 %v4461_v42, 0.0  ;;  %v4463_v47 = vadd.f32 %v4462_v18, %v4350_v24  ;;  %v9703_v24 = vmax.f32 %v9702_v8, 0.0 }
 0x5cb   : > { %v4464_v19 = vpop.f32.mrf.mxu1 }
 0x5cc   : > { %4599 = vst [vmem:[%s8374_s30 + $0xd0] sm:$0xff] %v4535_v31  ;;  %v4705_v37 = vadd.f32 %v4704_v36, %v4535_v31  ;;  %v4536_v33 = vmax.f32 %v4463_v47, 0.0  ;;  %v4465_v40 = vadd.f32 %v4464_v19, %v4352_v21  ;;  %4702 = vadd.xlane.f32.xlu0 %v4701_v10  ;;  %v4719_v54 = vadd.f32 %v9703_v24, %v9701_v44  ;;  %v4383_v36 = vpop.f32.mrf.mxu0  ;;  %v9704_v31 = vld [vmem:[#allocation90_spill] sm:$0xff]  ;;  %v9706_v19 = vld [vmem:[#allocation44_spill] sm:$0xff] }
 0x5cd   : > { %v4466_v6 = vpop.f32.mrf.mxu1  ;;  %v4370_v21 = vadd.f32 %v8744_v2, %v8548_v49  ;;  %v9705_v47 = vmax.f32 %v9704_v31, 0.0  ;;  %v9720_v31 = vld [vmem:[#allocation31_spill] sm:$0xff] }
 0x5ce   : > { %4600 = vst [vmem:[%s8374_s30 + $0xd8] sm:$0xff] %v4536_v33  ;;  %v4706_v5 = vadd.f32 %v4705_v37, %v4536_v33  ;;  %v4539_v23 = vmax.f32 %v4465_v40, 0.0  ;;  %v4467_v56 = vadd.f32 %v4466_v6, %v4354_v27  ;;  %v9707_v27 = vmax.f32 %v9706_v19, 0.0 }
 0x5cf   : > { %v4470_v26 = vpop.f32.mrf.mxu1 }
 0x5d0   : > { %4603 = vst [vmem:[%s8374_s30 + $0xf0] sm:$0xff] %v4539_v23  ;;  %v4710_v43 = vadd.f32 %v4709_v52, %v4539_v23  ;;  %v4540_v55 = vmax.f32 %v4467_v56, 0.0  ;;  %v4471_v58 = vadd.f32 %v4470_v26, %v4358_v11  ;;  %4707 = vadd.xlane.f32.xlu1 %v4706_v5  ;;  %v4724_v37 = vadd.f32 %v9707_v27, %v9705_v47  ;;  %v4387_v52 = vpop.f32.mrf.mxu0  ;;  %v9708_v23 = vld [vmem:[#allocation93_spill] sm:$0xff]  ;;  %v9710_v26 = vld [vmem:[#allocation94_spill] sm:$0xff] }
 0x5d1   : > { %v4472_v48 = vpop.f32.mrf.mxu1  ;;  %v4374_v11 = vadd.f32 %v8768_v45, %v8568_v30  ;;  %v9709_v56 = vmax.f32 %v9708_v23, 0.0  ;;  %v4388_v44 = vadd.f32 %v4387_v52, %v8628_v29 }
 0x5d2   : > { %4604 = vst [vmem:[%s8374_s30 + $0xf8] sm:$0xff] %v4540_v55  ;;  %v4711_v35 = vadd.f32 %v4710_v43, %v4540_v55  ;;  %v4543_v4 = vmax.f32 %v4471_v58, 0.0  ;;  %v4473_v46 = vadd.f32 %v4472_v48, %v4360_v22  ;;  %v9711_v22 = vmax.f32 %v9710_v26, 0.0 }
 0x5d3   : > { %v4474_v15 = vpop.f32.mrf.mxu1 }
 0x5d4   : > { %4607 = vst [vmem:[%s8374_s30 + $0x110] sm:$0xff] %v4543_v4  ;;  %v4715_v41 = vadd.f32 %v4714_v60, %v4543_v4  ;;  %v4544_v3 = vmax.f32 %v4473_v46, 0.0  ;;  %v4475_v59 = vadd.f32 %v4474_v15, %v4362_v7  ;;  %4712 = vadd.xlane.f32.xlu0 %v4711_v35  ;;  %v4729_v43 = vadd.f32 %v9711_v22, %v9709_v56  ;;  %v4389_v60 = vpop.f32.mrf.mxu0  ;;  %v9712_v4 = vld [vmem:[#allocation35_spill] sm:$0xff]  ;;  %v9714_v15 = vld [vmem:[#allocation97_spill] sm:$0xff] }
 0x5d5   : > { %v4476_v38 = vpop.f32.mrf.mxu1  ;;  %v4380_v7 = vadd.f32 %v4379_v57, %v8588_v1  ;;  %v9713_v46 = vmax.f32 %v9712_v4, 0.0  ;;  %v9725_v56 = vld [vmem:[#allocation27_spill] sm:$0xff] }
 0x5d6   : > { %4608 = vst [vmem:[%s8374_s30 + $0x118] sm:$0xff] %v4544_v3  ;;  %v4716_v63 = vadd.f32 %v4715_v41, %v4544_v3  ;;  %v4547_v0 = vmax.f32 %v4475_v59, 0.0  ;;  %v4477_v32 = vadd.f32 %v4476_v38, %v4364_v61  ;;  %v9715_v61 = vmax.f32 %v9714_v15, 0.0  ;;  %v4391_v8 = vpop.f32.mrf.mxu0 }
 0x5d7   : > { %v4480_v42 = vpop.f32.mrf.mxu1  ;;  %v4392_v47 = vadd.f32 %v4391_v8, %v9720_v31  ;;  %v9726_v26 = vmax.f32 %v9725_v56, 0.0 }
 0x5d8   : > { %4611 = vst [vmem:[%s8374_s30 + $0x130] sm:$0xff] %v4547_v0  ;;  %v4720_v18 = vadd.f32 %v4719_v54, %v4547_v0  ;;  %v4548_v14 = vmax.f32 %v4477_v32, 0.0  ;;  %v4481_v9 = vadd.f32 %v4480_v42, %v4368_v39  ;;  %4717 = vadd.xlane.f32.xlu1 %v4716_v63  ;;  %v4734_v41 = vadd.f32 %v9715_v61, %v9713_v46  ;;  %v9716_v54 = vld [vmem:[#allocation98_spill] sm:$0xff]  ;;  %v9718_v0 = vld [vmem:[#allocation49_spill] sm:$0xff]  ;;  %v4393_v19 = vpop.f32.mrf.mxu0 }
 0x5d9   : > { %v4482_v10 = vpop.f32.mrf.mxu1  ;;  %v4384_v39 = vadd.f32 %v4383_v36, %v8608_v12  ;;  %v9717_v63 = vmax.f32 %v9716_v54, 0.0  ;;  %v9719_v32 = vmax.f32 %v9718_v0, 0.0  ;;  %v4749_v22 = vadd.f32 %v4570_v53, %v9726_v26 }
 0x5da   : > { %4612 = vst [vmem:[%s8374_s30 + $0x138] sm:$0xff] %v4548_v14  ;;  %v4721_v33 = vadd.f32 %v4720_v18, %v4548_v14  ;;  %v4551_v49 = vmax.f32 %v4481_v9, 0.0  ;;  %v4483_v2 = vadd.f32 %v4482_v10, %v4370_v21  ;;  %v4390_v9 = vadd.f32 %v4389_v60, %v8628_v29 }
 0x5db   : > { %v4484_v40 = vpop.f32.mrf.mxu1  ;;  %v4739_v42 = vadd.f32 %v9719_v32, %v9717_v63 }
 0x5dc   : > { %4615 = vst [vmem:[%s8374_s30 + $0x150] sm:$0xff] %v4551_v49  ;;  %v4725_v6 = vadd.f32 %v4724_v37, %v4551_v49  ;;  %v4552_v62 = vmax.f32 %v4483_v2, 0.0  ;;  %v4485_v25 = vadd.f32 %v4484_v40, %v4372_v16  ;;  %4722 = vadd.xlane.f32.xlu0 %v4721_v33  ;;  %v9721_v37 = vld [vmem:[#allocation33_spill] sm:$0xff]  ;;  %v9723_v49 = vld [vmem:[#allocation46_spill] sm:$0xff] }
 0x5dd   : > { %v4486_v5 = vpop.f32.mrf.mxu1  ;;  %v9722_v33 = vmax.f32 %v9721_v37, 0.0  ;;  %v9724_v2 = vmax.f32 %v9723_v49, 0.0 }
 0x5de   : > { %4616 = vst [vmem:[%s8374_s30 + $0x158] sm:$0xff] %v4552_v62  ;;  %v4726_v55 = vadd.f32 %v4725_v6, %v4552_v62  ;;  %v4555_v58 = vmax.f32 %v4485_v25, 0.0  ;;  %v4487_v30 = vadd.f32 %v4486_v5, %v4374_v11  ;;  %v4394_v25 = vadd.f32 %v4393_v19, %v9720_v31 }
 0x5df   : > { %v4490_v45 = vpop.f32.mrf.mxu1  ;;  %v4744_v40 = vadd.f32 %v9724_v2, %v9722_v33 }
 0x5e0   : > { %4619 = vst [vmem:[%s8374_s30 + $0x170] sm:$0xff] %v4555_v58  ;;  %v4730_v48 = vadd.f32 %v4729_v43, %v4555_v58  ;;  %v4556_v13 = vmax.f32 %v4487_v30, 0.0  ;;  %v4491_v34 = vadd.f32 %v4490_v45, %v4378_v51  ;;  %4727 = vadd.xlane.f32.xlu1 %v4726_v55 }
 0x5e1   : > { %v4492_v35 = vpop.f32.mrf.mxu1 }
 0x5e2   : > { %4620 = vst [vmem:[%s8374_s30 + $0x178] sm:$0xff] %v4556_v13  ;;  %v4731_v3 = vadd.f32 %v4730_v48, %v4556_v13  ;;  %v4559_v59 = vmax.f32 %v4491_v34, 0.0  ;;  %v4493_v1 = vadd.f32 %v4492_v35, %v4380_v7 }
 0x5e3   : > { %v4494_v57 = vpop.f32.mrf.mxu1 }
 0x5e4   : > { %4623 = vst [vmem:[%s8374_s30 + $0x190] sm:$0xff] %v4559_v59  ;;  %v4735_v38 = vadd.f32 %v4734_v41, %v4559_v59  ;;  %v4560_v28 = vmax.f32 %v4493_v1, 0.0  ;;  %v4495_v17 = vadd.f32 %v4494_v57, %v4382_v20  ;;  %4732 = vadd.xlane.f32.xlu0 %v4731_v3 }
 0x5e5   : > { %v4496_v24 = vpop.f32.mrf.mxu1 }
 0x5e6   : > { %4624 = vst [vmem:[%s8374_s30 + $0x198] sm:$0xff] %v4560_v28  ;;  %v4736_v21 = vadd.f32 %v4735_v38, %v4560_v28  ;;  %v4563_v18 = vmax.f32 %v4495_v17, 0.0  ;;  %v4497_v12 = vadd.f32 %v4496_v24, %v4384_v39 }
 0x5e7   : > { %v4500_v14 = vpop.f32.mrf.mxu1 }
 0x5e8   : > { %4627 = vst [vmem:[%s8374_s30 + $0x1b0] sm:$0xff] %v4563_v18  ;;  %v4740_v16 = vadd.f32 %v4739_v42, %v4563_v18  ;;  %v4564_v36 = vmax.f32 %v4497_v12, 0.0  ;;  %v4501_v10 = vadd.f32 %v4500_v14, %v4388_v44  ;;  %4737 = vadd.xlane.f32.xlu1 %v4736_v21 }
 0x5e9   : > { %v4502_v27 = vpop.f32.mrf.mxu1 }
 0x5ea   : > { %4628 = vst [vmem:[%s8374_s30 + $0x1b8] sm:$0xff] %v4564_v36  ;;  %v4741_v11 = vadd.f32 %v4740_v16, %v4564_v36  ;;  %v4567_v29 = vmax.f32 %v4501_v10, 0.0  ;;  %v4503_v6 = vadd.f32 %v4502_v27, %v4390_v9 }
 0x5eb   : > { %v4504_v62 = vpop.f32.mrf.mxu1 }
 0x5ec   : > { %4631 = vst [vmem:[%s8374_s30 + $0x1d0] sm:$0xff] %v4567_v29  ;;  %v4745_v51 = vadd.f32 %v4744_v40, %v4567_v29  ;;  %v4568_v52 = vmax.f32 %v4503_v6, 0.0  ;;  %v4505_v5 = vadd.f32 %v4504_v62, %v4392_v47  ;;  %4742 = vadd.xlane.f32.xlu0 %v4741_v11 }
 0x5ed   : > { %v4506_v23 = vpop.f32.mrf.mxu1 }
 0x5ee   : > { %4632 = vst [vmem:[%s8374_s30 + $0x1d8] sm:$0xff] %v4568_v52  ;;  %v4746_v43 = vadd.f32 %v4745_v51, %v4568_v52  ;;  %v4571_v55 = vmax.f32 %v4505_v5, 0.0  ;;  %v4507_v58 = vadd.f32 %v4506_v23, %v4394_v25 }
 0x5f0   : > { %4635 = vst [vmem:[%s8374_s30 + $0x1f0] sm:$0xff] %v4571_v55  ;;  %v4750_v30 = vadd.f32 %v4749_v22, %v4571_v55  ;;  %v4572_v45 = vmax.f32 %v4507_v58, 0.0  ;;  %4747 = vadd.xlane.f32.xlu1 %v4746_v43 }
 0x5f2   : > { %4636 = vst [vmem:[%s8374_s30 + $0x1f8] sm:$0xff] %v4572_v45  ;;  %v4751_v7 = vadd.f32 %v4750_v30, %v4572_v45  ;;  %s5450_s30 = scalar_lea.vmem %s5449_s11, 16384 }
 0x5f3   : > { %p5452_p1 = scmp.lt.s32.totalorder %s5450_s30, %s5444_s28 }
 0x5f4   : > { %4752 = vadd.xlane.f32.xlu0 %v4751_v7 }
 0x5f5   : > { %p5453_p2 = por %p5452_p1, %p5451_p0 }
 0x5f7   : > { %p5454_p3 = pnand %p5453_p2, %p5447_p13 }
 0x5f9   : > { %5457 = shalt.err (!%p5454_p3)
}
 0x5fa   : > { %s5458_s29 = scalar_lea.hbm %s8862_s20, 8192  ;;  %s5462_s19 = scalar_lea.hbm %s8977_s9, 16384 }
 0x5fb   : > { %p5459_p5 = scmp.ne.s32.totalorder %s8862_s20, %s5458_s29  ;;  %p5463_p9 = scmp.lt.s32.totalorder %s8862_s20, %s8977_s9 }
 0x5fc   : > { %p5464_p12 = scmp.lt.s32.totalorder %s5462_s19, %s5458_s29 }
 0x5fd   : > { %p5460_p6 = pnand %p5459_p5, %p5629_p4 }
 0x5fe   : > { %p5465_p10 = por %p5464_p12, %p5463_p9 }
 0x5ff   : > { %p5461_p7 = pneg %p5460_p6 }
 0x601   : > { %p5466_p11 = pnand %p5465_p10, %p5461_p7 }
 0x603   : > { %5469 = shalt.err (!%p5466_p11)
}
 0x604   : > { %s5532_s28 = smov 512   ;;  %s5533_s11 = smov 32   ;;  %v4658_v50 = vld [vmem:[#allocation2] sm:$0xff]  ;;  %v4659_v13 = vld [vmem:[#allocation2 + $0x8] sm:$0xff]  ;;  %v4660_v60 = vld [vmem:[#allocation2 + $0x10] sm:$0xff] }
 0x605   : > { %5154 = dma.vmem_to_hbm [thread:$0]  (%p5629_p4), %s8864_s0, 8192, %s8862_s20, %s8868_s22, %s5532_s28, %s5532_s28, %s5533_s11   ;;  %v4661_v15 = vld [vmem:[#allocation2 + $0x18] sm:$0xff]  ;;  %v4662_v1 = vld [vmem:[#allocation2 + $0x20] sm:$0xff]  ;;  %v4663_v17 = vld [vmem:[#allocation2 + $0x28] sm:$0xff] }
 0x606   : > { %s9727_s1 = sshll.u32 %s5669_s24, 7  ;;  %v4664_v63 = vld [vmem:[#allocation2 + $0x30] sm:$0xff]  ;;  %v4665_v18 = vld [vmem:[#allocation2 + $0x38] sm:$0xff]  ;;  %v4666_v36 = vld [vmem:[#allocation2 + $0x40] sm:$0xff] }
 0x607   : > { %s8898_s12 = scalar_lea.vmem %s8978_s10, %s9727_s1  ;;  %v4667_v27 = vld [vmem:[#allocation2 + $0x48] sm:$0xff]  ;;  %v4668_v40 = vld [vmem:[#allocation2 + $0x50] sm:$0xff]  ;;  %v4669_v25 = vld [vmem:[#allocation2 + $0x58] sm:$0xff] }
 0x608   : > { %v4670_v56 = vld [vmem:[#allocation2 + $0x60] sm:$0xff]  ;;  %v4671_v58 = vld [vmem:[#allocation2 + $0x68] sm:$0xff] }
 0x641   : > { %v4678_v53 = vpop.xlane.xlu0 %4677 }
 0x642   : > { %v4754_v48 = vadd.f32 %v4678_v53, %v4658_v50  ;;  %v4672_v53 = vld [vmem:[#allocation2 + $0x70] sm:$0xff] }
 0x644   : > { %4771 = vst.msk [vmem:[#allocation2] sm:$0xff] %vm4641_vm1, %v4754_v48 }
 0x645   : > { %v4683_v34 = vpop.xlane.xlu1 %4682 }
 0x646   : > { %v4755_v20 = vadd.f32 %v4683_v34, %v4659_v13 }
 0x648   : > { %4772 = vst.msk [vmem:[#allocation2 + $0x8] sm:$0xff] %vm4641_vm1, %v4755_v20 }
 0x649   : > { %v4688_v35 = vpop.xlane.xlu0 %4687 }
 0x64a   : > { %v4756_v4 = vadd.f32 %v4688_v35, %v4660_v60  ;;  %v4673_v60 = vld [vmem:[#allocation2 + $0x78] sm:$0xff] }
 0x64b   : > { %v4790_v46 = vld [vmem:[#allocation2] sm:$0xff] }
 0x64c   : > { %v4806_v61 = vmul.f32 0.001953125, %v4790_v46  ;;  %4773 = vst.msk [vmem:[#allocation2 + $0x10] sm:$0xff] %vm4641_vm1, %v4756_v4 }
 0x64d   : > { %v4693_v41 = vpop.xlane.xlu0 %4692 }
 0x64e   : > { %4822 = vst.msk [vmem:[%s8898_s12] sm:$0xff] %vm4641_vm1, %v4806_v61  ;;  %v4757_v3 = vadd.f32 %v4693_v41, %v4661_v15 }
 0x64f   : > { %v4791_v59 = vld [vmem:[#allocation2 + $0x8] sm:$0xff] }
 0x650   : > { %v4807_v57 = vmul.f32 0.001953125, %v4791_v59  ;;  %4774 = vst.msk [vmem:[#allocation2 + $0x18] sm:$0xff] %vm4641_vm1, %v4757_v3 }
 0x651   : > { %v4698_v39 = vpop.xlane.xlu1 %4697 }
 0x652   : > { %4823 = vst.msk [vmem:[%s8898_s12 + $0x8] sm:$0xff] %vm4641_vm1, %v4807_v57  ;;  %v4758_v38 = vadd.f32 %v4698_v39, %v4662_v1 }
 0x653   : > { %v4792_v28 = vld [vmem:[#allocation2 + $0x10] sm:$0xff] }
 0x654   : > { %v4808_v44 = vmul.f32 0.001953125, %v4792_v28  ;;  %4775 = vst.msk [vmem:[#allocation2 + $0x20] sm:$0xff] %vm4641_vm1, %v4758_v38 }
 0x655   : > { %v4703_v8 = vpop.xlane.xlu0 %4702 }
 0x656   : > { %4824 = vst.msk [vmem:[%s8898_s12 + $0x10] sm:$0xff] %vm4641_vm1, %v4808_v44  ;;  %v4759_v24 = vadd.f32 %v4703_v8, %v4663_v17 }
 0x657   : > { %v4793_v54 = vld [vmem:[#allocation2 + $0x18] sm:$0xff] }
 0x658   : > { %v4809_v0 = vmul.f32 0.001953125, %v4793_v54  ;;  %4776 = vst.msk [vmem:[#allocation2 + $0x28] sm:$0xff] %vm4641_vm1, %v4759_v24 }
 0x659   : > { %v4708_v32 = vpop.xlane.xlu1 %4707 }
 0x65a   : > { %4825 = vst.msk [vmem:[%s8898_s12 + $0x18] sm:$0xff] %vm4641_vm1, %v4809_v0  ;;  %v4760_v42 = vadd.f32 %v4708_v32, %v4664_v63 }
 0x65b   : > { %v4794_v21 = vld [vmem:[#allocation2 + $0x20] sm:$0xff] }
 0x65c   : > { %v4810_v12 = vmul.f32 0.001953125, %v4794_v21  ;;  %4777 = vst.msk [vmem:[#allocation2 + $0x30] sm:$0xff] %vm4641_vm1, %v4760_v42 }
 0x65d   : > { %v4713_v14 = vpop.xlane.xlu0 %4712 }
 0x65e   : > { %4826 = vst.msk [vmem:[%s8898_s12 + $0x20] sm:$0xff] %vm4641_vm1, %v4810_v12  ;;  %v4761_v9 = vadd.f32 %v4713_v14, %v4665_v18 }
 0x65f   : > { %v4795_v16 = vld [vmem:[#allocation2 + $0x28] sm:$0xff] }
 0x660   : > { %v4811_v10 = vmul.f32 0.001953125, %v4795_v16  ;;  %4778 = vst.msk [vmem:[#allocation2 + $0x38] sm:$0xff] %vm4641_vm1, %v4761_v9 }
 0x661   : > { %v4718_v31 = vpop.xlane.xlu1 %4717 }
 0x662   : > { %4827 = vst.msk [vmem:[%s8898_s12 + $0x28] sm:$0xff] %vm4641_vm1, %v4811_v10  ;;  %v4762_v47 = vadd.f32 %v4718_v31, %v4666_v36 }
 0x663   : > { %v4796_v19 = vld [vmem:[#allocation2 + $0x30] sm:$0xff] }
 0x664   : > { %v4812_v37 = vmul.f32 0.001953125, %v4796_v19  ;;  %4779 = vst.msk [vmem:[#allocation2 + $0x40] sm:$0xff] %vm4641_vm1, %v4762_v47 }
 0x665   : > { %v4723_v33 = vpop.xlane.xlu0 %4722 }
 0x666   : > { %4828 = vst.msk [vmem:[%s8898_s12 + $0x30] sm:$0xff] %vm4641_vm1, %v4812_v37  ;;  %v4763_v49 = vadd.f32 %v4723_v33, %v4667_v27 }
 0x667   : > { %v4797_v2 = vld [vmem:[#allocation2 + $0x38] sm:$0xff] }
 0x668   : > { %v4813_v11 = vmul.f32 0.001953125, %v4797_v2  ;;  %4780 = vst.msk [vmem:[#allocation2 + $0x48] sm:$0xff] %vm4641_vm1, %v4763_v49 }
 0x669   : > { %v4728_v29 = vpop.xlane.xlu1 %4727 }
 0x66a   : > { %4829 = vst.msk [vmem:[%s8898_s12 + $0x38] sm:$0xff] %vm4641_vm1, %v4813_v11  ;;  %v4764_v6 = vadd.f32 %v4728_v29, %v4668_v40 }
 0x66b   : > { %v4798_v62 = vld [vmem:[#allocation2 + $0x40] sm:$0xff] }
 0x66c   : > { %v4814_v51 = vmul.f32 0.001953125, %v4798_v62  ;;  %4781 = vst.msk [vmem:[#allocation2 + $0x50] sm:$0xff] %vm4641_vm1, %v4764_v6 }
 0x66d   : > { %v4733_v52 = vpop.xlane.xlu0 %4732 }
 0x66e   : > { %4830 = vst.msk [vmem:[%s8898_s12 + $0x40] sm:$0xff] %vm4641_vm1, %v4814_v51  ;;  %v4765_v5 = vadd.f32 %v4733_v52, %v4669_v25 }
 0x66f   : > { %v4799_v23 = vld [vmem:[#allocation2 + $0x48] sm:$0xff] }
 0x670   : > { %v4815_v26 = vmul.f32 0.001953125, %v4799_v23  ;;  %4782 = vst.msk [vmem:[#allocation2 + $0x58] sm:$0xff] %vm4641_vm1, %v4765_v5 }
 0x671   : > { %v4738_v22 = vpop.xlane.xlu1 %4737 }
 0x672   : > { %4831 = vst.msk [vmem:[%s8898_s12 + $0x48] sm:$0xff] %vm4641_vm1, %v4815_v26  ;;  %v4766_v43 = vadd.f32 %v4738_v22, %v4670_v56 }
 0x673   : > { %v4800_v55 = vld [vmem:[#allocation2 + $0x50] sm:$0xff] }
 0x674   : > { %v4816_v30 = vmul.f32 0.001953125, %v4800_v55  ;;  %4783 = vst.msk [vmem:[#allocation2 + $0x60] sm:$0xff] %vm4641_vm1, %v4766_v43 }
 0x675   : > { %v4743_v45 = vpop.xlane.xlu0 %4742 }
 0x676   : > { %4832 = vst.msk [vmem:[%s8898_s12 + $0x50] sm:$0xff] %vm4641_vm1, %v4816_v30  ;;  %v4767_v7 = vadd.f32 %v4743_v45, %v4671_v58 }
 0x677   : > { %v4801_v50 = vld [vmem:[#allocation2 + $0x58] sm:$0xff] }
 0x678   : > { %v4817_v48 = vmul.f32 0.001953125, %v4801_v50  ;;  %4784 = vst.msk [vmem:[#allocation2 + $0x68] sm:$0xff] %vm4641_vm1, %v4767_v7 }
 0x679   : > { %v4748_v13 = vpop.xlane.xlu1 %4747 }
 0x67a   : > { %4833 = vst.msk [vmem:[%s8898_s12 + $0x58] sm:$0xff] %vm4641_vm1, %v4817_v48  ;;  %v4768_v34 = vadd.f32 %v4748_v13, %v4672_v53 }
 0x67b   : > { %v4802_v20 = vld [vmem:[#allocation2 + $0x60] sm:$0xff] }
 0x67c   : > { %v4818_v35 = vmul.f32 0.001953125, %v4802_v20  ;;  %4785 = vst.msk [vmem:[#allocation2 + $0x70] sm:$0xff] %vm4641_vm1, %v4768_v34 }
 0x67d   : > { %v4753_v4 = vpop.xlane.xlu0 %4752 }
 0x67e   : > { %4834 = vst.msk [vmem:[%s8898_s12 + $0x60] sm:$0xff] %vm4641_vm1, %v4818_v35  ;;  %v4769_v46 = vadd.f32 %v4753_v4, %v4673_v60 }
 0x67f   : > { %v4803_v15 = vld [vmem:[#allocation2 + $0x68] sm:$0xff] }
 0x680   : > { %v4819_v61 = vmul.f32 0.001953125, %v4803_v15  ;;  %4786 = vst.msk [vmem:[#allocation2 + $0x78] sm:$0xff] %vm4641_vm1, %v4769_v46 }
 0x682   : > { %4835 = vst.msk [vmem:[%s8898_s12 + $0x68] sm:$0xff] %vm4641_vm1, %v4819_v61 }
 0x683   : > { %v4804_v41 = vld [vmem:[#allocation2 + $0x70] sm:$0xff] }
 0x684   : > { %v4820_v3 = vmul.f32 0.001953125, %v4804_v41 }
 0x686   : > { %4836 = vst.msk [vmem:[%s8898_s12 + $0x70] sm:$0xff] %vm4641_vm1, %v4820_v3 }
 0x687   : > { %v4805_v59 = vld [vmem:[#allocation2 + $0x78] sm:$0xff] }
 0x688   : > { %v4821_v1 = vmul.f32 0.001953125, %v4805_v59 }
 0x68a   : > { %4837 = vst.msk [vmem:[%s8898_s12 + $0x78] sm:$0xff] %vm4641_vm1, %v4821_v1 }
 0x68b PF: > { %p5166_p4 = scmp.ge.s32.totalorder %s5524_s18, 2  ;;  %s4877_s23 = sand.u32 1, %s5504_s13  }
 0x68c   : > { %s4878_s24 = scalar_lea.sflag [#allocation5], %s4877_s23 }
 0x68d   : > { %p5161_p13 = pnand %p5166_p4, %p5636_p8 }
 0x68f   : > { %p5162_p0 = pneg %p5161_p13 }
 0x691   : > { %5499 = dma.done.wait (%p5162_p0), %s4878_s24, 8192  }
 0x692   : > { %5501 = vsyncadd (%p5162_p0), %s4878_s24, 4294959104  ;;  %s25_s18 = sadd.s32 1, %s5524_s18   ;;  %s9728_s13 = smov %s5508_s14 }
 0x693   : > { %p22_p1 = scmp.ge.s32.totalorder %s25_s18, 4   ;;  %s9729_s14 = smov %s5512_s15 }
 0x694   : > { %s9730_s15 = smov %s5642_s26  ;;  %s9731_s16 = smov %s5520_s17 }
 0x695   : > { %s9732_s17 = smov %s9734_s21  ;;  %24 = sbr.rel (!%p22_p1) target bundleno = 8 (0x8), region = 116 }
 0x69a   :  { %4891 = vsyncpa [#allocation4], 1 }
 0x69b   :  { %4893 = vsyncpa [#allocation4 + $0x1], 1 }
 0x69c   :  { %4894 = vsyncpa [#allocation5], 1 }
 0x69d   :  { %4896 = vsyncpa [#allocation5 + $0x1], 1 }

</bundles_post_ra>
